<compile_context>
chip_gen: v6e
topology: v6e:2x2x1
jax: 0.10.0
libtpu: 0.0.40
codegen_flags: <defaults>
</compile_context>

<pallas_src>
import functools

import jax
import jax.numpy as jnp
from jax.experimental import pallas as pl
from jax.experimental.pallas import tpu as pltpu


def _layer_norm(x, g, b, eps=1e-5):
    mu = jnp.mean(x, axis=-1, keepdims=True)
    var = jnp.mean((x - mu) ** 2, axis=-1, keepdims=True)
    return (x - mu) * jax.lax.rsqrt(var + eps) * g + b


def qanet_encoder_kernel(x_ref, mask_ref, pe_ref,
                         ln_g_ref, ln_b_ref, dw_w_ref, dw_b_ref,
                         pw_w_ref, pw_b_ref,
                         ln2_g_ref, ln2_b_ref, w_qkm_ref,
                         ln3_g_ref, ln3_b_ref, w_fc_ref, b_fc_ref,
                         out_ref, *, num_conv, kernel_size, num_heads):
    Bt, d, L = x_ref.shape
    R = Bt * L
    pad = kernel_size // 2

    pe = pe_ref[...]                                        # (L, d) f32

    # NCL -> (L, d) per element (XLU transpose) + positional encoding, then flatten
    # the batch into the row (sublane) axis: (Bt*L, d).
    rows = [x_ref[b].T + pe for b in range(Bt)]
    x = rows[0] if Bt == 1 else jnp.concatenate(rows, axis=0)

    keep = mask_ref[...] > 0.0                              # (Bt, 1, L) bool (hoisted)

    # sequence position of every row of the flat slab (for depthwise edge masks)
    row_l = jax.lax.broadcasted_iota(jnp.int32, (Bt, L, 1), 1).reshape(R, 1)

    ln_g = ln_g_ref[...]
    ln_b = ln_b_ref[...]
    dw_w = dw_w_ref[...]                                    # (num_conv, K, d) f32
    dw_b = dw_b_ref[...]
    pw_w = pw_w_ref[...]                                    # (num_conv, d, d) bf16
    pw_b = pw_b_ref[...]

    prevx = x
    # --- conv stack: LayerNorm -> depthwise conv -> pointwise conv -> relu -> residual
    for i in range(num_conv):
        xn = _layer_norm(x, ln_g[i], ln_b[i])
        # depthwise conv along L via sublane rolls (XLU) + edge masks; no padded copy.
        y = xn * dw_w[i, pad]                               # center tap (shift 0)
        for k in range(kernel_size):
            if k == pad:
                continue
            # want tap[i] = xn[i + (k - pad)]  ->  roll by (pad - k) (jnp.roll semantics)
            shifted = pltpu.roll(xn, (pad - k) % R, axis=0)
            valid = (row_l >= pad - k) & (row_l < L + pad - k)
            y = y + jnp.where(valid, shifted, 0.0) * dw_w[i, k]
        y = y + dw_b[i]
        # pointwise (1x1) conv on the MXU in bf16
        y = jnp.dot(y.astype(jnp.bfloat16), pw_w[i],
                    preferred_element_type=jnp.float32) + pw_b[i]
        x = jnp.maximum(y, 0.0) + prevx
        prevx = x                                           # dropout: identity (eval)

    # --- self-attention (fused Q/K/V projection; heads batched over Bt)
    x2 = _layer_norm(x, ln2_g_ref[0], ln2_b_ref[0])
    qkm = jnp.dot(x2.astype(jnp.bfloat16), w_qkm_ref[...],
                  preferred_element_type=jnp.float32)       # (R, 3d)
    qkm = qkm.reshape(Bt, L, 3 * d)
    q_all = qkm[..., :d]
    k_all = qkm[..., d:2 * d]
    v_all = qkm[..., 2 * d:]
    dh = d // num_heads
    scale = dh ** -0.5
    heads = []
    for h in range(num_heads):
        sl = slice(h * dh, (h + 1) * dh)
        qh = (q_all[..., sl] * scale).astype(jnp.bfloat16)
        kh = k_all[..., sl].astype(jnp.bfloat16)
        vh = v_all[..., sl].astype(jnp.bfloat16)
        logits = jnp.einsum('bqd,bkd->bqk', qh, kh,
                            preferred_element_type=jnp.float32)   # (Bt, L, L)
        logits = jnp.where(keep, logits, -1e15)             # mask_logits
        logits = logits - jnp.max(logits, axis=-1, keepdims=True)
        e = jnp.exp(logits)
        p = e * pl.reciprocal(jnp.sum(e, axis=-1, keepdims=True), approx=True)
        heads.append(jnp.einsum('bqk,bkd->bqd', p.astype(jnp.bfloat16), vh,
                                preferred_element_type=jnp.float32))
    att = heads[0] if num_heads == 1 else jnp.concatenate(heads, axis=-1)
    x = att.reshape(R, d) + prevx
    prevx = x

    # --- position-wise feed-forward (Linear d->d, relu) + residual
    x3 = _layer_norm(x, ln3_g_ref[0], ln3_b_ref[0])
    ff = jnp.dot(x3.astype(jnp.bfloat16), w_fc_ref[...],
                 preferred_element_type=jnp.float32) + b_fc_ref[0]
    x = prevx + jnp.maximum(ff, 0.0)

    # write back in NCL layout (XLU transpose per element)
    for b in range(Bt):
        out_ref[b] = x[b * L:(b + 1) * L, :].T


def qanet_encoder_block(x_ncl, mask, params, *, num_conv=4, kernel_size=7,
                        num_heads=1, batch_block=None):
    B, d, L = x_ncl.shape
    assert d % num_heads == 0
    if batch_block is None:
        # Pack several batch elements per step (bigger MXU M dim, amortized per-step
        # overhead) while keeping >= 2 grid steps so both v7x TensorCores get work.
        batch_block = max(1, B // 2)
    while B % batch_block:
        batch_block -= 1
    nb = B // batch_block

    x_ncl = x_ncl.astype(jnp.float32)                       # stays in NCL: no HBM transpose
    mask3 = mask.astype(jnp.float32).reshape(B, 1, L)

    kern = functools.partial(qanet_encoder_kernel, num_conv=num_conv,
                             kernel_size=kernel_size, num_heads=num_heads)

    weight_names = ["pe", "ln_g", "ln_b", "dw_w", "dw_b", "pw_w", "pw_b",
                    "ln2_g", "ln2_b", "w_qkm", "ln3_g", "ln3_b", "w_fc", "b_fc"]
    weights = [params[n] for n in weight_names]

    def full_spec(arr):
        nd = arr.ndim
        return pl.BlockSpec(arr.shape, lambda i, _nd=nd: (0,) * _nd)

    in_specs = ([pl.BlockSpec((batch_block, d, L), lambda i: (i, 0, 0)),
                 pl.BlockSpec((batch_block, 1, L), lambda i: (i, 0, 0))]
                + [full_spec(w) for w in weights])

    # Explicit VMEM budget (v5e's default scoped limit is only 16 MiB), sized from
    # live activations + logits + (double-buffered) weights, with headroom.
    weight_bytes = sum(int(w.size) * w.dtype.itemsize for w in weights)
    act_bytes = batch_block * L * d * 4
    logit_bytes = batch_block * L * L * 4
    vmem_limit = int(min(64 << 20,
                         max(16 << 20,
                             4 * weight_bytes + 24 * act_bytes + 8 * logit_bytes
                             + (1 << 20))))

    out = pl.pallas_call(
        kern,
        out_shape=jax.ShapeDtypeStruct((B, d, L), jnp.float32),
        grid=(nb,),
        in_specs=in_specs,
        out_specs=pl.BlockSpec((batch_block, d, L), lambda i: (i, 0, 0)),
        compiler_params=pltpu.CompilerParams(
            dimension_semantics=("parallel",),
            vmem_limit_bytes=vmem_limit),
    )(x_ncl, mask3, *weights)
    return out


def init_params(key, d, L, num_conv, kernel_size):
    """f32 'master' parameters mirroring the PyTorch module."""
    ks = jax.random.split(key, 5)

    def nrm(k, shape, scale):
        return jax.random.normal(k, shape, jnp.float32) * scale

    # PositionEncoder formula (exactly as the PyTorch code: `pos` indexes channels)
    pos = jnp.arange(d, dtype=jnp.float32)[:, None]          # (d, 1)
    j = jnp.arange(L, dtype=jnp.float32)[None, :]            # (1, L)
    j_eff = j - jnp.mod(j, 2.0)
    pe_dl = jnp.sin(pos / jnp.power(10000.0, j_eff / d))     # (d, L)

    return {
        "pe": pe_dl.T,                                                    # (L, d)
        "ln_g": jnp.ones((num_conv, d), jnp.float32),
        "ln_b": jnp.zeros((num_conv, d), jnp.float32),
        "dw_w": nrm(ks[0], (num_conv, kernel_size, d), (2.0 / kernel_size) ** 0.5),
        "dw_b": jnp.zeros((num_conv, d), jnp.float32),
        "pw_w": nrm(ks[1], (num_conv, d, d), (2.0 / d) ** 0.5),
        "pw_b": jnp.zeros((num_conv, d), jnp.float32),
        "ln2_g": jnp.ones((1, d), jnp.float32),
        "ln2_b": jnp.zeros((1, d), jnp.float32),
        "w_mem": nrm(ks[2], (d, 2 * d), (1.0 / d) ** 0.5),
        "w_q": nrm(ks[3], (d, d), (1.0 / d) ** 0.5),
        "ln3_g": jnp.ones((1, d), jnp.float32),
        "ln3_b": jnp.zeros((1, d), jnp.float32),
        "w_fc": nrm(ks[4], (d, d), (1.0 / d) ** 0.5),
        "b_fc": jnp.zeros((1, d), jnp.float32),
    }


def pack_params(p):
    """Kernel-facing parameters: Q/K/V projection fused, big MXU weights in bf16."""
    return {
        "pe": p["pe"], "ln_g": p["ln_g"], "ln_b": p["ln_b"],
        "dw_w": p["dw_w"], "dw_b": p["dw_b"],
        "pw_w": p["pw_w"].astype(jnp.bfloat16), "pw_b": p["pw_b"],
        "ln2_g": p["ln2_g"], "ln2_b": p["ln2_b"],
        "w_qkm": jnp.concatenate([p["w_q"], p["w_mem"]], axis=1).astype(jnp.bfloat16),
        "ln3_g": p["ln3_g"], "ln3_b": p["ln3_b"],
        "w_fc": p["w_fc"].astype(jnp.bfloat16), "b_fc": p["b_fc"],
    }


def reference(x_ncl, mask, params, *, num_conv, kernel_size, num_heads):
    """Plain-JAX mirror of the PyTorch forward (eval mode), for verification."""
    B, d, L = x_ncl.shape
    x = jnp.transpose(x_ncl, (0, 2, 1)).astype(jnp.float32)
    m = mask.astype(jnp.float32).reshape(B, 1, L)

    def ln(v, g, b, eps=1e-5):
        mu = v.mean(-1, keepdims=True)
        var = ((v - mu) ** 2).mean(-1, keepdims=True)
        return (v - mu) / jnp.sqrt(var + eps) * g + b

    x = x + params["pe"]
    prev = x
    pad = kernel_size // 2
    for i in range(num_conv):
        xn = ln(x, params["ln_g"][i], params["ln_b"][i])
        xp = jnp.pad(xn, ((0, 0), (pad, pad), (0, 0)))
        y = sum(xp[:, k:k + L, :] * params["dw_w"][i][k] for k in range(kernel_size))
        y = y + params["dw_b"][i]
        y = jnp.einsum("bld,de->ble", y, params["pw_w"][i]) + params["pw_b"][i]
        x = jnp.maximum(y, 0.0) + prev
        prev = x
    x2 = ln(x, params["ln2_g"][0], params["ln2_b"][0])
    q = jnp.einsum("bld,de->ble", x2, params["w_q"])
    mem = jnp.einsum("bld,de->ble", x2, params["w_mem"])
    kk, vv = mem[..., :d], mem[..., d:]
    dh = d // num_heads
    outs = []
    for h in range(num_heads):
        qh = q[..., h * dh:(h + 1) * dh] * dh ** -0.5
        kh = kk[..., h * dh:(h + 1) * dh]
        vh = vv[..., h * dh:(h + 1) * dh]
        lg = jnp.einsum("bqd,bkd->bqk", qh, kh)
        lg = lg * m + (-1e15) * (1.0 - m)
        w = jax.nn.softmax(lg, axis=-1)
        outs.append(jnp.einsum("bqk,bkd->bqd", w, vh))
    att = jnp.concatenate(outs, axis=-1)
    x = att + prev
    prev = x
    x3 = ln(x, params["ln3_g"][0], params["ln3_b"][0])
    ff = jnp.maximum(jnp.einsum("bld,de->ble", x3, params["w_fc"]) + params["b_fc"][0], 0.0)
    x = prev + ff
    return jnp.transpose(x, (0, 2, 1))


if __name__ == "__main__":
    B, d, L = 4, 32, 16
    num_conv, kernel_size, num_heads = 4, 7, 1

    key = jax.random.PRNGKey(0)
    kx, kp = jax.random.split(key)
    x = jax.random.normal(kx, (B, d, L), jnp.float32)         # PyTorch NCL layout
    lens = jnp.array([L, L - 4, L - 7, 5])
    mask = (jnp.arange(L)[None, :] < lens[:, None]).astype(jnp.float32)   # (B, L)

    master = init_params(kp, d, L, num_conv, kernel_size)
    kparams = pack_params(master)

    out = qanet_encoder_block(x, mask, kparams, num_conv=num_conv,
                              kernel_size=kernel_size, num_heads=num_heads)
    out = jax.block_until_ready(out)

    # Reference runs in f32 but uses the same (bf16-rounded) values the kernel sees
    # for the MXU weights, so the check isolates kernel math from the intentional
    # bf16 weight-storage quantization. Remaining drift: bf16 activation casts at
    # the MXU + approx reciprocal.
    def _rt(a):
        return a.astype(jnp.bfloat16).astype(jnp.float32)

    ref_params = dict(master)
    for name in ("pw_w", "w_q", "w_mem", "w_fc"):
        ref_params[name] = _rt(master[name])
    ref = reference(x, mask, ref_params, num_conv=num_conv,
                    kernel_size=kernel_size, num_heads=num_heads)

    assert out.shape == (B, d, L), out.shape
    assert bool(jnp.all(jnp.isfinite(out)))
    max_err = float(jnp.max(jnp.abs(out - ref)))
    assert jnp.allclose(out, ref, atol=3e-2, rtol=3e-2), f"max_err={max_err}"
    print("KERNEL_OK")
</pallas_src>

<mosaic_0001>
module attributes {stable_mosaic.version = 11 : i64} {
  func.func @qanet_encoder_kernel(%arg0: i32, %arg1: memref<2x32x16xf32, #tpu.memory_space<vmem>>, %arg2: memref<2x1x16xf32, #tpu.memory_space<vmem>>, %arg3: memref<16x32xf32, #tpu.memory_space<vmem>>, %arg4: memref<4x32xf32, #tpu.memory_space<vmem>>, %arg5: memref<4x32xf32, #tpu.memory_space<vmem>>, %arg6: memref<4x7x32xf32, #tpu.memory_space<vmem>>, %arg7: memref<4x32xf32, #tpu.memory_space<vmem>>, %arg8: memref<4x32x32xbf16, #tpu.memory_space<vmem>>, %arg9: memref<4x32xf32, #tpu.memory_space<vmem>>, %arg10: memref<1x32xf32, #tpu.memory_space<vmem>>, %arg11: memref<1x32xf32, #tpu.memory_space<vmem>>, %arg12: memref<32x96xbf16, #tpu.memory_space<vmem>>, %arg13: memref<1x32xf32, #tpu.memory_space<vmem>>, %arg14: memref<1x32xf32, #tpu.memory_space<vmem>>, %arg15: memref<32x32xbf16, #tpu.memory_space<vmem>>, %arg16: memref<1x32xf32, #tpu.memory_space<vmem>>, %arg17: memref<2x32x16xf32, #tpu.memory_space<vmem>>) attributes {dimension_semantics = [#tpu.dimension_semantics<parallel>], iteration_bounds = array<i64: 2>, scalar_prefetch = 0 : i64, scratch_operands = 0 : i64, tpu.core_type = #tpu.core_type<tc>, window_params = [{transform_indices = @transform_0, window_bounds = array<i64: 2, 32, 16>}, {transform_indices = @transform_1, window_bounds = array<i64: 2, 1, 16>}, {pipeline_mode = #tpu.pipeline_mode<synchronous>, transform_indices = @transform_2, window_bounds = array<i64: 16, 32>}, {pipeline_mode = #tpu.pipeline_mode<synchronous>, transform_indices = @transform_3, window_bounds = array<i64: 4, 32>}, {pipeline_mode = #tpu.pipeline_mode<synchronous>, transform_indices = @transform_4, window_bounds = array<i64: 4, 32>}, {pipeline_mode = #tpu.pipeline_mode<synchronous>, transform_indices = @transform_5, window_bounds = array<i64: 4, 7, 32>}, {pipeline_mode = #tpu.pipeline_mode<synchronous>, transform_indices = @transform_6, window_bounds = array<i64: 4, 32>}, {pipeline_mode = #tpu.pipeline_mode<synchronous>, transform_indices = @transform_7, window_bounds = array<i64: 4, 32, 32>}, {pipeline_mode = #tpu.pipeline_mode<synchronous>, transform_indices = @transform_8, window_bounds = array<i64: 4, 32>}, {pipeline_mode = #tpu.pipeline_mode<synchronous>, transform_indices = @transform_9, window_bounds = array<i64: 1, 32>}, {pipeline_mode = #tpu.pipeline_mode<synchronous>, transform_indices = @transform_10, window_bounds = array<i64: 1, 32>}, {pipeline_mode = #tpu.pipeline_mode<synchronous>, transform_indices = @transform_11, window_bounds = array<i64: 32, 96>}, {pipeline_mode = #tpu.pipeline_mode<synchronous>, transform_indices = @transform_12, window_bounds = array<i64: 1, 32>}, {pipeline_mode = #tpu.pipeline_mode<synchronous>, transform_indices = @transform_13, window_bounds = array<i64: 1, 32>}, {pipeline_mode = #tpu.pipeline_mode<synchronous>, transform_indices = @transform_14, window_bounds = array<i64: 32, 32>}, {pipeline_mode = #tpu.pipeline_mode<synchronous>, transform_indices = @transform_15, window_bounds = array<i64: 1, 32>}, {transform_indices = @transform_16, window_bounds = array<i64: 2, 32, 16>}]} {
    %c0 = arith.constant 0 : index
    %c0_0 = arith.constant 0 : index
    %0 = vector.load %arg3[%c0, %c0_0] : memref<16x32xf32, #tpu.memory_space<vmem>>, vector<16x32xf32>
    %c0_1 = arith.constant 0 : index
    %c0_2 = arith.constant 0 : index
    %c0_3 = arith.constant 0 : index
    %1 = vector.load %arg1[%c0_1, %c0_2, %c0_3] : memref<2x32x16xf32, #tpu.memory_space<vmem>>, vector<1x32x16xf32>
    %2 = vector.shape_cast %1 : vector<1x32x16xf32> to vector<32x16xf32>
    %3 = tpu.transpose %2, [1, 0] : vector<32x16xf32> -> vector<16x32xf32>
    %4 = arith.addf %3, %0 : vector<16x32xf32>
    %c1 = arith.constant 1 : index
    %c0_4 = arith.constant 0 : index
    %c0_5 = arith.constant 0 : index
    %5 = vector.load %arg1[%c1, %c0_4, %c0_5] : memref<2x32x16xf32, #tpu.memory_space<vmem>>, vector<1x32x16xf32>
    %6 = vector.shape_cast %5 : vector<1x32x16xf32> to vector<32x16xf32>
    %7 = tpu.transpose %6, [1, 0] : vector<32x16xf32> -> vector<16x32xf32>
    %8 = arith.addf %7, %0 : vector<16x32xf32>
    %9 = tpu.concatenate %4, %8 in 0 : vector<16x32xf32>, vector<16x32xf32> -> vector<32x32xf32>
    %c0_6 = arith.constant 0 : index
    %c0_7 = arith.constant 0 : index
    %c0_8 = arith.constant 0 : index
    %10 = vector.load %arg2[%c0_6, %c0_7, %c0_8] : memref<2x1x16xf32, #tpu.memory_space<vmem>>, vector<2x1x16xf32>
    %cst = arith.constant 0.000000e+00 : f32
    %11 = vector.broadcast %cst : f32 to vector<2x1x16xf32>
    %12 = arith.cmpf ogt, %10, %11 : vector<2x1x16xf32>
    %13 = tpu.iota {dimensions = array<i32: 1>} : vector<2x16x1xi32>
    %14 = vector.shape_cast %13 : vector<2x16x1xi32> to vector<32x1xi32>
    %c0_9 = arith.constant 0 : index
    %c0_10 = arith.constant 0 : index
    %15 = vector.load %arg4[%c0_9, %c0_10] : memref<4x32xf32, #tpu.memory_space<vmem>>, vector<4x32xf32>
    %c0_11 = arith.constant 0 : index
    %c0_12 = arith.constant 0 : index
    %16 = vector.load %arg5[%c0_11, %c0_12] : memref<4x32xf32, #tpu.memory_space<vmem>>, vector<4x32xf32>
    %c0_13 = arith.constant 0 : index
    %c0_14 = arith.constant 0 : index
    %c0_15 = arith.constant 0 : index
    %17 = vector.load %arg6[%c0_13, %c0_14, %c0_15] : memref<4x7x32xf32, #tpu.memory_space<vmem>>, vector<4x7x32xf32>
    %c0_16 = arith.constant 0 : index
    %c0_17 = arith.constant 0 : index
    %18 = vector.load %arg7[%c0_16, %c0_17] : memref<4x32xf32, #tpu.memory_space<vmem>>, vector<4x32xf32>
    %c0_18 = arith.constant 0 : index
    %c0_19 = arith.constant 0 : index
    %c0_20 = arith.constant 0 : index
    %19 = vector.load %arg8[%c0_18, %c0_19, %c0_20] : memref<4x32x32xbf16, #tpu.memory_space<vmem>>, vector<4x32x32xbf16>
    %c0_21 = arith.constant 0 : index
    %c0_22 = arith.constant 0 : index
    %20 = vector.load %arg9[%c0_21, %c0_22] : memref<4x32xf32, #tpu.memory_space<vmem>>, vector<4x32xf32>
    %21 = vector.extract_strided_slice %15 {offsets = [0, 0], sizes = [1, 32], strides = [1, 1]} : vector<4x32xf32> to vector<1x32xf32>
    %22 = vector.shape_cast %21 : vector<1x32xf32> to vector<32xf32>
    %23 = vector.extract_strided_slice %16 {offsets = [0, 0], sizes = [1, 32], strides = [1, 1]} : vector<4x32xf32> to vector<1x32xf32>
    %24 = vector.shape_cast %23 : vector<1x32xf32> to vector<32xf32>
    %cst_23 = arith.constant dense<0.000000e+00> : vector<32xf32>
    %25 = vector.multi_reduction <add>, %9, %cst_23 [1] : vector<32x32xf32> to vector<32xf32>
    %26 = vector.shape_cast %25 : vector<32xf32> to vector<32x1xf32>
    %cst_24 = arith.constant 3.200000e+01 : f32
    %27 = vector.broadcast %cst_24 : f32 to vector<32x1xf32>
    %28 = arith.divf %26, %27 : vector<32x1xf32>
    %29 = vector.broadcast %28 : vector<32x1xf32> to vector<32x32xf32>
    %30 = arith.subf %9, %29 : vector<32x32xf32>
    %31 = arith.mulf %30, %30 : vector<32x32xf32>
    %cst_25 = arith.constant dense<0.000000e+00> : vector<32xf32>
    %32 = vector.multi_reduction <add>, %31, %cst_25 [1] : vector<32x32xf32> to vector<32xf32>
    %33 = vector.shape_cast %32 : vector<32xf32> to vector<32x1xf32>
    %cst_26 = arith.constant 3.200000e+01 : f32
    %34 = vector.broadcast %cst_26 : f32 to vector<32x1xf32>
    %35 = arith.divf %33, %34 : vector<32x1xf32>
    %36 = vector.broadcast %28 : vector<32x1xf32> to vector<32x32xf32>
    %37 = arith.subf %9, %36 : vector<32x32xf32>
    %cst_27 = arith.constant 9.99999974E-6 : f32
    %38 = vector.broadcast %cst_27 : f32 to vector<32x1xf32>
    %39 = arith.addf %35, %38 : vector<32x1xf32>
    %40 = math.rsqrt %39 : vector<32x1xf32>
    %41 = vector.broadcast %40 : vector<32x1xf32> to vector<32x32xf32>
    %42 = arith.mulf %37, %41 : vector<32x32xf32>
    %43 = vector.shape_cast %22 : vector<32xf32> to vector<1x32xf32>
    %44 = vector.broadcast %43 : vector<1x32xf32> to vector<32x32xf32>
    %45 = arith.mulf %42, %44 : vector<32x32xf32>
    %46 = vector.shape_cast %24 : vector<32xf32> to vector<1x32xf32>
    %47 = vector.broadcast %46 : vector<1x32xf32> to vector<32x32xf32>
    %48 = arith.addf %45, %47 : vector<32x32xf32>
    %49 = vector.extract_strided_slice %17 {offsets = [0, 3, 0], sizes = [1, 1, 32], strides = [1, 1, 1]} : vector<4x7x32xf32> to vector<1x1x32xf32>
    %50 = vector.shape_cast %49 : vector<1x1x32xf32> to vector<32xf32>
    %51 = vector.shape_cast %50 : vector<32xf32> to vector<1x32xf32>
    %52 = vector.broadcast %51 : vector<1x32xf32> to vector<32x32xf32>
    %53 = arith.mulf %48, %52 : vector<32x32xf32>
    %c3_i32 = arith.constant 3 : i32
    %54 = tpu.dynamic_rotate %48 by %c3_i32 dim 0 : vector<32x32xf32>, i32 -> vector<32x32xf32>
    %c3_i32_28 = arith.constant 3 : i32
    %55 = vector.broadcast %c3_i32_28 : i32 to vector<32x1xi32>
    %56 = arith.cmpi sge, %14, %55 : vector<32x1xi32>
    %c19_i32 = arith.constant 19 : i32
    %57 = vector.broadcast %c19_i32 : i32 to vector<32x1xi32>
    %58 = arith.cmpi slt, %14, %57 : vector<32x1xi32>
    %59 = arith.andi %56, %58 : vector<32x1xi1>
    %cst_29 = arith.constant 0.000000e+00 : f32
    %60 = vector.shape_cast %59 : vector<32x1xi1> to vector<32x1xi1>
    %61 = vector.broadcast %60 : vector<32x1xi1> to vector<32x32xi1>
    %62 = vector.broadcast %cst_29 : f32 to vector<32x32xf32>
    %63 = arith.select %61, %54, %62 : vector<32x32xi1>, vector<32x32xf32>
    %64 = vector.extract_strided_slice %17 {offsets = [0, 0, 0], sizes = [1, 1, 32], strides = [1, 1, 1]} : vector<4x7x32xf32> to vector<1x1x32xf32>
    %65 = vector.shape_cast %64 : vector<1x1x32xf32> to vector<32xf32>
    %66 = vector.shape_cast %65 : vector<32xf32> to vector<1x32xf32>
    %67 = vector.broadcast %66 : vector<1x32xf32> to vector<32x32xf32>
    %68 = arith.mulf %63, %67 : vector<32x32xf32>
    %69 = arith.addf %53, %68 : vector<32x32xf32>
    %c2_i32 = arith.constant 2 : i32
    %70 = tpu.dynamic_rotate %48 by %c2_i32 dim 0 : vector<32x32xf32>, i32 -> vector<32x32xf32>
    %c2_i32_30 = arith.constant 2 : i32
    %71 = vector.broadcast %c2_i32_30 : i32 to vector<32x1xi32>
    %72 = arith.cmpi sge, %14, %71 : vector<32x1xi32>
    %c18_i32 = arith.constant 18 : i32
    %73 = vector.broadcast %c18_i32 : i32 to vector<32x1xi32>
    %74 = arith.cmpi slt, %14, %73 : vector<32x1xi32>
    %75 = arith.andi %72, %74 : vector<32x1xi1>
    %cst_31 = arith.constant 0.000000e+00 : f32
    %76 = vector.shape_cast %75 : vector<32x1xi1> to vector<32x1xi1>
    %77 = vector.broadcast %76 : vector<32x1xi1> to vector<32x32xi1>
    %78 = vector.broadcast %cst_31 : f32 to vector<32x32xf32>
    %79 = arith.select %77, %70, %78 : vector<32x32xi1>, vector<32x32xf32>
    %80 = vector.extract_strided_slice %17 {offsets = [0, 1, 0], sizes = [1, 1, 32], strides = [1, 1, 1]} : vector<4x7x32xf32> to vector<1x1x32xf32>
    %81 = vector.shape_cast %80 : vector<1x1x32xf32> to vector<32xf32>
    %82 = vector.shape_cast %81 : vector<32xf32> to vector<1x32xf32>
    %83 = vector.broadcast %82 : vector<1x32xf32> to vector<32x32xf32>
    %84 = arith.mulf %79, %83 : vector<32x32xf32>
    %85 = arith.addf %69, %84 : vector<32x32xf32>
    %c1_i32 = arith.constant 1 : i32
    %86 = tpu.dynamic_rotate %48 by %c1_i32 dim 0 : vector<32x32xf32>, i32 -> vector<32x32xf32>
    %c1_i32_32 = arith.constant 1 : i32
    %87 = vector.broadcast %c1_i32_32 : i32 to vector<32x1xi32>
    %88 = arith.cmpi sge, %14, %87 : vector<32x1xi32>
    %c17_i32 = arith.constant 17 : i32
    %89 = vector.broadcast %c17_i32 : i32 to vector<32x1xi32>
    %90 = arith.cmpi slt, %14, %89 : vector<32x1xi32>
    %91 = arith.andi %88, %90 : vector<32x1xi1>
    %cst_33 = arith.constant 0.000000e+00 : f32
    %92 = vector.shape_cast %91 : vector<32x1xi1> to vector<32x1xi1>
    %93 = vector.broadcast %92 : vector<32x1xi1> to vector<32x32xi1>
    %94 = vector.broadcast %cst_33 : f32 to vector<32x32xf32>
    %95 = arith.select %93, %86, %94 : vector<32x32xi1>, vector<32x32xf32>
    %96 = vector.extract_strided_slice %17 {offsets = [0, 2, 0], sizes = [1, 1, 32], strides = [1, 1, 1]} : vector<4x7x32xf32> to vector<1x1x32xf32>
    %97 = vector.shape_cast %96 : vector<1x1x32xf32> to vector<32xf32>
    %98 = vector.shape_cast %97 : vector<32xf32> to vector<1x32xf32>
    %99 = vector.broadcast %98 : vector<1x32xf32> to vector<32x32xf32>
    %100 = arith.mulf %95, %99 : vector<32x32xf32>
    %101 = arith.addf %85, %100 : vector<32x32xf32>
    %c31_i32 = arith.constant 31 : i32
    %102 = tpu.dynamic_rotate %48 by %c31_i32 dim 0 : vector<32x32xf32>, i32 -> vector<32x32xf32>
    %c-1_i32 = arith.constant -1 : i32
    %103 = vector.broadcast %c-1_i32 : i32 to vector<32x1xi32>
    %104 = arith.cmpi sge, %14, %103 : vector<32x1xi32>
    %c15_i32 = arith.constant 15 : i32
    %105 = vector.broadcast %c15_i32 : i32 to vector<32x1xi32>
    %106 = arith.cmpi slt, %14, %105 : vector<32x1xi32>
    %107 = arith.andi %104, %106 : vector<32x1xi1>
    %cst_34 = arith.constant 0.000000e+00 : f32
    %108 = vector.shape_cast %107 : vector<32x1xi1> to vector<32x1xi1>
    %109 = vector.broadcast %108 : vector<32x1xi1> to vector<32x32xi1>
    %110 = vector.broadcast %cst_34 : f32 to vector<32x32xf32>
    %111 = arith.select %109, %102, %110 : vector<32x32xi1>, vector<32x32xf32>
    %112 = vector.extract_strided_slice %17 {offsets = [0, 4, 0], sizes = [1, 1, 32], strides = [1, 1, 1]} : vector<4x7x32xf32> to vector<1x1x32xf32>
    %113 = vector.shape_cast %112 : vector<1x1x32xf32> to vector<32xf32>
    %114 = vector.shape_cast %113 : vector<32xf32> to vector<1x32xf32>
    %115 = vector.broadcast %114 : vector<1x32xf32> to vector<32x32xf32>
    %116 = arith.mulf %111, %115 : vector<32x32xf32>
    %117 = arith.addf %101, %116 : vector<32x32xf32>
    %c30_i32 = arith.constant 30 : i32
    %118 = tpu.dynamic_rotate %48 by %c30_i32 dim 0 : vector<32x32xf32>, i32 -> vector<32x32xf32>
    %c-2_i32 = arith.constant -2 : i32
    %119 = vector.broadcast %c-2_i32 : i32 to vector<32x1xi32>
    %120 = arith.cmpi sge, %14, %119 : vector<32x1xi32>
    %c14_i32 = arith.constant 14 : i32
    %121 = vector.broadcast %c14_i32 : i32 to vector<32x1xi32>
    %122 = arith.cmpi slt, %14, %121 : vector<32x1xi32>
    %123 = arith.andi %120, %122 : vector<32x1xi1>
    %cst_35 = arith.constant 0.000000e+00 : f32
    %124 = vector.shape_cast %123 : vector<32x1xi1> to vector<32x1xi1>
    %125 = vector.broadcast %124 : vector<32x1xi1> to vector<32x32xi1>
    %126 = vector.broadcast %cst_35 : f32 to vector<32x32xf32>
    %127 = arith.select %125, %118, %126 : vector<32x32xi1>, vector<32x32xf32>
    %128 = vector.extract_strided_slice %17 {offsets = [0, 5, 0], sizes = [1, 1, 32], strides = [1, 1, 1]} : vector<4x7x32xf32> to vector<1x1x32xf32>
    %129 = vector.shape_cast %128 : vector<1x1x32xf32> to vector<32xf32>
    %130 = vector.shape_cast %129 : vector<32xf32> to vector<1x32xf32>
    %131 = vector.broadcast %130 : vector<1x32xf32> to vector<32x32xf32>
    %132 = arith.mulf %127, %131 : vector<32x32xf32>
    %133 = arith.addf %117, %132 : vector<32x32xf32>
    %c29_i32 = arith.constant 29 : i32
    %134 = tpu.dynamic_rotate %48 by %c29_i32 dim 0 : vector<32x32xf32>, i32 -> vector<32x32xf32>
    %c-3_i32 = arith.constant -3 : i32
    %135 = vector.broadcast %c-3_i32 : i32 to vector<32x1xi32>
    %136 = arith.cmpi sge, %14, %135 : vector<32x1xi32>
    %c13_i32 = arith.constant 13 : i32
    %137 = vector.broadcast %c13_i32 : i32 to vector<32x1xi32>
    %138 = arith.cmpi slt, %14, %137 : vector<32x1xi32>
    %139 = arith.andi %136, %138 : vector<32x1xi1>
    %cst_36 = arith.constant 0.000000e+00 : f32
    %140 = vector.shape_cast %139 : vector<32x1xi1> to vector<32x1xi1>
    %141 = vector.broadcast %140 : vector<32x1xi1> to vector<32x32xi1>
    %142 = vector.broadcast %cst_36 : f32 to vector<32x32xf32>
    %143 = arith.select %141, %134, %142 : vector<32x32xi1>, vector<32x32xf32>
    %144 = vector.extract_strided_slice %17 {offsets = [0, 6, 0], sizes = [1, 1, 32], strides = [1, 1, 1]} : vector<4x7x32xf32> to vector<1x1x32xf32>
    %145 = vector.shape_cast %144 : vector<1x1x32xf32> to vector<32xf32>
    %146 = vector.shape_cast %145 : vector<32xf32> to vector<1x32xf32>
    %147 = vector.broadcast %146 : vector<1x32xf32> to vector<32x32xf32>
    %148 = arith.mulf %143, %147 : vector<32x32xf32>
    %149 = arith.addf %133, %148 : vector<32x32xf32>
    %150 = vector.extract_strided_slice %18 {offsets = [0, 0], sizes = [1, 32], strides = [1, 1]} : vector<4x32xf32> to vector<1x32xf32>
    %151 = vector.shape_cast %150 : vector<1x32xf32> to vector<32xf32>
    %152 = vector.shape_cast %151 : vector<32xf32> to vector<1x32xf32>
    %153 = vector.broadcast %152 : vector<1x32xf32> to vector<32x32xf32>
    %154 = arith.addf %149, %153 : vector<32x32xf32>
    %155 = arith.truncf %154 : vector<32x32xf32> to vector<32x32xbf16>
    %156 = vector.extract_strided_slice %19 {offsets = [0, 0, 0], sizes = [1, 32, 32], strides = [1, 1, 1]} : vector<4x32x32xbf16> to vector<1x32x32xbf16>
    %157 = vector.shape_cast %156 : vector<1x32x32xbf16> to vector<32x32xbf16>
    %cst_37 = arith.constant dense<0.000000e+00> : vector<32x32xf32>
    %158 = tpu.matmul %155, %157, %cst_37 {dimension_numbers = #tpu.dot_dimension_numbers<[1], [0], [0], [1], [0, 0, 1, 1], [], []>} : vector<32x32xbf16>, vector<32x32xbf16>, vector<32x32xf32> -> vector<32x32xf32>
    %159 = vector.extract_strided_slice %20 {offsets = [0, 0], sizes = [1, 32], strides = [1, 1]} : vector<4x32xf32> to vector<1x32xf32>
    %160 = vector.shape_cast %159 : vector<1x32xf32> to vector<32xf32>
    %161 = vector.shape_cast %160 : vector<32xf32> to vector<1x32xf32>
    %162 = vector.broadcast %161 : vector<1x32xf32> to vector<32x32xf32>
    %163 = arith.addf %158, %162 : vector<32x32xf32>
    %cst_38 = arith.constant 0.000000e+00 : f32
    %164 = vector.broadcast %cst_38 : f32 to vector<32x32xf32>
    %165 = arith.maximumf %163, %164 : vector<32x32xf32>
    %166 = arith.addf %165, %9 : vector<32x32xf32>
    %167 = vector.extract_strided_slice %15 {offsets = [1, 0], sizes = [1, 32], strides = [1, 1]} : vector<4x32xf32> to vector<1x32xf32>
    %168 = vector.shape_cast %167 : vector<1x32xf32> to vector<32xf32>
    %169 = vector.extract_strided_slice %16 {offsets = [1, 0], sizes = [1, 32], strides = [1, 1]} : vector<4x32xf32> to vector<1x32xf32>
    %170 = vector.shape_cast %169 : vector<1x32xf32> to vector<32xf32>
    %cst_39 = arith.constant dense<0.000000e+00> : vector<32xf32>
    %171 = vector.multi_reduction <add>, %166, %cst_39 [1] : vector<32x32xf32> to vector<32xf32>
    %172 = vector.shape_cast %171 : vector<32xf32> to vector<32x1xf32>
    %cst_40 = arith.constant 3.200000e+01 : f32
    %173 = vector.broadcast %cst_40 : f32 to vector<32x1xf32>
    %174 = arith.divf %172, %173 : vector<32x1xf32>
    %175 = vector.broadcast %174 : vector<32x1xf32> to vector<32x32xf32>
    %176 = arith.subf %166, %175 : vector<32x32xf32>
    %177 = arith.mulf %176, %176 : vector<32x32xf32>
    %cst_41 = arith.constant dense<0.000000e+00> : vector<32xf32>
    %178 = vector.multi_reduction <add>, %177, %cst_41 [1] : vector<32x32xf32> to vector<32xf32>
    %179 = vector.shape_cast %178 : vector<32xf32> to vector<32x1xf32>
    %cst_42 = arith.constant 3.200000e+01 : f32
    %180 = vector.broadcast %cst_42 : f32 to vector<32x1xf32>
    %181 = arith.divf %179, %180 : vector<32x1xf32>
    %182 = vector.broadcast %174 : vector<32x1xf32> to vector<32x32xf32>
    %183 = arith.subf %166, %182 : vector<32x32xf32>
    %cst_43 = arith.constant 9.99999974E-6 : f32
    %184 = vector.broadcast %cst_43 : f32 to vector<32x1xf32>
    %185 = arith.addf %181, %184 : vector<32x1xf32>
    %186 = math.rsqrt %185 : vector<32x1xf32>
    %187 = vector.broadcast %186 : vector<32x1xf32> to vector<32x32xf32>
    %188 = arith.mulf %183, %187 : vector<32x32xf32>
    %189 = vector.shape_cast %168 : vector<32xf32> to vector<1x32xf32>
    %190 = vector.broadcast %189 : vector<1x32xf32> to vector<32x32xf32>
    %191 = arith.mulf %188, %190 : vector<32x32xf32>
    %192 = vector.shape_cast %170 : vector<32xf32> to vector<1x32xf32>
    %193 = vector.broadcast %192 : vector<1x32xf32> to vector<32x32xf32>
    %194 = arith.addf %191, %193 : vector<32x32xf32>
    %195 = vector.extract_strided_slice %17 {offsets = [1, 3, 0], sizes = [1, 1, 32], strides = [1, 1, 1]} : vector<4x7x32xf32> to vector<1x1x32xf32>
    %196 = vector.shape_cast %195 : vector<1x1x32xf32> to vector<32xf32>
    %197 = vector.shape_cast %196 : vector<32xf32> to vector<1x32xf32>
    %198 = vector.broadcast %197 : vector<1x32xf32> to vector<32x32xf32>
    %199 = arith.mulf %194, %198 : vector<32x32xf32>
    %c3_i32_44 = arith.constant 3 : i32
    %200 = tpu.dynamic_rotate %194 by %c3_i32_44 dim 0 : vector<32x32xf32>, i32 -> vector<32x32xf32>
    %c3_i32_45 = arith.constant 3 : i32
    %201 = vector.broadcast %c3_i32_45 : i32 to vector<32x1xi32>
    %202 = arith.cmpi sge, %14, %201 : vector<32x1xi32>
    %c19_i32_46 = arith.constant 19 : i32
    %203 = vector.broadcast %c19_i32_46 : i32 to vector<32x1xi32>
    %204 = arith.cmpi slt, %14, %203 : vector<32x1xi32>
    %205 = arith.andi %202, %204 : vector<32x1xi1>
    %cst_47 = arith.constant 0.000000e+00 : f32
    %206 = vector.shape_cast %205 : vector<32x1xi1> to vector<32x1xi1>
    %207 = vector.broadcast %206 : vector<32x1xi1> to vector<32x32xi1>
    %208 = vector.broadcast %cst_47 : f32 to vector<32x32xf32>
    %209 = arith.select %207, %200, %208 : vector<32x32xi1>, vector<32x32xf32>
    %210 = vector.extract_strided_slice %17 {offsets = [1, 0, 0], sizes = [1, 1, 32], strides = [1, 1, 1]} : vector<4x7x32xf32> to vector<1x1x32xf32>
    %211 = vector.shape_cast %210 : vector<1x1x32xf32> to vector<32xf32>
    %212 = vector.shape_cast %211 : vector<32xf32> to vector<1x32xf32>
    %213 = vector.broadcast %212 : vector<1x32xf32> to vector<32x32xf32>
    %214 = arith.mulf %209, %213 : vector<32x32xf32>
    %215 = arith.addf %199, %214 : vector<32x32xf32>
    %c2_i32_48 = arith.constant 2 : i32
    %216 = tpu.dynamic_rotate %194 by %c2_i32_48 dim 0 : vector<32x32xf32>, i32 -> vector<32x32xf32>
    %c2_i32_49 = arith.constant 2 : i32
    %217 = vector.broadcast %c2_i32_49 : i32 to vector<32x1xi32>
    %218 = arith.cmpi sge, %14, %217 : vector<32x1xi32>
    %c18_i32_50 = arith.constant 18 : i32
    %219 = vector.broadcast %c18_i32_50 : i32 to vector<32x1xi32>
    %220 = arith.cmpi slt, %14, %219 : vector<32x1xi32>
    %221 = arith.andi %218, %220 : vector<32x1xi1>
    %cst_51 = arith.constant 0.000000e+00 : f32
    %222 = vector.shape_cast %221 : vector<32x1xi1> to vector<32x1xi1>
    %223 = vector.broadcast %222 : vector<32x1xi1> to vector<32x32xi1>
    %224 = vector.broadcast %cst_51 : f32 to vector<32x32xf32>
    %225 = arith.select %223, %216, %224 : vector<32x32xi1>, vector<32x32xf32>
    %226 = vector.extract_strided_slice %17 {offsets = [1, 1, 0], sizes = [1, 1, 32], strides = [1, 1, 1]} : vector<4x7x32xf32> to vector<1x1x32xf32>
    %227 = vector.shape_cast %226 : vector<1x1x32xf32> to vector<32xf32>
    %228 = vector.shape_cast %227 : vector<32xf32> to vector<1x32xf32>
    %229 = vector.broadcast %228 : vector<1x32xf32> to vector<32x32xf32>
    %230 = arith.mulf %225, %229 : vector<32x32xf32>
    %231 = arith.addf %215, %230 : vector<32x32xf32>
    %c1_i32_52 = arith.constant 1 : i32
    %232 = tpu.dynamic_rotate %194 by %c1_i32_52 dim 0 : vector<32x32xf32>, i32 -> vector<32x32xf32>
    %c1_i32_53 = arith.constant 1 : i32
    %233 = vector.broadcast %c1_i32_53 : i32 to vector<32x1xi32>
    %234 = arith.cmpi sge, %14, %233 : vector<32x1xi32>
    %c17_i32_54 = arith.constant 17 : i32
    %235 = vector.broadcast %c17_i32_54 : i32 to vector<32x1xi32>
    %236 = arith.cmpi slt, %14, %235 : vector<32x1xi32>
    %237 = arith.andi %234, %236 : vector<32x1xi1>
    %cst_55 = arith.constant 0.000000e+00 : f32
    %238 = vector.shape_cast %237 : vector<32x1xi1> to vector<32x1xi1>
    %239 = vector.broadcast %238 : vector<32x1xi1> to vector<32x32xi1>
    %240 = vector.broadcast %cst_55 : f32 to vector<32x32xf32>
    %241 = arith.select %239, %232, %240 : vector<32x32xi1>, vector<32x32xf32>
    %242 = vector.extract_strided_slice %17 {offsets = [1, 2, 0], sizes = [1, 1, 32], strides = [1, 1, 1]} : vector<4x7x32xf32> to vector<1x1x32xf32>
    %243 = vector.shape_cast %242 : vector<1x1x32xf32> to vector<32xf32>
    %244 = vector.shape_cast %243 : vector<32xf32> to vector<1x32xf32>
    %245 = vector.broadcast %244 : vector<1x32xf32> to vector<32x32xf32>
    %246 = arith.mulf %241, %245 : vector<32x32xf32>
    %247 = arith.addf %231, %246 : vector<32x32xf32>
    %c31_i32_56 = arith.constant 31 : i32
    %248 = tpu.dynamic_rotate %194 by %c31_i32_56 dim 0 : vector<32x32xf32>, i32 -> vector<32x32xf32>
    %c-1_i32_57 = arith.constant -1 : i32
    %249 = vector.broadcast %c-1_i32_57 : i32 to vector<32x1xi32>
    %250 = arith.cmpi sge, %14, %249 : vector<32x1xi32>
    %c15_i32_58 = arith.constant 15 : i32
    %251 = vector.broadcast %c15_i32_58 : i32 to vector<32x1xi32>
    %252 = arith.cmpi slt, %14, %251 : vector<32x1xi32>
    %253 = arith.andi %250, %252 : vector<32x1xi1>
    %cst_59 = arith.constant 0.000000e+00 : f32
    %254 = vector.shape_cast %253 : vector<32x1xi1> to vector<32x1xi1>
    %255 = vector.broadcast %254 : vector<32x1xi1> to vector<32x32xi1>
    %256 = vector.broadcast %cst_59 : f32 to vector<32x32xf32>
    %257 = arith.select %255, %248, %256 : vector<32x32xi1>, vector<32x32xf32>
    %258 = vector.extract_strided_slice %17 {offsets = [1, 4, 0], sizes = [1, 1, 32], strides = [1, 1, 1]} : vector<4x7x32xf32> to vector<1x1x32xf32>
    %259 = vector.shape_cast %258 : vector<1x1x32xf32> to vector<32xf32>
    %260 = vector.shape_cast %259 : vector<32xf32> to vector<1x32xf32>
    %261 = vector.broadcast %260 : vector<1x32xf32> to vector<32x32xf32>
    %262 = arith.mulf %257, %261 : vector<32x32xf32>
    %263 = arith.addf %247, %262 : vector<32x32xf32>
    %c30_i32_60 = arith.constant 30 : i32
    %264 = tpu.dynamic_rotate %194 by %c30_i32_60 dim 0 : vector<32x32xf32>, i32 -> vector<32x32xf32>
    %c-2_i32_61 = arith.constant -2 : i32
    %265 = vector.broadcast %c-2_i32_61 : i32 to vector<32x1xi32>
    %266 = arith.cmpi sge, %14, %265 : vector<32x1xi32>
    %c14_i32_62 = arith.constant 14 : i32
    %267 = vector.broadcast %c14_i32_62 : i32 to vector<32x1xi32>
    %268 = arith.cmpi slt, %14, %267 : vector<32x1xi32>
    %269 = arith.andi %266, %268 : vector<32x1xi1>
    %cst_63 = arith.constant 0.000000e+00 : f32
    %270 = vector.shape_cast %269 : vector<32x1xi1> to vector<32x1xi1>
    %271 = vector.broadcast %270 : vector<32x1xi1> to vector<32x32xi1>
    %272 = vector.broadcast %cst_63 : f32 to vector<32x32xf32>
    %273 = arith.select %271, %264, %272 : vector<32x32xi1>, vector<32x32xf32>
    %274 = vector.extract_strided_slice %17 {offsets = [1, 5, 0], sizes = [1, 1, 32], strides = [1, 1, 1]} : vector<4x7x32xf32> to vector<1x1x32xf32>
    %275 = vector.shape_cast %274 : vector<1x1x32xf32> to vector<32xf32>
    %276 = vector.shape_cast %275 : vector<32xf32> to vector<1x32xf32>
    %277 = vector.broadcast %276 : vector<1x32xf32> to vector<32x32xf32>
    %278 = arith.mulf %273, %277 : vector<32x32xf32>
    %279 = arith.addf %263, %278 : vector<32x32xf32>
    %c29_i32_64 = arith.constant 29 : i32
    %280 = tpu.dynamic_rotate %194 by %c29_i32_64 dim 0 : vector<32x32xf32>, i32 -> vector<32x32xf32>
    %c-3_i32_65 = arith.constant -3 : i32
    %281 = vector.broadcast %c-3_i32_65 : i32 to vector<32x1xi32>
    %282 = arith.cmpi sge, %14, %281 : vector<32x1xi32>
    %c13_i32_66 = arith.constant 13 : i32
    %283 = vector.broadcast %c13_i32_66 : i32 to vector<32x1xi32>
    %284 = arith.cmpi slt, %14, %283 : vector<32x1xi32>
    %285 = arith.andi %282, %284 : vector<32x1xi1>
    %cst_67 = arith.constant 0.000000e+00 : f32
    %286 = vector.shape_cast %285 : vector<32x1xi1> to vector<32x1xi1>
    %287 = vector.broadcast %286 : vector<32x1xi1> to vector<32x32xi1>
    %288 = vector.broadcast %cst_67 : f32 to vector<32x32xf32>
    %289 = arith.select %287, %280, %288 : vector<32x32xi1>, vector<32x32xf32>
    %290 = vector.extract_strided_slice %17 {offsets = [1, 6, 0], sizes = [1, 1, 32], strides = [1, 1, 1]} : vector<4x7x32xf32> to vector<1x1x32xf32>
    %291 = vector.shape_cast %290 : vector<1x1x32xf32> to vector<32xf32>
    %292 = vector.shape_cast %291 : vector<32xf32> to vector<1x32xf32>
    %293 = vector.broadcast %292 : vector<1x32xf32> to vector<32x32xf32>
    %294 = arith.mulf %289, %293 : vector<32x32xf32>
    %295 = arith.addf %279, %294 : vector<32x32xf32>
    %296 = vector.extract_strided_slice %18 {offsets = [1, 0], sizes = [1, 32], strides = [1, 1]} : vector<4x32xf32> to vector<1x32xf32>
    %297 = vector.shape_cast %296 : vector<1x32xf32> to vector<32xf32>
    %298 = vector.shape_cast %297 : vector<32xf32> to vector<1x32xf32>
    %299 = vector.broadcast %298 : vector<1x32xf32> to vector<32x32xf32>
    %300 = arith.addf %295, %299 : vector<32x32xf32>
    %301 = arith.truncf %300 : vector<32x32xf32> to vector<32x32xbf16>
    %302 = vector.extract_strided_slice %19 {offsets = [1, 0, 0], sizes = [1, 32, 32], strides = [1, 1, 1]} : vector<4x32x32xbf16> to vector<1x32x32xbf16>
    %303 = vector.shape_cast %302 : vector<1x32x32xbf16> to vector<32x32xbf16>
    %cst_68 = arith.constant dense<0.000000e+00> : vector<32x32xf32>
    %304 = tpu.matmul %301, %303, %cst_68 {dimension_numbers = #tpu.dot_dimension_numbers<[1], [0], [0], [1], [0, 0, 1, 1], [], []>} : vector<32x32xbf16>, vector<32x32xbf16>, vector<32x32xf32> -> vector<32x32xf32>
    %305 = vector.extract_strided_slice %20 {offsets = [1, 0], sizes = [1, 32], strides = [1, 1]} : vector<4x32xf32> to vector<1x32xf32>
    %306 = vector.shape_cast %305 : vector<1x32xf32> to vector<32xf32>
    %307 = vector.shape_cast %306 : vector<32xf32> to vector<1x32xf32>
    %308 = vector.broadcast %307 : vector<1x32xf32> to vector<32x32xf32>
    %309 = arith.addf %304, %308 : vector<32x32xf32>
    %cst_69 = arith.constant 0.000000e+00 : f32
    %310 = vector.broadcast %cst_69 : f32 to vector<32x32xf32>
    %311 = arith.maximumf %309, %310 : vector<32x32xf32>
    %312 = arith.addf %311, %166 : vector<32x32xf32>
    %313 = vector.extract_strided_slice %15 {offsets = [2, 0], sizes = [1, 32], strides = [1, 1]} : vector<4x32xf32> to vector<1x32xf32>
    %314 = vector.shape_cast %313 : vector<1x32xf32> to vector<32xf32>
    %315 = vector.extract_strided_slice %16 {offsets = [2, 0], sizes = [1, 32], strides = [1, 1]} : vector<4x32xf32> to vector<1x32xf32>
    %316 = vector.shape_cast %315 : vector<1x32xf32> to vector<32xf32>
    %cst_70 = arith.constant dense<0.000000e+00> : vector<32xf32>
    %317 = vector.multi_reduction <add>, %312, %cst_70 [1] : vector<32x32xf32> to vector<32xf32>
    %318 = vector.shape_cast %317 : vector<32xf32> to vector<32x1xf32>
    %cst_71 = arith.constant 3.200000e+01 : f32
    %319 = vector.broadcast %cst_71 : f32 to vector<32x1xf32>
    %320 = arith.divf %318, %319 : vector<32x1xf32>
    %321 = vector.broadcast %320 : vector<32x1xf32> to vector<32x32xf32>
    %322 = arith.subf %312, %321 : vector<32x32xf32>
    %323 = arith.mulf %322, %322 : vector<32x32xf32>
    %cst_72 = arith.constant dense<0.000000e+00> : vector<32xf32>
    %324 = vector.multi_reduction <add>, %323, %cst_72 [1] : vector<32x32xf32> to vector<32xf32>
    %325 = vector.shape_cast %324 : vector<32xf32> to vector<32x1xf32>
    %cst_73 = arith.constant 3.200000e+01 : f32
    %326 = vector.broadcast %cst_73 : f32 to vector<32x1xf32>
    %327 = arith.divf %325, %326 : vector<32x1xf32>
    %328 = vector.broadcast %320 : vector<32x1xf32> to vector<32x32xf32>
    %329 = arith.subf %312, %328 : vector<32x32xf32>
    %cst_74 = arith.constant 9.99999974E-6 : f32
    %330 = vector.broadcast %cst_74 : f32 to vector<32x1xf32>
    %331 = arith.addf %327, %330 : vector<32x1xf32>
    %332 = math.rsqrt %331 : vector<32x1xf32>
    %333 = vector.broadcast %332 : vector<32x1xf32> to vector<32x32xf32>
    %334 = arith.mulf %329, %333 : vector<32x32xf32>
    %335 = vector.shape_cast %314 : vector<32xf32> to vector<1x32xf32>
    %336 = vector.broadcast %335 : vector<1x32xf32> to vector<32x32xf32>
    %337 = arith.mulf %334, %336 : vector<32x32xf32>
    %338 = vector.shape_cast %316 : vector<32xf32> to vector<1x32xf32>
    %339 = vector.broadcast %338 : vector<1x32xf32> to vector<32x32xf32>
    %340 = arith.addf %337, %339 : vector<32x32xf32>
    %341 = vector.extract_strided_slice %17 {offsets = [2, 3, 0], sizes = [1, 1, 32], strides = [1, 1, 1]} : vector<4x7x32xf32> to vector<1x1x32xf32>
    %342 = vector.shape_cast %341 : vector<1x1x32xf32> to vector<32xf32>
    %343 = vector.shape_cast %342 : vector<32xf32> to vector<1x32xf32>
    %344 = vector.broadcast %343 : vector<1x32xf32> to vector<32x32xf32>
    %345 = arith.mulf %340, %344 : vector<32x32xf32>
    %c3_i32_75 = arith.constant 3 : i32
    %346 = tpu.dynamic_rotate %340 by %c3_i32_75 dim 0 : vector<32x32xf32>, i32 -> vector<32x32xf32>
    %c3_i32_76 = arith.constant 3 : i32
    %347 = vector.broadcast %c3_i32_76 : i32 to vector<32x1xi32>
    %348 = arith.cmpi sge, %14, %347 : vector<32x1xi32>
    %c19_i32_77 = arith.constant 19 : i32
    %349 = vector.broadcast %c19_i32_77 : i32 to vector<32x1xi32>
    %350 = arith.cmpi slt, %14, %349 : vector<32x1xi32>
    %351 = arith.andi %348, %350 : vector<32x1xi1>
    %cst_78 = arith.constant 0.000000e+00 : f32
    %352 = vector.shape_cast %351 : vector<32x1xi1> to vector<32x1xi1>
    %353 = vector.broadcast %352 : vector<32x1xi1> to vector<32x32xi1>
    %354 = vector.broadcast %cst_78 : f32 to vector<32x32xf32>
    %355 = arith.select %353, %346, %354 : vector<32x32xi1>, vector<32x32xf32>
    %356 = vector.extract_strided_slice %17 {offsets = [2, 0, 0], sizes = [1, 1, 32], strides = [1, 1, 1]} : vector<4x7x32xf32> to vector<1x1x32xf32>
    %357 = vector.shape_cast %356 : vector<1x1x32xf32> to vector<32xf32>
    %358 = vector.shape_cast %357 : vector<32xf32> to vector<1x32xf32>
    %359 = vector.broadcast %358 : vector<1x32xf32> to vector<32x32xf32>
    %360 = arith.mulf %355, %359 : vector<32x32xf32>
    %361 = arith.addf %345, %360 : vector<32x32xf32>
    %c2_i32_79 = arith.constant 2 : i32
    %362 = tpu.dynamic_rotate %340 by %c2_i32_79 dim 0 : vector<32x32xf32>, i32 -> vector<32x32xf32>
    %c2_i32_80 = arith.constant 2 : i32
    %363 = vector.broadcast %c2_i32_80 : i32 to vector<32x1xi32>
    %364 = arith.cmpi sge, %14, %363 : vector<32x1xi32>
    %c18_i32_81 = arith.constant 18 : i32
    %365 = vector.broadcast %c18_i32_81 : i32 to vector<32x1xi32>
    %366 = arith.cmpi slt, %14, %365 : vector<32x1xi32>
    %367 = arith.andi %364, %366 : vector<32x1xi1>
    %cst_82 = arith.constant 0.000000e+00 : f32
    %368 = vector.shape_cast %367 : vector<32x1xi1> to vector<32x1xi1>
    %369 = vector.broadcast %368 : vector<32x1xi1> to vector<32x32xi1>
    %370 = vector.broadcast %cst_82 : f32 to vector<32x32xf32>
    %371 = arith.select %369, %362, %370 : vector<32x32xi1>, vector<32x32xf32>
    %372 = vector.extract_strided_slice %17 {offsets = [2, 1, 0], sizes = [1, 1, 32], strides = [1, 1, 1]} : vector<4x7x32xf32> to vector<1x1x32xf32>
    %373 = vector.shape_cast %372 : vector<1x1x32xf32> to vector<32xf32>
    %374 = vector.shape_cast %373 : vector<32xf32> to vector<1x32xf32>
    %375 = vector.broadcast %374 : vector<1x32xf32> to vector<32x32xf32>
    %376 = arith.mulf %371, %375 : vector<32x32xf32>
    %377 = arith.addf %361, %376 : vector<32x32xf32>
    %c1_i32_83 = arith.constant 1 : i32
    %378 = tpu.dynamic_rotate %340 by %c1_i32_83 dim 0 : vector<32x32xf32>, i32 -> vector<32x32xf32>
    %c1_i32_84 = arith.constant 1 : i32
    %379 = vector.broadcast %c1_i32_84 : i32 to vector<32x1xi32>
    %380 = arith.cmpi sge, %14, %379 : vector<32x1xi32>
    %c17_i32_85 = arith.constant 17 : i32
    %381 = vector.broadcast %c17_i32_85 : i32 to vector<32x1xi32>
    %382 = arith.cmpi slt, %14, %381 : vector<32x1xi32>
    %383 = arith.andi %380, %382 : vector<32x1xi1>
    %cst_86 = arith.constant 0.000000e+00 : f32
    %384 = vector.shape_cast %383 : vector<32x1xi1> to vector<32x1xi1>
    %385 = vector.broadcast %384 : vector<32x1xi1> to vector<32x32xi1>
    %386 = vector.broadcast %cst_86 : f32 to vector<32x32xf32>
    %387 = arith.select %385, %378, %386 : vector<32x32xi1>, vector<32x32xf32>
    %388 = vector.extract_strided_slice %17 {offsets = [2, 2, 0], sizes = [1, 1, 32], strides = [1, 1, 1]} : vector<4x7x32xf32> to vector<1x1x32xf32>
    %389 = vector.shape_cast %388 : vector<1x1x32xf32> to vector<32xf32>
    %390 = vector.shape_cast %389 : vector<32xf32> to vector<1x32xf32>
    %391 = vector.broadcast %390 : vector<1x32xf32> to vector<32x32xf32>
    %392 = arith.mulf %387, %391 : vector<32x32xf32>
    %393 = arith.addf %377, %392 : vector<32x32xf32>
    %c31_i32_87 = arith.constant 31 : i32
    %394 = tpu.dynamic_rotate %340 by %c31_i32_87 dim 0 : vector<32x32xf32>, i32 -> vector<32x32xf32>
    %c-1_i32_88 = arith.constant -1 : i32
    %395 = vector.broadcast %c-1_i32_88 : i32 to vector<32x1xi32>
    %396 = arith.cmpi sge, %14, %395 : vector<32x1xi32>
    %c15_i32_89 = arith.constant 15 : i32
    %397 = vector.broadcast %c15_i32_89 : i32 to vector<32x1xi32>
    %398 = arith.cmpi slt, %14, %397 : vector<32x1xi32>
    %399 = arith.andi %396, %398 : vector<32x1xi1>
    %cst_90 = arith.constant 0.000000e+00 : f32
    %400 = vector.shape_cast %399 : vector<32x1xi1> to vector<32x1xi1>
    %401 = vector.broadcast %400 : vector<32x1xi1> to vector<32x32xi1>
    %402 = vector.broadcast %cst_90 : f32 to vector<32x32xf32>
    %403 = arith.select %401, %394, %402 : vector<32x32xi1>, vector<32x32xf32>
    %404 = vector.extract_strided_slice %17 {offsets = [2, 4, 0], sizes = [1, 1, 32], strides = [1, 1, 1]} : vector<4x7x32xf32> to vector<1x1x32xf32>
    %405 = vector.shape_cast %404 : vector<1x1x32xf32> to vector<32xf32>
    %406 = vector.shape_cast %405 : vector<32xf32> to vector<1x32xf32>
    %407 = vector.broadcast %406 : vector<1x32xf32> to vector<32x32xf32>
    %408 = arith.mulf %403, %407 : vector<32x32xf32>
    %409 = arith.addf %393, %408 : vector<32x32xf32>
    %c30_i32_91 = arith.constant 30 : i32
    %410 = tpu.dynamic_rotate %340 by %c30_i32_91 dim 0 : vector<32x32xf32>, i32 -> vector<32x32xf32>
    %c-2_i32_92 = arith.constant -2 : i32
    %411 = vector.broadcast %c-2_i32_92 : i32 to vector<32x1xi32>
    %412 = arith.cmpi sge, %14, %411 : vector<32x1xi32>
    %c14_i32_93 = arith.constant 14 : i32
    %413 = vector.broadcast %c14_i32_93 : i32 to vector<32x1xi32>
    %414 = arith.cmpi slt, %14, %413 : vector<32x1xi32>
    %415 = arith.andi %412, %414 : vector<32x1xi1>
    %cst_94 = arith.constant 0.000000e+00 : f32
    %416 = vector.shape_cast %415 : vector<32x1xi1> to vector<32x1xi1>
    %417 = vector.broadcast %416 : vector<32x1xi1> to vector<32x32xi1>
    %418 = vector.broadcast %cst_94 : f32 to vector<32x32xf32>
    %419 = arith.select %417, %410, %418 : vector<32x32xi1>, vector<32x32xf32>
    %420 = vector.extract_strided_slice %17 {offsets = [2, 5, 0], sizes = [1, 1, 32], strides = [1, 1, 1]} : vector<4x7x32xf32> to vector<1x1x32xf32>
    %421 = vector.shape_cast %420 : vector<1x1x32xf32> to vector<32xf32>
    %422 = vector.shape_cast %421 : vector<32xf32> to vector<1x32xf32>
    %423 = vector.broadcast %422 : vector<1x32xf32> to vector<32x32xf32>
    %424 = arith.mulf %419, %423 : vector<32x32xf32>
    %425 = arith.addf %409, %424 : vector<32x32xf32>
    %c29_i32_95 = arith.constant 29 : i32
    %426 = tpu.dynamic_rotate %340 by %c29_i32_95 dim 0 : vector<32x32xf32>, i32 -> vector<32x32xf32>
    %c-3_i32_96 = arith.constant -3 : i32
    %427 = vector.broadcast %c-3_i32_96 : i32 to vector<32x1xi32>
    %428 = arith.cmpi sge, %14, %427 : vector<32x1xi32>
    %c13_i32_97 = arith.constant 13 : i32
    %429 = vector.broadcast %c13_i32_97 : i32 to vector<32x1xi32>
    %430 = arith.cmpi slt, %14, %429 : vector<32x1xi32>
    %431 = arith.andi %428, %430 : vector<32x1xi1>
    %cst_98 = arith.constant 0.000000e+00 : f32
    %432 = vector.shape_cast %431 : vector<32x1xi1> to vector<32x1xi1>
    %433 = vector.broadcast %432 : vector<32x1xi1> to vector<32x32xi1>
    %434 = vector.broadcast %cst_98 : f32 to vector<32x32xf32>
    %435 = arith.select %433, %426, %434 : vector<32x32xi1>, vector<32x32xf32>
    %436 = vector.extract_strided_slice %17 {offsets = [2, 6, 0], sizes = [1, 1, 32], strides = [1, 1, 1]} : vector<4x7x32xf32> to vector<1x1x32xf32>
    %437 = vector.shape_cast %436 : vector<1x1x32xf32> to vector<32xf32>
    %438 = vector.shape_cast %437 : vector<32xf32> to vector<1x32xf32>
    %439 = vector.broadcast %438 : vector<1x32xf32> to vector<32x32xf32>
    %440 = arith.mulf %435, %439 : vector<32x32xf32>
    %441 = arith.addf %425, %440 : vector<32x32xf32>
    %442 = vector.extract_strided_slice %18 {offsets = [2, 0], sizes = [1, 32], strides = [1, 1]} : vector<4x32xf32> to vector<1x32xf32>
    %443 = vector.shape_cast %442 : vector<1x32xf32> to vector<32xf32>
    %444 = vector.shape_cast %443 : vector<32xf32> to vector<1x32xf32>
    %445 = vector.broadcast %444 : vector<1x32xf32> to vector<32x32xf32>
    %446 = arith.addf %441, %445 : vector<32x32xf32>
    %447 = arith.truncf %446 : vector<32x32xf32> to vector<32x32xbf16>
    %448 = vector.extract_strided_slice %19 {offsets = [2, 0, 0], sizes = [1, 32, 32], strides = [1, 1, 1]} : vector<4x32x32xbf16> to vector<1x32x32xbf16>
    %449 = vector.shape_cast %448 : vector<1x32x32xbf16> to vector<32x32xbf16>
    %cst_99 = arith.constant dense<0.000000e+00> : vector<32x32xf32>
    %450 = tpu.matmul %447, %449, %cst_99 {dimension_numbers = #tpu.dot_dimension_numbers<[1], [0], [0], [1], [0, 0, 1, 1], [], []>} : vector<32x32xbf16>, vector<32x32xbf16>, vector<32x32xf32> -> vector<32x32xf32>
    %451 = vector.extract_strided_slice %20 {offsets = [2, 0], sizes = [1, 32], strides = [1, 1]} : vector<4x32xf32> to vector<1x32xf32>
    %452 = vector.shape_cast %451 : vector<1x32xf32> to vector<32xf32>
    %453 = vector.shape_cast %452 : vector<32xf32> to vector<1x32xf32>
    %454 = vector.broadcast %453 : vector<1x32xf32> to vector<32x32xf32>
    %455 = arith.addf %450, %454 : vector<32x32xf32>
    %cst_100 = arith.constant 0.000000e+00 : f32
    %456 = vector.broadcast %cst_100 : f32 to vector<32x32xf32>
    %457 = arith.maximumf %455, %456 : vector<32x32xf32>
    %458 = arith.addf %457, %312 : vector<32x32xf32>
    %459 = vector.extract_strided_slice %15 {offsets = [3, 0], sizes = [1, 32], strides = [1, 1]} : vector<4x32xf32> to vector<1x32xf32>
    %460 = vector.shape_cast %459 : vector<1x32xf32> to vector<32xf32>
    %461 = vector.extract_strided_slice %16 {offsets = [3, 0], sizes = [1, 32], strides = [1, 1]} : vector<4x32xf32> to vector<1x32xf32>
    %462 = vector.shape_cast %461 : vector<1x32xf32> to vector<32xf32>
    %cst_101 = arith.constant dense<0.000000e+00> : vector<32xf32>
    %463 = vector.multi_reduction <add>, %458, %cst_101 [1] : vector<32x32xf32> to vector<32xf32>
    %464 = vector.shape_cast %463 : vector<32xf32> to vector<32x1xf32>
    %cst_102 = arith.constant 3.200000e+01 : f32
    %465 = vector.broadcast %cst_102 : f32 to vector<32x1xf32>
    %466 = arith.divf %464, %465 : vector<32x1xf32>
    %467 = vector.broadcast %466 : vector<32x1xf32> to vector<32x32xf32>
    %468 = arith.subf %458, %467 : vector<32x32xf32>
    %469 = arith.mulf %468, %468 : vector<32x32xf32>
    %cst_103 = arith.constant dense<0.000000e+00> : vector<32xf32>
    %470 = vector.multi_reduction <add>, %469, %cst_103 [1] : vector<32x32xf32> to vector<32xf32>
    %471 = vector.shape_cast %470 : vector<32xf32> to vector<32x1xf32>
    %cst_104 = arith.constant 3.200000e+01 : f32
    %472 = vector.broadcast %cst_104 : f32 to vector<32x1xf32>
    %473 = arith.divf %471, %472 : vector<32x1xf32>
    %474 = vector.broadcast %466 : vector<32x1xf32> to vector<32x32xf32>
    %475 = arith.subf %458, %474 : vector<32x32xf32>
    %cst_105 = arith.constant 9.99999974E-6 : f32
    %476 = vector.broadcast %cst_105 : f32 to vector<32x1xf32>
    %477 = arith.addf %473, %476 : vector<32x1xf32>
    %478 = math.rsqrt %477 : vector<32x1xf32>
    %479 = vector.broadcast %478 : vector<32x1xf32> to vector<32x32xf32>
    %480 = arith.mulf %475, %479 : vector<32x32xf32>
    %481 = vector.shape_cast %460 : vector<32xf32> to vector<1x32xf32>
    %482 = vector.broadcast %481 : vector<1x32xf32> to vector<32x32xf32>
    %483 = arith.mulf %480, %482 : vector<32x32xf32>
    %484 = vector.shape_cast %462 : vector<32xf32> to vector<1x32xf32>
    %485 = vector.broadcast %484 : vector<1x32xf32> to vector<32x32xf32>
    %486 = arith.addf %483, %485 : vector<32x32xf32>
    %487 = vector.extract_strided_slice %17 {offsets = [3, 3, 0], sizes = [1, 1, 32], strides = [1, 1, 1]} : vector<4x7x32xf32> to vector<1x1x32xf32>
    %488 = vector.shape_cast %487 : vector<1x1x32xf32> to vector<32xf32>
    %489 = vector.shape_cast %488 : vector<32xf32> to vector<1x32xf32>
    %490 = vector.broadcast %489 : vector<1x32xf32> to vector<32x32xf32>
    %491 = arith.mulf %486, %490 : vector<32x32xf32>
    %c3_i32_106 = arith.constant 3 : i32
    %492 = tpu.dynamic_rotate %486 by %c3_i32_106 dim 0 : vector<32x32xf32>, i32 -> vector<32x32xf32>
    %c3_i32_107 = arith.constant 3 : i32
    %493 = vector.broadcast %c3_i32_107 : i32 to vector<32x1xi32>
    %494 = arith.cmpi sge, %14, %493 : vector<32x1xi32>
    %c19_i32_108 = arith.constant 19 : i32
    %495 = vector.broadcast %c19_i32_108 : i32 to vector<32x1xi32>
    %496 = arith.cmpi slt, %14, %495 : vector<32x1xi32>
    %497 = arith.andi %494, %496 : vector<32x1xi1>
    %cst_109 = arith.constant 0.000000e+00 : f32
    %498 = vector.shape_cast %497 : vector<32x1xi1> to vector<32x1xi1>
    %499 = vector.broadcast %498 : vector<32x1xi1> to vector<32x32xi1>
    %500 = vector.broadcast %cst_109 : f32 to vector<32x32xf32>
    %501 = arith.select %499, %492, %500 : vector<32x32xi1>, vector<32x32xf32>
    %502 = vector.extract_strided_slice %17 {offsets = [3, 0, 0], sizes = [1, 1, 32], strides = [1, 1, 1]} : vector<4x7x32xf32> to vector<1x1x32xf32>
    %503 = vector.shape_cast %502 : vector<1x1x32xf32> to vector<32xf32>
    %504 = vector.shape_cast %503 : vector<32xf32> to vector<1x32xf32>
    %505 = vector.broadcast %504 : vector<1x32xf32> to vector<32x32xf32>
    %506 = arith.mulf %501, %505 : vector<32x32xf32>
    %507 = arith.addf %491, %506 : vector<32x32xf32>
    %c2_i32_110 = arith.constant 2 : i32
    %508 = tpu.dynamic_rotate %486 by %c2_i32_110 dim 0 : vector<32x32xf32>, i32 -> vector<32x32xf32>
    %c2_i32_111 = arith.constant 2 : i32
    %509 = vector.broadcast %c2_i32_111 : i32 to vector<32x1xi32>
    %510 = arith.cmpi sge, %14, %509 : vector<32x1xi32>
    %c18_i32_112 = arith.constant 18 : i32
    %511 = vector.broadcast %c18_i32_112 : i32 to vector<32x1xi32>
    %512 = arith.cmpi slt, %14, %511 : vector<32x1xi32>
    %513 = arith.andi %510, %512 : vector<32x1xi1>
    %cst_113 = arith.constant 0.000000e+00 : f32
    %514 = vector.shape_cast %513 : vector<32x1xi1> to vector<32x1xi1>
    %515 = vector.broadcast %514 : vector<32x1xi1> to vector<32x32xi1>
    %516 = vector.broadcast %cst_113 : f32 to vector<32x32xf32>
    %517 = arith.select %515, %508, %516 : vector<32x32xi1>, vector<32x32xf32>
    %518 = vector.extract_strided_slice %17 {offsets = [3, 1, 0], sizes = [1, 1, 32], strides = [1, 1, 1]} : vector<4x7x32xf32> to vector<1x1x32xf32>
    %519 = vector.shape_cast %518 : vector<1x1x32xf32> to vector<32xf32>
    %520 = vector.shape_cast %519 : vector<32xf32> to vector<1x32xf32>
    %521 = vector.broadcast %520 : vector<1x32xf32> to vector<32x32xf32>
    %522 = arith.mulf %517, %521 : vector<32x32xf32>
    %523 = arith.addf %507, %522 : vector<32x32xf32>
    %c1_i32_114 = arith.constant 1 : i32
    %524 = tpu.dynamic_rotate %486 by %c1_i32_114 dim 0 : vector<32x32xf32>, i32 -> vector<32x32xf32>
    %c1_i32_115 = arith.constant 1 : i32
    %525 = vector.broadcast %c1_i32_115 : i32 to vector<32x1xi32>
    %526 = arith.cmpi sge, %14, %525 : vector<32x1xi32>
    %c17_i32_116 = arith.constant 17 : i32
    %527 = vector.broadcast %c17_i32_116 : i32 to vector<32x1xi32>
    %528 = arith.cmpi slt, %14, %527 : vector<32x1xi32>
    %529 = arith.andi %526, %528 : vector<32x1xi1>
    %cst_117 = arith.constant 0.000000e+00 : f32
    %530 = vector.shape_cast %529 : vector<32x1xi1> to vector<32x1xi1>
    %531 = vector.broadcast %530 : vector<32x1xi1> to vector<32x32xi1>
    %532 = vector.broadcast %cst_117 : f32 to vector<32x32xf32>
    %533 = arith.select %531, %524, %532 : vector<32x32xi1>, vector<32x32xf32>
    %534 = vector.extract_strided_slice %17 {offsets = [3, 2, 0], sizes = [1, 1, 32], strides = [1, 1, 1]} : vector<4x7x32xf32> to vector<1x1x32xf32>
    %535 = vector.shape_cast %534 : vector<1x1x32xf32> to vector<32xf32>
    %536 = vector.shape_cast %535 : vector<32xf32> to vector<1x32xf32>
    %537 = vector.broadcast %536 : vector<1x32xf32> to vector<32x32xf32>
    %538 = arith.mulf %533, %537 : vector<32x32xf32>
    %539 = arith.addf %523, %538 : vector<32x32xf32>
    %c31_i32_118 = arith.constant 31 : i32
    %540 = tpu.dynamic_rotate %486 by %c31_i32_118 dim 0 : vector<32x32xf32>, i32 -> vector<32x32xf32>
    %c-1_i32_119 = arith.constant -1 : i32
    %541 = vector.broadcast %c-1_i32_119 : i32 to vector<32x1xi32>
    %542 = arith.cmpi sge, %14, %541 : vector<32x1xi32>
    %c15_i32_120 = arith.constant 15 : i32
    %543 = vector.broadcast %c15_i32_120 : i32 to vector<32x1xi32>
    %544 = arith.cmpi slt, %14, %543 : vector<32x1xi32>
    %545 = arith.andi %542, %544 : vector<32x1xi1>
    %cst_121 = arith.constant 0.000000e+00 : f32
    %546 = vector.shape_cast %545 : vector<32x1xi1> to vector<32x1xi1>
    %547 = vector.broadcast %546 : vector<32x1xi1> to vector<32x32xi1>
    %548 = vector.broadcast %cst_121 : f32 to vector<32x32xf32>
    %549 = arith.select %547, %540, %548 : vector<32x32xi1>, vector<32x32xf32>
    %550 = vector.extract_strided_slice %17 {offsets = [3, 4, 0], sizes = [1, 1, 32], strides = [1, 1, 1]} : vector<4x7x32xf32> to vector<1x1x32xf32>
    %551 = vector.shape_cast %550 : vector<1x1x32xf32> to vector<32xf32>
    %552 = vector.shape_cast %551 : vector<32xf32> to vector<1x32xf32>
    %553 = vector.broadcast %552 : vector<1x32xf32> to vector<32x32xf32>
    %554 = arith.mulf %549, %553 : vector<32x32xf32>
    %555 = arith.addf %539, %554 : vector<32x32xf32>
    %c30_i32_122 = arith.constant 30 : i32
    %556 = tpu.dynamic_rotate %486 by %c30_i32_122 dim 0 : vector<32x32xf32>, i32 -> vector<32x32xf32>
    %c-2_i32_123 = arith.constant -2 : i32
    %557 = vector.broadcast %c-2_i32_123 : i32 to vector<32x1xi32>
    %558 = arith.cmpi sge, %14, %557 : vector<32x1xi32>
    %c14_i32_124 = arith.constant 14 : i32
    %559 = vector.broadcast %c14_i32_124 : i32 to vector<32x1xi32>
    %560 = arith.cmpi slt, %14, %559 : vector<32x1xi32>
    %561 = arith.andi %558, %560 : vector<32x1xi1>
    %cst_125 = arith.constant 0.000000e+00 : f32
    %562 = vector.shape_cast %561 : vector<32x1xi1> to vector<32x1xi1>
    %563 = vector.broadcast %562 : vector<32x1xi1> to vector<32x32xi1>
    %564 = vector.broadcast %cst_125 : f32 to vector<32x32xf32>
    %565 = arith.select %563, %556, %564 : vector<32x32xi1>, vector<32x32xf32>
    %566 = vector.extract_strided_slice %17 {offsets = [3, 5, 0], sizes = [1, 1, 32], strides = [1, 1, 1]} : vector<4x7x32xf32> to vector<1x1x32xf32>
    %567 = vector.shape_cast %566 : vector<1x1x32xf32> to vector<32xf32>
    %568 = vector.shape_cast %567 : vector<32xf32> to vector<1x32xf32>
    %569 = vector.broadcast %568 : vector<1x32xf32> to vector<32x32xf32>
    %570 = arith.mulf %565, %569 : vector<32x32xf32>
    %571 = arith.addf %555, %570 : vector<32x32xf32>
    %c29_i32_126 = arith.constant 29 : i32
    %572 = tpu.dynamic_rotate %486 by %c29_i32_126 dim 0 : vector<32x32xf32>, i32 -> vector<32x32xf32>
    %c-3_i32_127 = arith.constant -3 : i32
    %573 = vector.broadcast %c-3_i32_127 : i32 to vector<32x1xi32>
    %574 = arith.cmpi sge, %14, %573 : vector<32x1xi32>
    %c13_i32_128 = arith.constant 13 : i32
    %575 = vector.broadcast %c13_i32_128 : i32 to vector<32x1xi32>
    %576 = arith.cmpi slt, %14, %575 : vector<32x1xi32>
    %577 = arith.andi %574, %576 : vector<32x1xi1>
    %cst_129 = arith.constant 0.000000e+00 : f32
    %578 = vector.shape_cast %577 : vector<32x1xi1> to vector<32x1xi1>
    %579 = vector.broadcast %578 : vector<32x1xi1> to vector<32x32xi1>
    %580 = vector.broadcast %cst_129 : f32 to vector<32x32xf32>
    %581 = arith.select %579, %572, %580 : vector<32x32xi1>, vector<32x32xf32>
    %582 = vector.extract_strided_slice %17 {offsets = [3, 6, 0], sizes = [1, 1, 32], strides = [1, 1, 1]} : vector<4x7x32xf32> to vector<1x1x32xf32>
    %583 = vector.shape_cast %582 : vector<1x1x32xf32> to vector<32xf32>
    %584 = vector.shape_cast %583 : vector<32xf32> to vector<1x32xf32>
    %585 = vector.broadcast %584 : vector<1x32xf32> to vector<32x32xf32>
    %586 = arith.mulf %581, %585 : vector<32x32xf32>
    %587 = arith.addf %571, %586 : vector<32x32xf32>
    %588 = vector.extract_strided_slice %18 {offsets = [3, 0], sizes = [1, 32], strides = [1, 1]} : vector<4x32xf32> to vector<1x32xf32>
    %589 = vector.shape_cast %588 : vector<1x32xf32> to vector<32xf32>
    %590 = vector.shape_cast %589 : vector<32xf32> to vector<1x32xf32>
    %591 = vector.broadcast %590 : vector<1x32xf32> to vector<32x32xf32>
    %592 = arith.addf %587, %591 : vector<32x32xf32>
    %593 = arith.truncf %592 : vector<32x32xf32> to vector<32x32xbf16>
    %594 = vector.extract_strided_slice %19 {offsets = [3, 0, 0], sizes = [1, 32, 32], strides = [1, 1, 1]} : vector<4x32x32xbf16> to vector<1x32x32xbf16>
    %595 = vector.shape_cast %594 : vector<1x32x32xbf16> to vector<32x32xbf16>
    %cst_130 = arith.constant dense<0.000000e+00> : vector<32x32xf32>
    %596 = tpu.matmul %593, %595, %cst_130 {dimension_numbers = #tpu.dot_dimension_numbers<[1], [0], [0], [1], [0, 0, 1, 1], [], []>} : vector<32x32xbf16>, vector<32x32xbf16>, vector<32x32xf32> -> vector<32x32xf32>
    %597 = vector.extract_strided_slice %20 {offsets = [3, 0], sizes = [1, 32], strides = [1, 1]} : vector<4x32xf32> to vector<1x32xf32>
    %598 = vector.shape_cast %597 : vector<1x32xf32> to vector<32xf32>
    %599 = vector.shape_cast %598 : vector<32xf32> to vector<1x32xf32>
    %600 = vector.broadcast %599 : vector<1x32xf32> to vector<32x32xf32>
    %601 = arith.addf %596, %600 : vector<32x32xf32>
    %cst_131 = arith.constant 0.000000e+00 : f32
    %602 = vector.broadcast %cst_131 : f32 to vector<32x32xf32>
    %603 = arith.maximumf %601, %602 : vector<32x32xf32>
    %604 = arith.addf %603, %458 : vector<32x32xf32>
    %c0_132 = arith.constant 0 : index
    %c0_133 = arith.constant 0 : index
    %605 = vector.load %arg10[%c0_132, %c0_133] : memref<1x32xf32, #tpu.memory_space<vmem>>, vector<1x32xf32>
    %606 = vector.shape_cast %605 : vector<1x32xf32> to vector<32xf32>
    %c0_134 = arith.constant 0 : index
    %c0_135 = arith.constant 0 : index
    %607 = vector.load %arg11[%c0_134, %c0_135] : memref<1x32xf32, #tpu.memory_space<vmem>>, vector<1x32xf32>
    %608 = vector.shape_cast %607 : vector<1x32xf32> to vector<32xf32>
    %cst_136 = arith.constant dense<0.000000e+00> : vector<32xf32>
    %609 = vector.multi_reduction <add>, %604, %cst_136 [1] : vector<32x32xf32> to vector<32xf32>
    %610 = vector.shape_cast %609 : vector<32xf32> to vector<32x1xf32>
    %cst_137 = arith.constant 3.200000e+01 : f32
    %611 = vector.broadcast %cst_137 : f32 to vector<32x1xf32>
    %612 = arith.divf %610, %611 : vector<32x1xf32>
    %613 = vector.broadcast %612 : vector<32x1xf32> to vector<32x32xf32>
    %614 = arith.subf %604, %613 : vector<32x32xf32>
    %615 = arith.mulf %614, %614 : vector<32x32xf32>
    %cst_138 = arith.constant dense<0.000000e+00> : vector<32xf32>
    %616 = vector.multi_reduction <add>, %615, %cst_138 [1] : vector<32x32xf32> to vector<32xf32>
    %617 = vector.shape_cast %616 : vector<32xf32> to vector<32x1xf32>
    %cst_139 = arith.constant 3.200000e+01 : f32
    %618 = vector.broadcast %cst_139 : f32 to vector<32x1xf32>
    %619 = arith.divf %617, %618 : vector<32x1xf32>
    %620 = vector.broadcast %612 : vector<32x1xf32> to vector<32x32xf32>
    %621 = arith.subf %604, %620 : vector<32x32xf32>
    %cst_140 = arith.constant 9.99999974E-6 : f32
    %622 = vector.broadcast %cst_140 : f32 to vector<32x1xf32>
    %623 = arith.addf %619, %622 : vector<32x1xf32>
    %624 = math.rsqrt %623 : vector<32x1xf32>
    %625 = vector.broadcast %624 : vector<32x1xf32> to vector<32x32xf32>
    %626 = arith.mulf %621, %625 : vector<32x32xf32>
    %627 = vector.shape_cast %606 : vector<32xf32> to vector<1x32xf32>
    %628 = vector.broadcast %627 : vector<1x32xf32> to vector<32x32xf32>
    %629 = arith.mulf %626, %628 : vector<32x32xf32>
    %630 = vector.shape_cast %608 : vector<32xf32> to vector<1x32xf32>
    %631 = vector.broadcast %630 : vector<1x32xf32> to vector<32x32xf32>
    %632 = arith.addf %629, %631 : vector<32x32xf32>
    %633 = arith.truncf %632 : vector<32x32xf32> to vector<32x32xbf16>
    %c0_141 = arith.constant 0 : index
    %c0_142 = arith.constant 0 : index
    %634 = vector.load %arg12[%c0_141, %c0_142] : memref<32x96xbf16, #tpu.memory_space<vmem>>, vector<32x96xbf16>
    %cst_143 = arith.constant dense<0.000000e+00> : vector<32x96xf32>
    %635 = tpu.matmul %633, %634, %cst_143 {dimension_numbers = #tpu.dot_dimension_numbers<[1], [0], [0], [1], [0, 0, 1, 1], [], []>} : vector<32x32xbf16>, vector<32x96xbf16>, vector<32x96xf32> -> vector<32x96xf32>
    %636 = vector.shape_cast %635 : vector<32x96xf32> to vector<2x16x96xf32>
    %637 = vector.extract_strided_slice %636 {offsets = [0, 0, 0], sizes = [2, 16, 32], strides = [1, 1, 1]} : vector<2x16x96xf32> to vector<2x16x32xf32>
    %638 = vector.extract_strided_slice %636 {offsets = [0, 0, 32], sizes = [2, 16, 32], strides = [1, 1, 1]} : vector<2x16x96xf32> to vector<2x16x32xf32>
    %639 = vector.extract_strided_slice %636 {offsets = [0, 0, 64], sizes = [2, 16, 32], strides = [1, 1, 1]} : vector<2x16x96xf32> to vector<2x16x32xf32>
    %cst_144 = arith.constant 0.176776692 : f32
    %640 = vector.broadcast %cst_144 : f32 to vector<2x16x32xf32>
    %641 = arith.mulf %637, %640 : vector<2x16x32xf32>
    %642 = arith.truncf %641 : vector<2x16x32xf32> to vector<2x16x32xbf16>
    %643 = arith.truncf %638 : vector<2x16x32xf32> to vector<2x16x32xbf16>
    %644 = arith.truncf %639 : vector<2x16x32xf32> to vector<2x16x32xbf16>
    "tpu.trace_start"() <{level = 10 : i32, message = "bqd,bkd->bqk"}> : () -> ()
    %cst_145 = arith.constant dense<0.000000e+00> : vector<2x16x16xf32>
    %645 = tpu.matmul %642, %643, %cst_145 {dimension_numbers = #tpu.dot_dimension_numbers<[2], [2], [1], [1], [0, 0, 0, 1, 1, 1], [0], [0]>} : vector<2x16x32xbf16>, vector<2x16x32xbf16>, vector<2x16x16xf32> -> vector<2x16x16xf32>
    %cst_146 = arith.constant -9.99999986E+14 : f32
    "tpu.trace_stop"() : () -> ()
    %646 = vector.shape_cast %12 : vector<2x1x16xi1> to vector<2x1x16xi1>
    %647 = vector.broadcast %646 : vector<2x1x16xi1> to vector<2x16x16xi1>
    %648 = vector.broadcast %cst_146 : f32 to vector<2x16x16xf32>
    %649 = arith.select %647, %645, %648 : vector<2x16x16xi1>, vector<2x16x16xf32>
    %cst_147 = arith.constant dense<0xFF800000> : vector<2x16xf32>
    %650 = vector.multi_reduction <maximumf>, %649, %cst_147 [2] : vector<2x16x16xf32> to vector<2x16xf32>
    %651 = vector.shape_cast %650 : vector<2x16xf32> to vector<2x16x1xf32>
    %652 = vector.broadcast %651 : vector<2x16x1xf32> to vector<2x16x16xf32>
    %653 = arith.subf %649, %652 : vector<2x16x16xf32>
    %654 = math.exp %653 : vector<2x16x16xf32>
    %cst_148 = arith.constant dense<0.000000e+00> : vector<2x16xf32>
    %655 = vector.multi_reduction <add>, %654, %cst_148 [2] : vector<2x16x16xf32> to vector<2x16xf32>
    %656 = vector.shape_cast %655 : vector<2x16xf32> to vector<2x16x1xf32>
    %657 = tpu.reciprocal %656 {approx = true} : vector<2x16x1xf32> -> vector<2x16x1xf32>
    %658 = vector.broadcast %657 : vector<2x16x1xf32> to vector<2x16x16xf32>
    %659 = arith.mulf %654, %658 : vector<2x16x16xf32>
    %660 = arith.truncf %659 : vector<2x16x16xf32> to vector<2x16x16xbf16>
    "tpu.trace_start"() <{level = 10 : i32, message = "bqk,bkd->bqd"}> : () -> ()
    %cst_149 = arith.constant dense<0.000000e+00> : vector<2x16x32xf32>
    %661 = tpu.matmul %660, %644, %cst_149 {dimension_numbers = #tpu.dot_dimension_numbers<[2], [1], [1], [2], [0, 0, 0, 1, 1, 2], [0], [0]>} : vector<2x16x16xbf16>, vector<2x16x32xbf16>, vector<2x16x32xf32> -> vector<2x16x32xf32>
    "tpu.trace_stop"() : () -> ()
    %662 = vector.shape_cast %661 : vector<2x16x32xf32> to vector<32x32xf32>
    %663 = arith.addf %662, %604 : vector<32x32xf32>
    %c0_150 = arith.constant 0 : index
    %c0_151 = arith.constant 0 : index
    %664 = vector.load %arg13[%c0_150, %c0_151] : memref<1x32xf32, #tpu.memory_space<vmem>>, vector<1x32xf32>
    %665 = vector.shape_cast %664 : vector<1x32xf32> to vector<32xf32>
    %c0_152 = arith.constant 0 : index
    %c0_153 = arith.constant 0 : index
    %666 = vector.load %arg14[%c0_152, %c0_153] : memref<1x32xf32, #tpu.memory_space<vmem>>, vector<1x32xf32>
    %667 = vector.shape_cast %666 : vector<1x32xf32> to vector<32xf32>
    %cst_154 = arith.constant dense<0.000000e+00> : vector<32xf32>
    %668 = vector.multi_reduction <add>, %663, %cst_154 [1] : vector<32x32xf32> to vector<32xf32>
    %669 = vector.shape_cast %668 : vector<32xf32> to vector<32x1xf32>
    %cst_155 = arith.constant 3.200000e+01 : f32
    %670 = vector.broadcast %cst_155 : f32 to vector<32x1xf32>
    %671 = arith.divf %669, %670 : vector<32x1xf32>
    %672 = vector.broadcast %671 : vector<32x1xf32> to vector<32x32xf32>
    %673 = arith.subf %663, %672 : vector<32x32xf32>
    %674 = arith.mulf %673, %673 : vector<32x32xf32>
    %cst_156 = arith.constant dense<0.000000e+00> : vector<32xf32>
    %675 = vector.multi_reduction <add>, %674, %cst_156 [1] : vector<32x32xf32> to vector<32xf32>
    %676 = vector.shape_cast %675 : vector<32xf32> to vector<32x1xf32>
    %cst_157 = arith.constant 3.200000e+01 : f32
    %677 = vector.broadcast %cst_157 : f32 to vector<32x1xf32>
    %678 = arith.divf %676, %677 : vector<32x1xf32>
    %679 = vector.broadcast %671 : vector<32x1xf32> to vector<32x32xf32>
    %680 = arith.subf %663, %679 : vector<32x32xf32>
    %cst_158 = arith.constant 9.99999974E-6 : f32
    %681 = vector.broadcast %cst_158 : f32 to vector<32x1xf32>
    %682 = arith.addf %678, %681 : vector<32x1xf32>
    %683 = math.rsqrt %682 : vector<32x1xf32>
    %684 = vector.broadcast %683 : vector<32x1xf32> to vector<32x32xf32>
    %685 = arith.mulf %680, %684 : vector<32x32xf32>
    %686 = vector.shape_cast %665 : vector<32xf32> to vector<1x32xf32>
    %687 = vector.broadcast %686 : vector<1x32xf32> to vector<32x32xf32>
    %688 = arith.mulf %685, %687 : vector<32x32xf32>
    %689 = vector.shape_cast %667 : vector<32xf32> to vector<1x32xf32>
    %690 = vector.broadcast %689 : vector<1x32xf32> to vector<32x32xf32>
    %691 = arith.addf %688, %690 : vector<32x32xf32>
    %692 = arith.truncf %691 : vector<32x32xf32> to vector<32x32xbf16>
    %c0_159 = arith.constant 0 : index
    %c0_160 = arith.constant 0 : index
    %693 = vector.load %arg15[%c0_159, %c0_160] : memref<32x32xbf16, #tpu.memory_space<vmem>>, vector<32x32xbf16>
    %cst_161 = arith.constant dense<0.000000e+00> : vector<32x32xf32>
    %694 = tpu.matmul %692, %693, %cst_161 {dimension_numbers = #tpu.dot_dimension_numbers<[1], [0], [0], [1], [0, 0, 1, 1], [], []>} : vector<32x32xbf16>, vector<32x32xbf16>, vector<32x32xf32> -> vector<32x32xf32>
    %c0_162 = arith.constant 0 : index
    %c0_163 = arith.constant 0 : index
    %695 = vector.load %arg16[%c0_162, %c0_163] : memref<1x32xf32, #tpu.memory_space<vmem>>, vector<1x32xf32>
    %696 = vector.shape_cast %695 : vector<1x32xf32> to vector<32xf32>
    %697 = vector.shape_cast %696 : vector<32xf32> to vector<1x32xf32>
    %698 = vector.broadcast %697 : vector<1x32xf32> to vector<32x32xf32>
    %699 = arith.addf %694, %698 : vector<32x32xf32>
    %cst_164 = arith.constant 0.000000e+00 : f32
    %700 = vector.broadcast %cst_164 : f32 to vector<32x32xf32>
    %701 = arith.maximumf %699, %700 : vector<32x32xf32>
    %702 = arith.addf %663, %701 : vector<32x32xf32>
    %703 = vector.extract_strided_slice %702 {offsets = [0, 0], sizes = [16, 32], strides = [1, 1]} : vector<32x32xf32> to vector<16x32xf32>
    %704 = tpu.transpose %703, [1, 0] : vector<16x32xf32> -> vector<32x16xf32>
    %c0_165 = arith.constant 0 : index
    %c0_166 = arith.constant 0 : index
    %c0_167 = arith.constant 0 : index
    %705 = vector.load %arg17[%c0_165, %c0_166, %c0_167] : memref<2x32x16xf32, #tpu.memory_space<vmem>>, vector<1x32x16xf32>
    %706 = vector.shape_cast %705 : vector<1x32x16xf32> to vector<32x16xf32>
    %707 = vector.shape_cast %704 : vector<32x16xf32> to vector<1x32x16xf32>
    tpu.vector_store %arg17[%c0_165, %c0_166, %c0_167], %707 {strides = array<i32>} : memref<2x32x16xf32, #tpu.memory_space<vmem>>, vector<1x32x16xf32>,
    %708 = vector.extract_strided_slice %702 {offsets = [16, 0], sizes = [16, 32], strides = [1, 1]} : vector<32x32xf32> to vector<16x32xf32>
    %709 = tpu.transpose %708, [1, 0] : vector<16x32xf32> -> vector<32x16xf32>
    %c1_168 = arith.constant 1 : index
    %c0_169 = arith.constant 0 : index
    %c0_170 = arith.constant 0 : index
    %710 = vector.load %arg17[%c1_168, %c0_169, %c0_170] : memref<2x32x16xf32, #tpu.memory_space<vmem>>, vector<1x32x16xf32>
    %711 = vector.shape_cast %710 : vector<1x32x16xf32> to vector<32x16xf32>
    %712 = vector.shape_cast %709 : vector<32x16xf32> to vector<1x32x16xf32>
    tpu.vector_store %arg17[%c1_168, %c0_169, %c0_170], %712 {strides = array<i32>} : memref<2x32x16xf32, #tpu.memory_space<vmem>>, vector<1x32x16xf32>,
    return
  }
  func.func @transform_0(%arg0: i32) -> (i32, i32, i32) {
    %c0_i32 = arith.constant 0 : i32
    %c0_i32_0 = arith.constant 0 : i32
    %c0_i32_1 = arith.constant 0 : i32
    return %arg0, %c0_i32, %c0_i32_0 : i32, i32, i32
  }
  func.func @transform_1(%arg0: i32) -> (i32, i32, i32) {
    %c0_i32 = arith.constant 0 : i32
    %c0_i32_0 = arith.constant 0 : i32
    %c0_i32_1 = arith.constant 0 : i32
    return %arg0, %c0_i32, %c0_i32_0 : i32, i32, i32
  }
  func.func @transform_2(%arg0: i32) -> (i32, i32) {
    %c0_i32 = arith.constant 0 : i32
    %c0_i32_0 = arith.constant 0 : i32
    %c0_i32_1 = arith.constant 0 : i32
    return %c0_i32, %c0_i32_0 : i32, i32
  }
  func.func @transform_3(%arg0: i32) -> (i32, i32) {
    %c0_i32 = arith.constant 0 : i32
    %c0_i32_0 = arith.constant 0 : i32
    %c0_i32_1 = arith.constant 0 : i32
    return %c0_i32, %c0_i32_0 : i32, i32
  }
  func.func @transform_4(%arg0: i32) -> (i32, i32) {
    %c0_i32 = arith.constant 0 : i32
    %c0_i32_0 = arith.constant 0 : i32
    %c0_i32_1 = arith.constant 0 : i32
    return %c0_i32, %c0_i32_0 : i32, i32
  }
  func.func @transform_5(%arg0: i32) -> (i32, i32, i32) {
    %c0_i32 = arith.constant 0 : i32
    %c0_i32_0 = arith.constant 0 : i32
    %c0_i32_1 = arith.constant 0 : i32
    %c0_i32_2 = arith.constant 0 : i32
    return %c0_i32, %c0_i32_0, %c0_i32_1 : i32, i32, i32
  }
  func.func @transform_6(%arg0: i32) -> (i32, i32) {
    %c0_i32 = arith.constant 0 : i32
    %c0_i32_0 = arith.constant 0 : i32
    %c0_i32_1 = arith.constant 0 : i32
    return %c0_i32, %c0_i32_0 : i32, i32
  }
  func.func @transform_7(%arg0: i32) -> (i32, i32, i32) {
    %c0_i32 = arith.constant 0 : i32
    %c0_i32_0 = arith.constant 0 : i32
    %c0_i32_1 = arith.constant 0 : i32
    %c0_i32_2 = arith.constant 0 : i32
    return %c0_i32, %c0_i32_0, %c0_i32_1 : i32, i32, i32
  }
  func.func @transform_8(%arg0: i32) -> (i32, i32) {
    %c0_i32 = arith.constant 0 : i32
    %c0_i32_0 = arith.constant 0 : i32
    %c0_i32_1 = arith.constant 0 : i32
    return %c0_i32, %c0_i32_0 : i32, i32
  }
  func.func @transform_9(%arg0: i32) -> (i32, i32) {
    %c0_i32 = arith.constant 0 : i32
    %c0_i32_0 = arith.constant 0 : i32
    %c0_i32_1 = arith.constant 0 : i32
    return %c0_i32, %c0_i32_0 : i32, i32
  }
  func.func @transform_10(%arg0: i32) -> (i32, i32) {
    %c0_i32 = arith.constant 0 : i32
    %c0_i32_0 = arith.constant 0 : i32
    %c0_i32_1 = arith.constant 0 : i32
    return %c0_i32, %c0_i32_0 : i32, i32
  }
  func.func @transform_11(%arg0: i32) -> (i32, i32) {
    %c0_i32 = arith.constant 0 : i32
    %c0_i32_0 = arith.constant 0 : i32
    %c0_i32_1 = arith.constant 0 : i32
    return %c0_i32, %c0_i32_0 : i32, i32
  }
  func.func @transform_12(%arg0: i32) -> (i32, i32) {
    %c0_i32 = arith.constant 0 : i32
    %c0_i32_0 = arith.constant 0 : i32
    %c0_i32_1 = arith.constant 0 : i32
    return %c0_i32, %c0_i32_0 : i32, i32
  }
  func.func @transform_13(%arg0: i32) -> (i32, i32) {
    %c0_i32 = arith.constant 0 : i32
    %c0_i32_0 = arith.constant 0 : i32
    %c0_i32_1 = arith.constant 0 : i32
    return %c0_i32, %c0_i32_0 : i32, i32
  }
  func.func @transform_14(%arg0: i32) -> (i32, i32) {
    %c0_i32 = arith.constant 0 : i32
    %c0_i32_0 = arith.constant 0 : i32
    %c0_i32_1 = arith.constant 0 : i32
    return %c0_i32, %c0_i32_0 : i32, i32
  }
  func.func @transform_15(%arg0: i32) -> (i32, i32) {
    %c0_i32 = arith.constant 0 : i32
    %c0_i32_0 = arith.constant 0 : i32
    %c0_i32_1 = arith.constant 0 : i32
    return %c0_i32, %c0_i32_0 : i32, i32
  }
  func.func @transform_16(%arg0: i32) -> (i32, i32, i32) {
    %c0_i32 = arith.constant 0 : i32
    %c0_i32_0 = arith.constant 0 : i32
    %c0_i32_1 = arith.constant 0 : i32
    return %arg0, %c0_i32, %c0_i32_0 : i32, i32, i32
  }
}

</mosaic_0001>

<bundles_post_ra>
// kernel: tpu_custom_call.1
= control target key start
LH: loop header
LB: loop body
LE: loop exit
PB: predicated region body
PF: predicated region fallthrough
CT: control target
= control target key end

     0   :  { %s3034_s21 = smov 0   ;;  %s4271_s0 = inlined_call_operand.vmem [shape: f32[4,32,16], index: 0, kind: input, shape index: {}]   ;;  %s4272_s1 = inlined_call_operand.vmem [shape: f32[4,1,16], index: 1, kind: input, shape index: {}]   ;;  %s4273_s2 = inlined_call_operand.vmem [shape: f32[16,32], index: 2, kind: input, shape index: {}]   ;;  %s4274_s3 = inlined_call_operand.vmem [shape: f32[4,32], index: 3, kind: input, shape index: {}]   ;;  %s4275_s4 = inlined_call_operand.vmem [shape: f32[4,32], index: 4, kind: input, shape index: {}]   ;;  %s4276_s5 = inlined_call_operand.vmem [shape: f32[4,7,32], index: 5, kind: input, shape index: {}]   ;;  %s4277_s6 = inlined_call_operand.vmem [shape: f32[4,32], index: 6, kind: input, shape index: {}]   ;;  %s4278_s7 = inlined_call_operand.vmem [shape: bf16[4,32,32], index: 7, kind: input, shape index: {}]   ;;  %s4279_s8 = inlined_call_operand.vmem [shape: f32[4,32], index: 8, kind: input, shape index: {}]   ;;  %s4280_s9 = inlined_call_operand.vmem [shape: f32[1,32], index: 9, kind: input, shape index: {}]   ;;  %s4281_s10 = inlined_call_operand.vmem [shape: f32[1,32], index: 10, kind: input, shape index: {}]   ;;  %s4282_s11 = inlined_call_operand.vmem [shape: bf16[32,96], index: 11, kind: input, shape index: {}]   ;;  %s4283_s12 = inlined_call_operand.vmem [shape: f32[1,32], index: 12, kind: input, shape index: {}]   ;;  %s4284_s13 = inlined_call_operand.vmem [shape: f32[1,32], index: 13, kind: input, shape index: {}]   ;;  %s4285_s14 = inlined_call_operand.vmem [shape: bf16[32,32], index: 14, kind: input, shape index: {}]   ;;  %s4286_s15 = inlined_call_operand.vmem [shape: f32[1,32], index: 15, kind: input, shape index: {}]   ;;  %s4287_s16 = inlined_call_operand.vmem [shape: f32[4,32,16], index: 16, kind: output, shape index: {}]  }
   0x1   :  { %4288 = sst [smem:[#allocation2_spill]] %s4271_s0 }
   0x2 LB: > { %s2682_s22 = sadd.s32 4294967295, %s2942_s21   ;;  %p2686_p0 = scmp.ge.s32.totalorder %s2942_s21, 1  ;;  %s2942_s21 = sphi %s3034_s21, %s26_s21  }
   0x3   : > { %p474_p1 = scmp.lt.s32.totalorder %s2942_s21, 3 }
   0x5   : > { %p475_p2 = pnand %p2686_p0, %p474_p1 }
   0x6   : > { %s2687_s23 = sshll.u32 (!%p475_p2), %s2682_s22, 1  ;;  %s4289_s27 = sld [smem:[#allocation2_spill]] (!%p475_p2) }
   0x7   : > { %478 = sbr.rel (%p475_p2) target bundleno = 4348 (0x10fc), region = 84  ;;  %p531_p3 = scmp.lt.s32.totalorder (!%p475_p2), %s2687_s23, 3 }
   0x8   : > { %s2946_s18 = smov (!%p475_p2), 96   ;;  %s2948_s25 = smov (!%p475_p2), 64  }
   0xc   : > { %s4291_s23 = smov (!%p531_p3, %s2687_s23), 3  ;;  %v550_v8 = vld [vmem:[%s4273_s2] sm:$0xff]  ;;  %vm660_vm0 = vcmask 261120   ;;  %v551_v12 = vld [vmem:[%s4273_s2 + $0x8] sm:$0xff]  ;;  %v633_v48 = vlaneseq  ;;  %vm2945_vm13 = vmmov 0  }
   0xd   : > { %s2737_s24 = sshll.u32 %s4291_s23, 5  ;;  %v2856_v42 = vld [vmem:[%s4278_s7 + $0x8] sm:$0xff]   ;;  %v2857_v43 = vld [vmem:[%s4278_s7] sm:$0xff]   ;;  %s540_s22 = scalar_lea.vmem %s4272_s1, %s4291_s23 }
   0xe   : > { %s535_s28 = scalar_lea.vmem %s4289_s27, %s2737_s24  ;;  %2771 = vmatprep.subr.bf16.mxu0 %v2856_v42  ;;  %v3098_v52 = vshrl.u32 %v633_v48, 7  ;;  %v3106_v58 = vld [vmem:[%s4274_s3] sm:$0xf]  ;;  %s547_s26 = scalar_lea.vmem %s4287_s16, %s2737_s24 }
   0xf   : > { %v2694_v0 = vld [vmem:[%s535_s28 + $0x20] sm:$0xff]  ;;  %v2695_v2 = vld [vmem:[%s535_s28 + $0x28] sm:$0xff]  ;;  %v2696_v4 = vld [vmem:[%s535_s28 + $0x30] sm:$0xff]  ;;  %2772 = vmatpush3.bf16.msra.mxu0 %v2856_v42 }
  0x10   : > { %v552_v1 = vld [vmem:[%s535_s28] sm:$0xff]  ;;  %595 = vxpose.xlu0.b32.start [1/4] (short) (narrow) %v2694_v0, 16  ;;  %v553_v3 = vld [vmem:[%s535_s28 + $0x8] sm:$0xff]  ;;  %v554_v5 = vld [vmem:[%s535_s28 + $0x10] sm:$0xff]  ;;  %2773 = vmatprep.subr.bf16.mxu0 %v2857_v43  ;;  %v3101_v56 = vsub.s32 0, %v3098_v52  ;;  %v3114_v61 = vsub.s32 3, %v3098_v52 }
  0x11   : > { %556 = vxpose.xlu1.b32.start [1/4] (short) (narrow) %v552_v1, 16  ;;  %v2697_v6 = vld [vmem:[%s535_s28 + $0x38] sm:$0xff]  ;;  %v3111_v60 = vld [vmem:[%s4275_s4] sm:$0xf]  ;;  %vm742_vm1 = vcmp.lt.s32.totalorder %v3098_v52, 3  ;;  %vm747_vm2 = vcmp.ge.s32.totalorder %v3098_v52, 3 }
  0x12   : > { %v555_v7 = vld [vmem:[%s535_s28 + $0x18] sm:$0xff]  ;;  %v3118_v62 = vrot.slane %v3106_v58, %v3101_v56  ;;  %v638_v63 = vld [vmem:[%s4276_s5] sm:$0x7f]  ;;  %v3125_v1 = vrot.slane %v3111_v60, %v3101_v56  ;;  %vm777_vm3 = vcmp.lt.s32.totalorder %v3098_v52, 2  ;;  %vm782_vm4 = vcmp.ge.s32.totalorder %v3098_v52, 2 }
  0x13   : > { %2774 = vmatpush3.bf16.msra.mxu0 %v2857_v43  ;;  %vm812_vm5 = vcmp.lt.s32.totalorder %v3098_v52, 1  ;;  %vm817_vm6 = vcmp.ge.s32.totalorder %v3098_v52, 1  ;;  %vm847_vm7 = vcmp.lt.s32.totalorder %v3098_v52, 7  ;;  %vm882_vm9 = vcmp.lt.s32.totalorder %v3098_v52, 6 }
  0x14   : > { %596 = vxpose.xlu0.b32.cont [2/4] (short) (narrow) %v2695_v2, 16  ;;  %vm917_vm11 = vcmp.lt.s32.totalorder %v3098_v52, 5 }
  0x15   : > { %557 = vxpose.xlu1.b32.cont [2/4] (short) (narrow) %v553_v3, 16  ;;  %v3128_v3 = vrot.slane %v638_v63, %v3114_v61 }
  0x18   : > { %597 = vxpose.xlu0.b32.cont [3/4] (short) (narrow) %v2696_v4, 16  ;;  %v3131_v4 = vsub.s32 1, %v3098_v52 }
  0x19   : > { %558 = vxpose.xlu1.b32.cont [3/4] (short) (narrow) %v554_v5, 16 }
  0x1c   : > { %598 = vxpose.xlu0.b32.end [4/4] (short) (narrow) %v2697_v6, 16  ;;  %v3135_v6 = vadd.s32 8, %v3098_v52 }
  0x1d   : > { %559 = vxpose.xlu1.b32.end [4/4] (short) (narrow) %v555_v7, 16  ;;  %v3138_v7 = vsub.s32 2, %v3098_v52 }
  0x1e   : > { %vm855_vm8 = vcmp.lt.s32.totalorder %v3135_v6, 15  ;;  %vm890_vm10 = vcmp.lt.s32.totalorder %v3135_v6, 14  ;;  %vm925_vm12 = vcmp.lt.s32.totalorder %v3135_v6, 13 }
  0x8c   : > { %v611_v9 = vpop.trf.xlu0 }
  0x8d   : > { %v572_v10 = vpop.trf.xlu1  ;;  %v3068_v20 = vadd.f32 %v611_v9, %v550_v8 }
  0x8e   : > { %v3053_v11 = vadd.f32 %v572_v10, %v550_v8  ;;  %v3141_v8 = vsub.s32 4, %v3098_v52  ;;  %v3146_v10 = vsub.s32 5, %v3098_v52 }
  0x8f   : > { %v667_v21 = vsel %vm660_vm0, %v3068_v20, 0.0 }
  0x90   : > { %v661_v13 = vsel %vm660_vm0, %v3053_v11, 0.0  ;;  %v612_v14 = vpop.trf.xlu0 }
  0x91   : > { %662 = vadd.xlane.f32.xlu0 %v661_v13  ;;  %v573_v15 = vpop.trf.xlu1  ;;  %v3060_v16 = vadd.f32 %v612_v14, %v551_v12 }
  0x92   : > { %v3062_v17 = vadd.f32 %v573_v15, %v551_v12  ;;  %v3149_v12 = vsub.s32 6, %v3098_v52  ;;  %v3158_v15 = vld [vmem:[%s4277_s6] sm:$0xf] }
  0x93   : > { %v670_v18 = vsel %vm660_vm0, %v3060_v16, 0.0  ;;  %v2935_v52 = vld [vmem:[%s4279_s8] sm:$0xf] }
  0x94   : > { %671 = vadd.xlane.f32.xlu1 %v670_v18  ;;  %v664_v19 = vsel %vm660_vm0, %v3062_v17, 0.0  ;;  %v3161_v18 = vrot.slane %v638_v63, %v3101_v56  ;;  %v1888_v6 = vrot.slane %v2935_v52, %v3114_v61 }
  0x98   : > { %665 = vadd.xlane.f32.xlu1 %v664_v19  ;;  %v3166_v19 = vrot.slane %v638_v63, %v3131_v4 }
  0x9c   : > { %668 = vadd.xlane.f32.xlu1 %v667_v21 }
 0x11a   : > { %v663_v22 = vpop.xlane.xlu0 %662 }
 0x11b   : > { %v674_v23 = vmul.f32 0.03125, %v663_v22  ;;  %v3172_v22 = vrot.slane %v638_v63, %v3138_v7 }
 0x11d   : > { %v678_v24 = vsub.f32 %v3053_v11, %v674_v23  ;;  %v672_v25 = vpop.xlane.xlu1 %671  ;;  %v3176_v23 = vrot.slane %v638_v63, %v3141_v8 }
 0x11e   : > { %v677_v26 = vmul.f32 0.03125, %v672_v25 }
 0x11f   : > { %v682_v27 = vmul.f32 %v678_v24, %v678_v24 }
 0x120   : > { %v3074_v28 = vsub.f32 %v3060_v16, %v677_v26  ;;  %v3181_v26 = vrot.slane %v638_v63, %v3146_v10 }
 0x121   : > { %v686_v29 = vsel %vm660_vm0, %v682_v27, 0.0  ;;  %v666_v30 = vpop.xlane.xlu1 %665  ;;  %v3184_v27 = vrot.slane %v638_v63, %v3149_v12 }
 0x122   : > { %687 = vadd.xlane.f32.xlu0 %v686_v29  ;;  %v675_v31 = vmul.f32 0.03125, %v666_v30  ;;  %v685_v32 = vmul.f32 %v3074_v28, %v3074_v28 }
 0x124   : > { %v3080_v33 = vsub.f32 %v3062_v17, %v675_v31  ;;  %v695_v34 = vsel %vm660_vm0, %v685_v32, 0.0 }
 0x125   : > { %696 = vadd.xlane.f32.xlu1 %v695_v34  ;;  %v669_v35 = vpop.xlane.xlu1 %668 }
 0x126   : > { %v676_v36 = vmul.f32 0.03125, %v669_v35  ;;  %v683_v37 = vmul.f32 %v3080_v33, %v3080_v33 }
 0x128   : > { %v3086_v38 = vsub.f32 %v3068_v20, %v676_v36  ;;  %v689_v39 = vsel %vm660_vm0, %v683_v37, 0.0 }
 0x129   : > { %690 = vadd.xlane.f32.xlu0 %v689_v39 }
 0x12a   : > { %v684_v40 = vmul.f32 %v3086_v38, %v3086_v38 }
 0x12c   : > { %v692_v41 = vsel %vm660_vm0, %v684_v40, 0.0 }
 0x12d   : > { %693 = vadd.xlane.f32.xlu1 %v692_v41 }
 0x1ab   : > { %v688_v44 = vpop.xlane.xlu0 %687 }
 0x1ac   : > { %v698_v45 = vmul.f32 0.03125, %v688_v44 }
 0x1ae   : > { %v702_v46 = vadd.f32 1e-05, %v698_v45  ;;  %v697_v47 = vpop.xlane.xlu1 %696 }
 0x1af   : > { %v701_v49 = vmul.f32 0.03125, %v697_v47 }
 0x1b0   : > { %2868 = vrsqrt.f32 %v702_v46 }
 0x1b1   : > { %v705_v50 = vadd.f32 1e-05, %v701_v49 }
 0x1b2   : > { %v691_v51 = vpop.xlane.xlu0 %690 }
 0x1b3   : > { %2870 = vrsqrt.f32 %v705_v50  ;;  %v699_v53 = vmul.f32 0.03125, %v691_v51 }
 0x1b5   : > { %v703_v54 = vadd.f32 1e-05, %v699_v53 }
 0x1b6   : > { %v694_v55 = vpop.xlane.xlu1 %693 }
 0x1b7   : > { %2872 = vrsqrt.f32 %v703_v54  ;;  %v700_v57 = vmul.f32 0.03125, %v694_v55 }
 0x1b9   : > { %v704_v59 = vadd.f32 1e-05, %v700_v57 }
 0x1bb   : > { %2874 = vrsqrt.f32 %v704_v59 }
 0x1bd   : > { %v2869_v0 = vpop.eup %2868 }
 0x1be   : > { %v710_v2 = vmul.f32 %v2869_v0, %v678_v24 }
 0x1c0   : > { %v718_v5 = vmul.f32 %v3118_v62, %v710_v2  ;;  %v2871_v9 = vpop.eup %2870 }
 0x1c1   : > { %v713_v14 = vmul.f32 %v2871_v9, %v3074_v28  ;;  %v3188_v28 = vrot.slane %v3158_v15, %v3101_v56 }
 0x1c2   : > { %v3152_v13 = vadd.f32 %v3125_v1, %v718_v5 }
 0x1c3   : > { %v721_v21 = vmul.f32 %v3118_v62, %v713_v14 }
 0x1c4   : > { %v2873_v24 = vpop.eup %2872  ;;  %v734_v25 = vmul.f32 %v3128_v3, %v3152_v13  ;;  %v738_v31 = vrot.slane %v3152_v13, 5  ;;  %v773_v32 = vrot.slane %v3152_v13, 6  ;;  %v808_v34 = vrot.slane %v3152_v13, 7 }
 0x1c5   : > { %v3191_v29 = vadd.f32 %v3125_v1, %v721_v21  ;;  %v711_v30 = vmul.f32 %v2873_v24, %v3080_v33  ;;  %v843_v35 = vrot.slane %v3152_v13, 1  ;;  %v878_v36 = vrot.slane %v3152_v13, 2 }
 0x1c6   : > { %v913_v37 = vrot.slane %v3152_v13, 3 }
 0x1c7   : > { %v719_v39 = vmul.f32 %v3118_v62, %v711_v30  ;;  %v741_v40 = vrot.slane %v3191_v29, 5  ;;  %v776_v41 = vrot.slane %v3191_v29, 6  ;;  %v811_v33 = vrot.slane %v3191_v29, 7 }
 0x1c8   : > { %v2875_v42 = vpop.eup %2874  ;;  %v3206_v43 = vmul.f32 %v3128_v3, %v3191_v29  ;;  %v846_v44 = vrot.slane %v3191_v29, 1  ;;  %v881_v45 = vrot.slane %v3191_v29, 2  ;;  %v916_v46 = vrot.slane %v3191_v29, 3 }
 0x1c9   : > { %v3212_v47 = vadd.f32 %v3125_v1, %v719_v39  ;;  %v712_v48 = vmul.f32 %v2875_v42, %v3086_v38  ;;  %v746_v49 = vsel %vm742_vm1, %v741_v40, %v738_v31  ;;  %v781_v50 = vsel %vm777_vm3, %v776_v41, %v773_v32 }
 0x1ca   : > { %v757_v51 = vsel %vm747_vm2, %v746_v49, 0.0  ;;  %v792_v38 = vsel %vm782_vm4, %v781_v50, 0.0  ;;  %v816_v53 = vsel %vm812_vm5, %v811_v33, %v808_v34  ;;  %v3238_v54 = vsel %vm847_vm7, %v846_v44, %v843_v35 }
 0x1cb   : > { %v720_v55 = vmul.f32 %v3118_v62, %v712_v48  ;;  %v735_v57 = vmul.f32 %v3128_v3, %v3212_v47  ;;  %v739_v59 = vrot.slane %v3212_v47, 5  ;;  %v765_v63 = vmul.f32 %v3161_v18, %v757_v51 }
 0x1cc   : > { %v774_v0 = vrot.slane %v3212_v47, 6  ;;  %v800_v2 = vmul.f32 %v3166_v19, %v792_v38  ;;  %v809_v5 = vrot.slane %v3212_v47, 7  ;;  %v827_v9 = vsel %vm817_vm6, %v816_v53, 0.0 }
 0x1cd   : > { %v3252_v62 = vadd.f32 %v3125_v1, %v720_v55  ;;  %v745_v14 = vsel %vm742_vm1, %v738_v31, %v739_v59  ;;  %v769_v21 = vadd.f32 %v765_v63, %v734_v25  ;;  %v835_v24 = vmul.f32 %v3172_v22, %v827_v9 }
 0x1ce   : > { %v766_v30 = vmul.f32 %v3161_v18, %v745_v14  ;;  %v780_v39 = vsel %vm777_vm3, %v773_v32, %v774_v0  ;;  %v815_v42 = vsel %vm812_vm5, %v808_v34, %v809_v5  ;;  %v844_v48 = vrot.slane %v3212_v47, 1 }
 0x1cf   : > { %v801_v1 = vmul.f32 %v3166_v19, %v780_v39  ;;  %v804_v31 = vadd.f32 %v800_v2, %v769_v21  ;;  %v836_v25 = vmul.f32 %v3172_v22, %v815_v42  ;;  %v845_v49 = vrot.slane %v3252_v62, 1 }
 0x1d0   : > { %v770_v50 = vadd.f32 %v766_v30, %v735_v57  ;;  %v850_v32 = vsel %vm847_vm7, %v843_v35, %v844_v48  ;;  %v879_v51 = vrot.slane %v3212_v47, 2  ;;  %v880_v38 = vrot.slane %v3252_v62, 2 }
 0x1d1   : > { %v839_v34 = vadd.f32 %v835_v24, %v804_v31  ;;  %v849_v53 = vsel %vm847_vm7, %v844_v48, %v845_v49  ;;  %v870_v55 = vmul.f32 %v3176_v23, %v850_v32  ;;  %v914_v63 = vrot.slane %v3212_v47, 3 }
 0x1d2   : > { %v805_v2 = vadd.f32 %v801_v1, %v770_v50  ;;  %v863_v9 = vsel %vm855_vm8, %v849_v53, 0.0  ;;  %v884_v57 = vsel %vm882_vm9, %v879_v51, %v880_v38  ;;  %v885_v35 = vsel %vm882_vm9, %v878_v36, %v879_v51 }
 0x1d3   : > { %v871_v14 = vmul.f32 %v3176_v23, %v863_v9  ;;  %v874_v21 = vadd.f32 %v870_v55, %v839_v34  ;;  %v898_v24 = vsel %vm890_vm10, %v884_v57, 0.0  ;;  %v905_v30 = vmul.f32 %v3181_v26, %v885_v35 }
 0x1d4   : > { %v840_v39 = vadd.f32 %v836_v25, %v805_v2  ;;  %v906_v42 = vmul.f32 %v3181_v26, %v898_v24  ;;  %v915_v48 = vrot.slane %v3252_v62, 3  ;;  %v920_v1 = vsel %vm917_vm11, %v913_v37, %v914_v63 }
 0x1d5   : > { %v909_v31 = vadd.f32 %v905_v30, %v874_v21  ;;  %v940_v50 = vmul.f32 %v3184_v27, %v920_v1  ;;  %v736_v32 = vmul.f32 %v3128_v3, %v3252_v62  ;;  %v740_v51 = vrot.slane %v3252_v62, 5 }
 0x1d6   : > { %v875_v34 = vadd.f32 %v871_v14, %v840_v39  ;;  %v919_v25 = vsel %vm917_vm11, %v914_v63, %v915_v48  ;;  %v775_v53 = vrot.slane %v3252_v62, 6  ;;  %v810_v55 = vrot.slane %v3252_v62, 7 }
 0x1d7   : > { %v933_v2 = vsel %vm925_vm12, %v919_v25, 0.0  ;;  %v944_v9 = vadd.f32 %v940_v50, %v909_v31  ;;  %v743_v57 = vsel %vm742_vm1, %v740_v51, %v741_v40  ;;  %v744_v3 = vsel %vm742_vm1, %v739_v59, %v740_v51 }
 0x1d8   : > { %v910_v35 = vadd.f32 %v906_v42, %v875_v34  ;;  %v941_v14 = vmul.f32 %v3184_v27, %v933_v2  ;;  %v759_v63 = vsel %vm747_vm2, %v744_v3, 0.0  ;;  %v768_v62 = vmul.f32 %v3161_v18, %v743_v57 }
 0x1d9   : > { %v952_v21 = vadd.f32 %v3188_v28, %v944_v9  ;;  %v767_v24 = vmul.f32 %v3161_v18, %v759_v63  ;;  %v778_v40 = vsel %vm777_vm3, %v775_v53, %v776_v41  ;;  %v779_v59 = vsel %vm777_vm3, %v774_v0, %v775_v53 }
 0x1da   : > { %v945_v30 = vadd.f32 %v941_v14, %v910_v35  ;;  %v772_v39 = vadd.f32 %v768_v62, %v3206_v43  ;;  %v794_v42 = vsel %vm782_vm4, %v779_v59, 0.0  ;;  %v803_v1 = vmul.f32 %v3166_v19, %v778_v40 }
 0x1db   : > { %v771_v31 = vadd.f32 %v767_v24, %v736_v32  ;;  %v802_v50 = vmul.f32 %v3166_v19, %v794_v42  ;;  %v813_v18 = vsel %vm812_vm5, %v810_v55, %v811_v33  ;;  %v814_v41 = vsel %vm812_vm5, %v809_v5, %v810_v55 }
 0x1dc   : > { %v953_v43 = vadd.f32 %v3188_v28, %v945_v30  ;;  %v807_v0 = vadd.f32 %v803_v1, %v772_v39  ;;  %v829_v51 = vsel %vm817_vm6, %v814_v41, 0.0  ;;  %v838_v32 = vmul.f32 %v3172_v22, %v813_v18 }
 0x1dd   : > { %v806_v34 = vadd.f32 %v802_v50, %v771_v31  ;;  %v837_v19 = vmul.f32 %v3172_v22, %v829_v51  ;;  %v848_v33 = vsel %vm847_vm7, %v845_v49, %v846_v44  ;;  %v865_v47 = vsel %vm855_vm8, %v3238_v54, 0.0 }
 0x1de   : > { %v956_v5 = vpack.c.bf16 %v953_v43, %v952_v21  ;;  %v842_v25 = vadd.f32 %v838_v32, %v807_v0  ;;  %v873_v53 = vmul.f32 %v3176_v23, %v865_v47  ;;  %v872_v2 = vmul.f32 %v3176_v23, %v848_v33 }
 0x1df   : > { %v841_v55 = vadd.f32 %v837_v19, %v806_v34  ;;  %v883_v22 = vsel %vm882_vm9, %v880_v38, %v881_v45  ;;  %v886_v44 = vsel %vm882_vm9, %v881_v45, %v878_v36  ;;  %v918_v23 = vsel %vm917_vm11, %v915_v48, %v916_v46 }
 0x1e0   : > { %2775 = vmatprep.mubr.msk.bf16.mxu0 %vm660_vm0, %v956_v5  ;;  %v877_v54 = vadd.f32 %v873_v53, %v842_v25  ;;  %v900_v49 = vsel %vm890_vm10, %v886_v44, 0.0  ;;  %v921_v38 = vsel %vm917_vm11, %v916_v46, %v913_v37  ;;  %v907_v36 = vmul.f32 %v3181_v26, %v883_v22 }
 0x1e1   : > { %v876_v9 = vadd.f32 %v872_v2, %v841_v55  ;;  %v908_v45 = vmul.f32 %v3181_v26, %v900_v49  ;;  %v935_v57 = vsel %vm925_vm12, %v921_v38, 0.0  ;;  %v942_v14 = vmul.f32 %v3184_v27, %v918_v23  ;;  %v3385_v26 = vld [vmem:[%s4279_s8] sm:$0xf] }
 0x1e2   : > { %v943_v48 = vmul.f32 %v3184_v27, %v935_v57  ;;  %v961_v62 = vrot.slane %v3385_v26, %v3101_v56  ;;  %v2858_v57 = vld [vmem:[%s4278_s7 + $0x18] sm:$0xff]  }
 0x1e3   : > { %v911_v3 = vadd.f32 %v907_v36, %v876_v9  ;;  %v912_v35 = vadd.f32 %v908_v45, %v877_v54  ;;  %2779 = vmatprep.subr.bf16.mxu1 %v2858_v57 }
 0x1e4   : > { %2780 = vmatpush3.bf16.msra.mxu1 %v2858_v57 }
 0x1e5   : > { %v946_v13 = vadd.f32 %v942_v14, %v911_v3  ;;  %v947_v63 = vadd.f32 %v943_v48, %v912_v35  ;;  %v2859_v3 = vld [vmem:[%s4278_s7 + $0x10] sm:$0xff]  }
 0x1e6   : > { %2781 = vmatprep.subr.bf16.mxu1 %v2859_v3 }
 0x1e7   : > { %v954_v29 = vadd.f32 %v3188_v28, %v946_v13  ;;  %v955_v37 = vadd.f32 %v3188_v28, %v947_v63 }
 0x1e8   : > { %2782 = vmatpush3.bf16.msra.mxu1 %v2859_v3 }
 0x1e9   : > { %v957_v46 = vpack.c.bf16 %v955_v37, %v954_v29 }
 0x1eb   : > { %2776 = vmatmul.mubr.msk.bf16.vlgmr.msra.gmra.mxu0 %vm660_vm0, %v957_v46 }
 0x2ab   : > { %v2777_v21 = vpop.f32.mrf.mxu0 }
 0x2ac   : > { %v1023_v27 = vadd.f32 %v2777_v21, %v961_v62 }
 0x2ad   : > { %v1014_v24 = vpop.f32.mrf.mxu0 }
 0x2ae   : > { %v1015_v40 = vadd.f32 %v1014_v24, %v961_v62  ;;  %v1031_v28 = vmax.f32 %v1023_v27, 0.0 }
 0x2af   : > { %v2778_v59 = vpop.f32.mrf.mxu0 }
 0x2b0   : > { %v1029_v30 = vmax.f32 %v1015_v40, 0.0  ;;  %v1026_v39 = vadd.f32 %v2778_v59, %v961_v62  ;;  %v3398_v0 = vadd.f32 %v1031_v28, %v3068_v20  ;;  %v1092_v40 = vrot.slane %v3106_v58, %v3131_v4 }
 0x2b1   : > { %v1017_v42 = vpop.f32.mrf.mxu0 }
 0x2b2   : > { %v3390_v1 = vadd.f32 %v1029_v30, %v3053_v11  ;;  %v1032_v31 = vmax.f32 %v1026_v39, 0.0  ;;  %v1018_v50 = vadd.f32 %v1017_v42, %v961_v62  ;;  %v639_v30 = vld [vmem:[%s4276_s5 + $0x8] sm:$0x7f]  ;;  %v1100_v39 = vrot.slane %v3111_v60, %v3131_v4 }
 0x2b4   : > { %v3393_v18 = vadd.f32 %v1032_v31, %v3060_v16  ;;  %v1030_v41 = vmax.f32 %v1018_v50, 0.0  ;;  %v1037_v43 = vsel %vm660_vm0, %v3390_v1, 0.0  ;;  %v1043_v16 = vsel %vm660_vm0, %v3398_v0, 0.0 }
 0x2b5   : > { %1038 = vadd.xlane.f32.xlu0 %v1037_v43 }
 0x2b6   : > { %v3401_v51 = vadd.f32 %v1030_v41, %v3062_v17  ;;  %v1046_v11 = vsel %vm660_vm0, %v3393_v18, 0.0  ;;  %v3431_v41 = vrot.slane %v639_v30, %v3114_v61 }
 0x2b7   : > { %1047 = vadd.xlane.f32.xlu1 %v1046_v11  ;;  %v3434_v11 = vrot.slane %v639_v30, %v3101_v56 }
 0x2b8   : > { %v1040_v32 = vsel %vm660_vm0, %v3401_v51, 0.0 }
 0x2b9   : > { %1041 = vadd.xlane.f32.xlu0 %v1040_v32  ;;  %v3437_v32 = vrot.slane %v639_v30, %v3131_v4 }
 0x2bb   : > { %1044 = vadd.xlane.f32.xlu1 %v1043_v16 }
 0x33e   : > { %v1039_v34 = vpop.xlane.xlu0 %1038 }
 0x33f   : > { %v1049_v19 = vmul.f32 0.03125, %v1039_v34 }
 0x340   : > { %v1048_v33 = vpop.xlane.xlu1 %1047 }
 0x341   : > { %v1053_v20 = vsub.f32 %v3390_v1, %v1049_v19  ;;  %v1052_v47 = vmul.f32 0.03125, %v1048_v33  ;;  %v3442_v33 = vrot.slane %v639_v30, %v3138_v7 }
 0x342   : > { %v1042_v17 = vpop.xlane.xlu0 %1041 }
 0x343   : > { %v1056_v5 = vsub.f32 %v3393_v18, %v1052_v47  ;;  %v1050_v25 = vmul.f32 0.03125, %v1042_v17  ;;  %v1057_v53 = vmul.f32 %v1053_v20, %v1053_v20  ;;  %v3445_v47 = vrot.slane %v639_v30, %v3141_v8 }
 0x344   : > { %v1045_v55 = vpop.xlane.xlu1 %1044  ;;  %v3448_v17 = vrot.slane %v639_v30, %v3146_v10 }
 0x345   : > { %v1054_v2 = vsub.f32 %v3401_v51, %v1050_v25  ;;  %v1051_v22 = vmul.f32 0.03125, %v1045_v55  ;;  %v1061_v44 = vsel %vm660_vm0, %v1057_v53, 0.0  ;;  %v1060_v54 = vmul.f32 %v1056_v5, %v1056_v5 }
 0x346   : > { %1062 = vadd.xlane.f32.xlu0 %v1061_v44  ;;  %v3455_v25 = vrot.slane %v3158_v15, %v3131_v4 }
 0x347   : > { %v1055_v49 = vsub.f32 %v3398_v0, %v1051_v22  ;;  %v1070_v23 = vsel %vm660_vm0, %v1060_v54, 0.0  ;;  %v1058_v38 = vmul.f32 %v1054_v2, %v1054_v2 }
 0x348   : > { %1071 = vadd.xlane.f32.xlu1 %v1070_v23 }
 0x349   : > { %v1064_v9 = vsel %vm660_vm0, %v1058_v38, 0.0  ;;  %v1059_v36 = vmul.f32 %v1055_v49, %v1055_v49 }
 0x34a   : > { %1065 = vadd.xlane.f32.xlu0 %v1064_v9 }
 0x34b   : > { %v1067_v45 = vsel %vm660_vm0, %v1059_v36, 0.0 }
 0x34c   : > { %1068 = vadd.xlane.f32.xlu1 %v1067_v45 }
 0x3cf   : > { %v1063_v35 = vpop.xlane.xlu0 %1062 }
 0x3d0   : > { %v1073_v14 = vmul.f32 0.03125, %v1063_v35 }
 0x3d1   : > { %v1072_v48 = vpop.xlane.xlu1 %1071 }
 0x3d2   : > { %v1077_v13 = vadd.f32 1e-05, %v1073_v14  ;;  %v1076_v63 = vmul.f32 0.03125, %v1072_v48 }
 0x3d3   : > { %v1066_v29 = vpop.xlane.xlu0 %1065 }
 0x3d4   : > { %2876 = vrsqrt.f32 %v1077_v13  ;;  %v1080_v37 = vadd.f32 1e-05, %v1076_v63  ;;  %v1074_v46 = vmul.f32 0.03125, %v1066_v29 }
 0x3d5   : > { %v1069_v62 = vpop.xlane.xlu1 %1068 }
 0x3d6   : > { %2878 = vrsqrt.f32 %v1080_v37  ;;  %v1078_v21 = vadd.f32 1e-05, %v1074_v46  ;;  %v1075_v24 = vmul.f32 0.03125, %v1069_v62 }
 0x3d8   : > { %2880 = vrsqrt.f32 %v1078_v21  ;;  %v1079_v27 = vadd.f32 1e-05, %v1075_v24 }
 0x3da   : > { %2882 = vrsqrt.f32 %v1079_v27 }
 0x3e1   : > { %v2877_v59 = vpop.eup %2876 }
 0x3e2   : > { %v1085_v42 = vmul.f32 %v2877_v59, %v1053_v20 }
 0x3e3   : > { %v2879_v28 = vpop.eup %2878 }
 0x3e4   : > { %v1093_v31 = vmul.f32 %v1092_v40, %v1085_v42  ;;  %v1088_v50 = vmul.f32 %v2879_v28, %v1056_v5  ;;  %v3451_v5 = vrot.slane %v639_v30, %v3149_v12 }
 0x3e5   : > { %v2881_v43 = vpop.eup %2880 }
 0x3e6   : > { %v3439_v16 = vadd.f32 %v1100_v39, %v1093_v31  ;;  %v1096_v34 = vmul.f32 %v1092_v40, %v1088_v50  ;;  %v1086_v19 = vmul.f32 %v2881_v43, %v1054_v2 }
 0x3e7   : > { %v2883_v20 = vpop.eup %2882 }
 0x3e8   : > { %v3457_v53 = vadd.f32 %v1100_v39, %v1096_v34  ;;  %v1094_v55 = vmul.f32 %v1092_v40, %v1086_v19  ;;  %v1087_v2 = vmul.f32 %v2883_v20, %v1055_v49  ;;  %v1109_v22 = vmul.f32 %v3431_v41, %v3439_v16 }
 0x3e9   : > { %v1113_v44 = vrot.slane %v3439_v16, 5  ;;  %v1137_v54 = vrot.slane %v3439_v16, 6  ;;  %v1161_v23 = vrot.slane %v3439_v16, 7  ;;  %v1185_v38 = vrot.slane %v3439_v16, 1 }
 0x3ea   : > { %v3465_v9 = vadd.f32 %v1100_v39, %v1094_v55  ;;  %v1095_v36 = vmul.f32 %v1092_v40, %v1087_v2  ;;  %v1116_v45 = vrot.slane %v3457_v53, 5  ;;  %v1140_v57 = vrot.slane %v3457_v53, 6 }
 0x3eb   : > { %v1164_v49 = vrot.slane %v3457_v53, 7  ;;  %v1209_v3 = vrot.slane %v3439_v16, 2  ;;  %v1233_v35 = vrot.slane %v3439_v16, 3  ;;  %v3474_v14 = vmul.f32 %v3431_v41, %v3457_v53 }
 0x3ec   : > { %v3476_v48 = vadd.f32 %v1100_v39, %v1095_v36  ;;  %v1110_v13 = vmul.f32 %v3431_v41, %v3465_v9  ;;  %v1114_v63 = vrot.slane %v3465_v9, 5  ;;  %v1120_v29 = vsel %vm742_vm1, %v1116_v45, %v1113_v44 }
 0x3ed   : > { %v1121_v37 = vsel %vm747_vm2, %v1120_v29, 0.0  ;;  %v1138_v46 = vrot.slane %v3465_v9, 6  ;;  %v1144_v62 = vsel %vm777_vm3, %v1140_v57, %v1137_v54  ;;  %v1162_v21 = vrot.slane %v3465_v9, 7 }
 0x3ee   : > { %v1119_v24 = vsel %vm742_vm1, %v1113_v44, %v1114_v63  ;;  %v1129_v27 = vmul.f32 %v3434_v11, %v1121_v37  ;;  %v1145_v40 = vsel %vm782_vm4, %v1144_v62, 0.0  ;;  %v1168_v59 = vsel %vm812_vm5, %v1164_v49, %v1161_v23 }
 0x3ef   : > { %v1130_v30 = vmul.f32 %v3434_v11, %v1119_v24  ;;  %v1143_v39 = vsel %vm777_vm3, %v1137_v54, %v1138_v46  ;;  %v1153_v42 = vmul.f32 %v3437_v32, %v1145_v40  ;;  %v1167_v28 = vsel %vm812_vm5, %v1161_v23, %v1162_v21 }
 0x3f0   : > { %v1133_v31 = vadd.f32 %v1129_v27, %v1109_v22  ;;  %v1154_v50 = vmul.f32 %v3437_v32, %v1143_v39  ;;  %v1169_v43 = vsel %vm817_vm6, %v1168_v59, 0.0  ;;  %v1178_v34 = vmul.f32 %v3442_v33, %v1167_v28 }
 0x3f1   : > { %v1134_v19 = vadd.f32 %v1130_v30, %v1110_v13  ;;  %v1177_v20 = vmul.f32 %v3442_v33, %v1169_v43  ;;  %v1186_v55 = vrot.slane %v3465_v9, 1  ;;  %v1187_v2 = vrot.slane %v3476_v48, 1 }
 0x3f2   : > { %v1157_v44 = vadd.f32 %v1153_v42, %v1133_v31  ;;  %v1210_v54 = vrot.slane %v3465_v9, 2  ;;  %v1211_v23 = vrot.slane %v3476_v48, 2  ;;  %v1234_v22 = vrot.slane %v3465_v9, 3 }
 0x3f3   : > { %v1158_v36 = vadd.f32 %v1154_v50, %v1134_v19  ;;  %v1190_v29 = vsel %vm847_vm7, %v1186_v55, %v1187_v2  ;;  %v1191_v13 = vsel %vm847_vm7, %v1185_v38, %v1186_v55  ;;  %v1235_v37 = vrot.slane %v3476_v48, 3 }
 0x3f4   : > { %v1181_v62 = vadd.f32 %v1177_v20, %v1157_v44  ;;  %v1194_v24 = vsel %vm855_vm8, %v1190_v29, 0.0  ;;  %v1201_v27 = vmul.f32 %v3445_v47, %v1191_v13  ;;  %v1214_v40 = vsel %vm882_vm9, %v1210_v54, %v1211_v23 }
 0x3f5   : > { %v1182_v59 = vadd.f32 %v1178_v34, %v1158_v36  ;;  %v1202_v30 = vmul.f32 %v3445_v47, %v1194_v24  ;;  %v1215_v39 = vsel %vm882_vm9, %v1209_v3, %v1210_v54  ;;  %v1218_v42 = vsel %vm890_vm10, %v1214_v40, 0.0 }
 0x3f6   : > { %v1205_v28 = vadd.f32 %v1201_v27, %v1181_v62  ;;  %v1225_v31 = vmul.f32 %v3448_v17, %v1215_v39  ;;  %v1226_v50 = vmul.f32 %v3448_v17, %v1218_v42  ;;  %v1238_v43 = vsel %vm917_vm11, %v1234_v22, %v1235_v37 }
 0x3f7   : > { %v1206_v34 = vadd.f32 %v1202_v30, %v1182_v59  ;;  %v1239_v19 = vsel %vm917_vm11, %v1233_v35, %v1234_v22  ;;  %v1242_v20 = vsel %vm925_vm12, %v1238_v43, 0.0  ;;  %v1111_v55 = vmul.f32 %v3431_v41, %v3476_v48 }
 0x3f8   : > { %v1229_v44 = vadd.f32 %v1225_v31, %v1205_v28  ;;  %v1249_v54 = vmul.f32 %v3451_v5, %v1239_v19  ;;  %v1250_v36 = vmul.f32 %v3451_v5, %v1242_v20  ;;  %v1115_v29 = vrot.slane %v3476_v48, 5 }
 0x3f9   : > { %v1230_v13 = vadd.f32 %v1226_v50, %v1206_v34  ;;  %v1139_v62 = vrot.slane %v3476_v48, 6  ;;  %v1163_v24 = vrot.slane %v3476_v48, 7  ;;  %v1188_v22 = vrot.slane %v3457_v53, 1 }
 0x3fa   : > { %v1253_v27 = vadd.f32 %v1249_v54, %v1229_v44  ;;  %v1117_v41 = vsel %vm742_vm1, %v1115_v29, %v1116_v45  ;;  %v1118_v40 = vsel %vm742_vm1, %v1114_v63, %v1115_v29  ;;  %v1212_v59 = vrot.slane %v3457_v53, 2 }
 0x3fb   : > { %v1254_v30 = vadd.f32 %v1250_v36, %v1230_v13  ;;  %v1123_v39 = vsel %vm747_vm2, %v1118_v40, 0.0  ;;  %v1132_v42 = vmul.f32 %v3434_v11, %v1117_v41  ;;  %v1141_v28 = vsel %vm777_vm3, %v1139_v62, %v1140_v57 }
 0x3fc   : > { %v1261_v31 = vadd.f32 %v3455_v25, %v1253_v27  ;;  %v1131_v45 = vmul.f32 %v3434_v11, %v1123_v39  ;;  %v1142_v63 = vsel %vm777_vm3, %v1138_v46, %v1139_v62  ;;  %v1156_v50 = vmul.f32 %v3437_v32, %v1141_v28 }
 0x3fd   : > { %v1262_v43 = vadd.f32 %v3455_v25, %v1254_v30  ;;  %v1136_v34 = vadd.f32 %v1132_v42, %v3474_v14  ;;  %v1147_v19 = vsel %vm782_vm4, %v1142_v63, 0.0  ;;  %v1165_v57 = vsel %vm812_vm5, %v1163_v24, %v1164_v49 }
 0x3fe   : > { %v1135_v20 = vadd.f32 %v1131_v45, %v1111_v55  ;;  %v1155_v11 = vmul.f32 %v3437_v32, %v1147_v19  ;;  %v1166_v46 = vsel %vm812_vm5, %v1162_v21, %v1163_v24  ;;  %v1180_v44 = vmul.f32 %v3442_v33, %v1165_v57 }
 0x3ff   : > { %v1265_v54 = vpack.c.bf16 %v1262_v43, %v1261_v31  ;;  %v1160_v14 = vadd.f32 %v1156_v50, %v1136_v34  ;;  %v1171_v36 = vsel %vm817_vm6, %v1166_v46, 0.0  ;;  %v1189_v29 = vsel %vm847_vm7, %v1187_v2, %v1188_v22 }
 0x400   : > { %v1159_v13 = vadd.f32 %v1155_v11, %v1135_v20  ;;  %v1179_v49 = vmul.f32 %v3442_v33, %v1171_v36  ;;  %v1192_v32 = vsel %vm847_vm7, %v1188_v22, %v1185_v38  ;;  %v1213_v55 = vsel %vm882_vm9, %v1211_v23, %v1212_v59 }
 0x401   : > { %2783 = vmatprep.mubr.msk.bf16.mxu1 %vm660_vm0, %v1265_v54  ;;  %v1184_v9 = vadd.f32 %v1180_v44, %v1160_v14  ;;  %v1196_v21 = vsel %vm855_vm8, %v1192_v32, 0.0  ;;  %v1216_v2 = vsel %vm882_vm9, %v1212_v59, %v1209_v3  ;;  %v1203_v62 = vmul.f32 %v3445_v47, %v1189_v29 }
 0x402   : > { %v1183_v33 = vadd.f32 %v1179_v49, %v1159_v13  ;;  %v1204_v24 = vmul.f32 %v3445_v47, %v1196_v21  ;;  %v1220_v38 = vsel %vm890_vm10, %v1216_v2, 0.0  ;;  %v1236_v22 = vrot.slane %v3457_v53, 3 }
 0x403   : > { %v1227_v40 = vmul.f32 %v3448_v17, %v1213_v55  ;;  %v1228_v23 = vmul.f32 %v3448_v17, %v1220_v38  ;;  %v1270_v16 = vrot.slane %v3385_v26, %v3131_v4 }
 0x404   : > { %v1207_v27 = vadd.f32 %v1203_v62, %v1183_v33  ;;  %v1208_v41 = vadd.f32 %v1204_v24, %v1184_v9  ;;  %v1237_v3 = vsel %vm917_vm11, %v1235_v37, %v1236_v22  ;;  %v1240_v47 = vsel %vm917_vm11, %v1236_v22, %v1233_v35 }
 0x405   : > { %v1244_v53 = vsel %vm925_vm12, %v1240_v47, 0.0  ;;  %v1251_v39 = vmul.f32 %v3451_v5, %v1237_v3 }
 0x406   : > { %v1231_v59 = vadd.f32 %v1227_v40, %v1207_v27  ;;  %v1232_v30 = vadd.f32 %v1228_v23, %v1208_v41  ;;  %v1252_v42 = vmul.f32 %v3451_v5, %v1244_v53 }
 0x408   : > { %v1255_v17 = vadd.f32 %v1251_v39, %v1231_v59  ;;  %v1256_v28 = vadd.f32 %v1252_v42, %v1232_v30  ;;  %v2860_v59 = vld [vmem:[%s4278_s7 + $0x28] sm:$0xff]   ;;  %v2861_v30 = vld [vmem:[%s4278_s7 + $0x20] sm:$0xff]  }
 0x409   : > { %2787 = vmatprep.subr.bf16.mxu0 %v2860_v59 }
 0x40a   : > { %v1263_v48 = vadd.f32 %v3455_v25, %v1255_v17  ;;  %v1264_v37 = vadd.f32 %v3455_v25, %v1256_v28  ;;  %2788 = vmatpush3.bf16.msra.mxu0 %v2860_v59 }
 0x40b   : > { %2789 = vmatprep.subr.bf16.mxu0 %v2861_v30 }
 0x40c   : > { %v1266_v31 = vpack.c.bf16 %v1264_v37, %v1263_v48 }
 0x40e   : > { %2784 = vmatmul.mubr.msk.bf16.vlgmr.msra.gmra.mxu1 %vm660_vm0, %v1266_v31  ;;  %2790 = vmatpush3.bf16.msra.mxu0 %v2861_v30 }
 0x4ce   : > { %v2785_v35 = vpop.f32.mrf.mxu1 }
 0x4cf   : > { %v1332_v63 = vadd.f32 %v2785_v35, %v1270_v16 }
 0x4d0   : > { %v1323_v45 = vpop.f32.mrf.mxu1 }
 0x4d1   : > { %v1324_v50 = vadd.f32 %v1323_v45, %v1270_v16  ;;  %v1340_v57 = vmax.f32 %v1332_v63, 0.0 }
 0x4d2   : > { %v2786_v43 = vpop.f32.mrf.mxu1 }
 0x4d3   : > { %v1338_v34 = vmax.f32 %v1324_v50, 0.0  ;;  %v1335_v19 = vadd.f32 %v2786_v43, %v1270_v16  ;;  %v3643_v14 = vadd.f32 %v1340_v57, %v3398_v0  ;;  %v1401_v50 = vrot.slane %v3106_v58, %v3138_v7 }
 0x4d4   : > { %v1326_v5 = vpop.f32.mrf.mxu1 }
 0x4d5   : > { %v3635_v20 = vadd.f32 %v1338_v34, %v3390_v1  ;;  %v1341_v11 = vmax.f32 %v1335_v19, 0.0  ;;  %v1327_v25 = vadd.f32 %v1326_v5, %v1270_v16  ;;  %v640_v34 = vld [vmem:[%s4276_s5 + $0x10] sm:$0x7f]  ;;  %v1409_v19 = vrot.slane %v3111_v60, %v3138_v7 }
 0x4d6   : > { %v3682_v58 = vrot.slane %v640_v34, %v3131_v4  ;;  %v3687_v60 = vrot.slane %v640_v34, %v3138_v7 }
 0x4d7   : > { %v3638_v46 = vadd.f32 %v1341_v11, %v3393_v18  ;;  %v1339_v44 = vmax.f32 %v1327_v25, 0.0  ;;  %v1346_v54 = vsel %vm660_vm0, %v3635_v20, 0.0  ;;  %v1352_v18 = vsel %vm660_vm0, %v3643_v14, 0.0 }
 0x4d8   : > { %1347 = vadd.xlane.f32.xlu0 %v1346_v54 }
 0x4d9   : > { %v3646_v36 = vadd.f32 %v1339_v44, %v3401_v51  ;;  %v1355_v1 = vsel %vm660_vm0, %v3638_v46, 0.0  ;;  %v3676_v44 = vrot.slane %v640_v34, %v3114_v61 }
 0x4da   : > { %1356 = vadd.xlane.f32.xlu1 %v1355_v1  ;;  %v3679_v1 = vrot.slane %v640_v34, %v3101_v56 }
 0x4db   : > { %v1349_v29 = vsel %vm660_vm0, %v3646_v36, 0.0 }
 0x4dc   : > { %1350 = vadd.xlane.f32.xlu0 %v1349_v29 }
 0x4de   : > { %1353 = vadd.xlane.f32.xlu1 %v1352_v18 }
 0x561   : > { %v1348_v13 = vpop.xlane.xlu0 %1347 }
 0x562   : > { %v1358_v49 = vmul.f32 0.03125, %v1348_v13 }
 0x563   : > { %v1357_v32 = vpop.xlane.xlu1 %1356 }
 0x564   : > { %v1362_v0 = vsub.f32 %v3635_v20, %v1358_v49  ;;  %v1361_v9 = vmul.f32 0.03125, %v1357_v32  ;;  %v3690_v32 = vrot.slane %v640_v34, %v3141_v8 }
 0x565   : > { %v1351_v51 = vpop.xlane.xlu0 %1350 }
 0x566   : > { %v1365_v21 = vsub.f32 %v3638_v46, %v1361_v9  ;;  %v1359_v55 = vmul.f32 0.03125, %v1351_v51  ;;  %v1366_v2 = vmul.f32 %v1362_v0, %v1362_v0  ;;  %v3696_v9 = vrot.slane %v640_v34, %v3149_v12 }
 0x567   : > { %v1354_v33 = vpop.xlane.xlu1 %1353  ;;  %v3700_v51 = vrot.slane %v3158_v15, %v3138_v7 }
 0x568   : > { %v1363_v62 = vsub.f32 %v3646_v36, %v1359_v55  ;;  %v1360_v24 = vmul.f32 0.03125, %v1354_v33  ;;  %v1370_v38 = vsel %vm660_vm0, %v1366_v2, 0.0  ;;  %v1369_v22 = vmul.f32 %v1365_v21, %v1365_v21 }
 0x569   : > { %1371 = vadd.xlane.f32.xlu0 %v1370_v38 }
 0x56a   : > { %v1364_v27 = vsub.f32 %v3643_v14, %v1360_v24  ;;  %v1379_v41 = vsel %vm660_vm0, %v1369_v22, 0.0  ;;  %v1367_v40 = vmul.f32 %v1363_v62, %v1363_v62 }
 0x56b   : > { %1380 = vadd.xlane.f32.xlu1 %v1379_v41 }
 0x56c   : > { %v1373_v23 = vsel %vm660_vm0, %v1367_v40, 0.0  ;;  %v1368_v3 = vmul.f32 %v1364_v27, %v1364_v27 }
 0x56d   : > { %1374 = vadd.xlane.f32.xlu0 %v1373_v23 }
 0x56e   : > { %v1376_v47 = vsel %vm660_vm0, %v1368_v3, 0.0 }
 0x56f   : > { %1377 = vadd.xlane.f32.xlu1 %v1376_v47 }
 0x5f2   : > { %v1372_v53 = vpop.xlane.xlu0 %1371 }
 0x5f3   : > { %v1382_v39 = vmul.f32 0.03125, %v1372_v53 }
 0x5f4   : > { %v1381_v42 = vpop.xlane.xlu1 %1380 }
 0x5f5   : > { %v1386_v17 = vadd.f32 1e-05, %v1382_v39  ;;  %v1385_v28 = vmul.f32 0.03125, %v1381_v42 }
 0x5f6   : > { %v1375_v48 = vpop.xlane.xlu0 %1374 }
 0x5f7   : > { %2884 = vrsqrt.f32 %v1386_v17  ;;  %v1389_v37 = vadd.f32 1e-05, %v1385_v28  ;;  %v1383_v31 = vmul.f32 0.03125, %v1375_v48 }
 0x5f8   : > { %v1378_v16 = vpop.xlane.xlu1 %1377 }
 0x5f9   : > { %2886 = vrsqrt.f32 %v1389_v37  ;;  %v1387_v35 = vadd.f32 1e-05, %v1383_v31  ;;  %v1384_v45 = vmul.f32 0.03125, %v1378_v16 }
 0x5fb   : > { %2888 = vrsqrt.f32 %v1387_v35  ;;  %v1388_v63 = vadd.f32 1e-05, %v1384_v45 }
 0x5fd   : > { %2890 = vrsqrt.f32 %v1388_v63 }
 0x604   : > { %v2885_v43 = vpop.eup %2884 }
 0x605   : > { %v1394_v5 = vmul.f32 %v2885_v43, %v1362_v0  ;;  %v3693_v0 = vrot.slane %v640_v34, %v3146_v10 }
 0x606   : > { %v2887_v57 = vpop.eup %2886 }
 0x607   : > { %v1402_v11 = vmul.f32 %v1401_v50, %v1394_v5  ;;  %v1397_v25 = vmul.f32 %v2887_v57, %v1365_v21 }
 0x608   : > { %v2889_v54 = vpop.eup %2888 }
 0x609   : > { %v3684_v29 = vadd.f32 %v1409_v19, %v1402_v11  ;;  %v1405_v18 = vmul.f32 %v1401_v50, %v1397_v25  ;;  %v1395_v13 = vmul.f32 %v2889_v54, %v1363_v62 }
 0x60a   : > { %v2891_v49 = vpop.eup %2890 }
 0x60b   : > { %v3702_v21 = vadd.f32 %v1409_v19, %v1405_v18  ;;  %v1403_v55 = vmul.f32 %v1401_v50, %v1395_v13  ;;  %v1396_v2 = vmul.f32 %v2891_v49, %v1364_v27  ;;  %v1418_v33 = vmul.f32 %v3676_v44, %v3684_v29 }
 0x60c   : > { %v1422_v62 = vrot.slane %v3684_v29, 5  ;;  %v1446_v24 = vrot.slane %v3684_v29, 6  ;;  %v1470_v38 = vrot.slane %v3684_v29, 7  ;;  %v1494_v22 = vrot.slane %v3684_v29, 1 }
 0x60d   : > { %v3710_v41 = vadd.f32 %v1409_v19, %v1403_v55  ;;  %v1404_v40 = vmul.f32 %v1401_v50, %v1396_v2  ;;  %v1425_v15 = vrot.slane %v3702_v21, 5  ;;  %v1449_v23 = vrot.slane %v3702_v21, 6 }
 0x60e   : > { %v1473_v27 = vrot.slane %v3702_v21, 7  ;;  %v1518_v3 = vrot.slane %v3684_v29, 2  ;;  %v1542_v47 = vrot.slane %v3684_v29, 3  ;;  %v3719_v59 = vmul.f32 %v3676_v44, %v3702_v21 }
 0x60f   : > { %v3721_v30 = vadd.f32 %v1409_v19, %v1404_v40  ;;  %v1419_v53 = vmul.f32 %v3676_v44, %v3710_v41  ;;  %v1423_v39 = vrot.slane %v3710_v41, 5  ;;  %v1429_v42 = vsel %vm742_vm1, %v1425_v15, %v1422_v62 }
 0x610   : > { %v1430_v17 = vsel %vm747_vm2, %v1429_v42, 0.0  ;;  %v1447_v28 = vrot.slane %v3710_v41, 6  ;;  %v1453_v48 = vsel %vm777_vm3, %v1449_v23, %v1446_v24  ;;  %v1471_v37 = vrot.slane %v3710_v41, 7 }
 0x611   : > { %v1428_v31 = vsel %vm742_vm1, %v1422_v62, %v1423_v39  ;;  %v1438_v16 = vmul.f32 %v3679_v1, %v1430_v17  ;;  %v1454_v35 = vsel %vm782_vm4, %v1453_v48, 0.0  ;;  %v1477_v45 = vsel %vm812_vm5, %v1473_v27, %v1470_v38 }
 0x612   : > { %v1439_v63 = vmul.f32 %v3679_v1, %v1428_v31  ;;  %v1452_v50 = vsel %vm777_vm3, %v1446_v24, %v1447_v28  ;;  %v1462_v43 = vmul.f32 %v3682_v58, %v1454_v35  ;;  %v1476_v34 = vsel %vm812_vm5, %v1470_v38, %v1471_v37 }
 0x613   : > { %v1442_v19 = vadd.f32 %v1438_v16, %v1418_v33  ;;  %v1463_v5 = vmul.f32 %v3682_v58, %v1452_v50  ;;  %v1478_v57 = vsel %vm817_vm6, %v1477_v45, 0.0  ;;  %v1487_v11 = vmul.f32 %v3687_v60, %v1476_v34 }
 0x614   : > { %v1443_v25 = vadd.f32 %v1439_v63, %v1419_v53  ;;  %v1486_v54 = vmul.f32 %v3687_v60, %v1478_v57  ;;  %v1495_v18 = vrot.slane %v3710_v41, 1  ;;  %v1496_v13 = vrot.slane %v3721_v30, 1 }
 0x615   : > { %v1466_v49 = vadd.f32 %v1462_v43, %v1442_v19  ;;  %v1519_v55 = vrot.slane %v3710_v41, 2  ;;  %v1520_v2 = vrot.slane %v3721_v30, 2  ;;  %v1543_v33 = vrot.slane %v3710_v41, 3 }
 0x616   : > { %v1467_v62 = vadd.f32 %v1463_v5, %v1443_v25  ;;  %v1499_v24 = vsel %vm847_vm7, %v1495_v18, %v1496_v13  ;;  %v1500_v38 = vsel %vm847_vm7, %v1494_v22, %v1495_v18  ;;  %v1544_v40 = vrot.slane %v3721_v30, 3 }
 0x617   : > { %v1490_v53 = vadd.f32 %v1486_v54, %v1466_v49  ;;  %v1503_v42 = vsel %vm855_vm8, %v1499_v24, 0.0  ;;  %v1510_v17 = vmul.f32 %v3690_v32, %v1500_v38  ;;  %v1523_v48 = vsel %vm882_vm9, %v1519_v55, %v1520_v2 }
 0x618   : > { %v1491_v31 = vadd.f32 %v1487_v11, %v1467_v62  ;;  %v1511_v16 = vmul.f32 %v3690_v32, %v1503_v42  ;;  %v1524_v35 = vsel %vm882_vm9, %v1518_v3, %v1519_v55  ;;  %v1527_v45 = vsel %vm890_vm10, %v1523_v48, 0.0 }
 0x619   : > { %v1514_v63 = vadd.f32 %v1510_v17, %v1490_v53  ;;  %v1534_v50 = vmul.f32 %v3693_v0, %v1524_v35  ;;  %v1535_v43 = vmul.f32 %v3693_v0, %v1527_v45  ;;  %v1547_v34 = vsel %vm917_vm11, %v1543_v33, %v1544_v40 }
 0x61a   : > { %v1515_v19 = vadd.f32 %v1511_v16, %v1491_v31  ;;  %v1548_v5 = vsel %vm917_vm11, %v1542_v47, %v1543_v33  ;;  %v1551_v57 = vsel %vm925_vm12, %v1547_v34, 0.0  ;;  %v1420_v11 = vmul.f32 %v3676_v44, %v3721_v30 }
 0x61b   : > { %v1538_v25 = vadd.f32 %v1534_v50, %v1514_v63  ;;  %v1558_v54 = vmul.f32 %v3696_v9, %v1548_v5  ;;  %v1559_v18 = vmul.f32 %v3696_v9, %v1551_v57  ;;  %v1424_v49 = vrot.slane %v3721_v30, 5 }
 0x61c   : > { %v1539_v55 = vadd.f32 %v1535_v43, %v1515_v19  ;;  %v1448_v62 = vrot.slane %v3721_v30, 6  ;;  %v1472_v24 = vrot.slane %v3721_v30, 7  ;;  %v1497_v33 = vrot.slane %v3702_v21, 1 }
 0x61d   : > { %v1562_v38 = vadd.f32 %v1558_v54, %v1538_v25  ;;  %v1426_v44 = vsel %vm742_vm1, %v1424_v49, %v1425_v15  ;;  %v1427_v53 = vsel %vm742_vm1, %v1423_v39, %v1424_v49  ;;  %v1521_v42 = vrot.slane %v3702_v21, 2 }
 0x61e   : > { %v1563_v17 = vadd.f32 %v1559_v18, %v1539_v55  ;;  %v1432_v48 = vsel %vm747_vm2, %v1427_v53, 0.0  ;;  %v1441_v31 = vmul.f32 %v3679_v1, %v1426_v44  ;;  %v1450_v16 = vsel %vm777_vm3, %v1448_v62, %v1449_v23 }
 0x61f   : > { %v1570_v35 = vadd.f32 %v3700_v51, %v1562_v38  ;;  %v1440_v15 = vmul.f32 %v3679_v1, %v1432_v48  ;;  %v1451_v39 = vsel %vm777_vm3, %v1447_v28, %v1448_v62  ;;  %v1465_v45 = vmul.f32 %v3682_v58, %v1450_v16 }
 0x620   : > { %v1571_v63 = vadd.f32 %v3700_v51, %v1563_v17  ;;  %v1445_v50 = vadd.f32 %v1441_v31, %v3719_v59  ;;  %v1456_v43 = vsel %vm782_vm4, %v1451_v39, 0.0  ;;  %v1474_v23 = vsel %vm812_vm5, %v1472_v24, %v1473_v27 }
 0x621   : > { %v1444_v34 = vadd.f32 %v1440_v15, %v1420_v11  ;;  %v1464_v1 = vmul.f32 %v3682_v58, %v1456_v43  ;;  %v1475_v28 = vsel %vm812_vm5, %v1471_v37, %v1472_v24  ;;  %v1489_v19 = vmul.f32 %v3687_v60, %v1474_v23 }
 0x622   : > { %v1574_v5 = vpack.c.bf16 %v1571_v63, %v1570_v35  ;;  %v1469_v59 = vadd.f32 %v1465_v45, %v1445_v50  ;;  %v1480_v57 = vsel %vm817_vm6, %v1475_v28, 0.0  ;;  %v1498_v25 = vsel %vm847_vm7, %v1496_v13, %v1497_v33 }
 0x623   : > { %v1468_v54 = vadd.f32 %v1464_v1, %v1444_v34  ;;  %v1488_v27 = vmul.f32 %v3687_v60, %v1480_v57  ;;  %v1501_v58 = vsel %vm847_vm7, %v1497_v33, %v1494_v22  ;;  %v1522_v11 = vsel %vm882_vm9, %v1520_v2, %v1521_v42 }
 0x624   : > { %2791 = vmatprep.mubr.msk.bf16.mxu0 %vm660_vm0, %v1574_v5  ;;  %v1493_v41 = vadd.f32 %v1489_v19, %v1469_v59  ;;  %v1505_v37 = vsel %vm855_vm8, %v1501_v58, 0.0  ;;  %v1525_v13 = vsel %vm882_vm9, %v1521_v42, %v1518_v3  ;;  %v1512_v18 = vmul.f32 %v3690_v32, %v1498_v25 }
 0x625   : > { %v1492_v60 = vadd.f32 %v1488_v27, %v1468_v54  ;;  %v1513_v49 = vmul.f32 %v3690_v32, %v1505_v37  ;;  %v1529_v22 = vsel %vm890_vm10, %v1525_v13, 0.0  ;;  %v1545_v55 = vrot.slane %v3702_v21, 3 }
 0x626   : > { %v1536_v33 = vmul.f32 %v3693_v0, %v1522_v11  ;;  %v1537_v2 = vmul.f32 %v3693_v0, %v1529_v22  ;;  %v1579_v29 = vrot.slane %v3385_v26, %v3138_v7 }
 0x627   : > { %v1516_v62 = vadd.f32 %v1512_v18, %v1492_v60  ;;  %v1517_v24 = vadd.f32 %v1513_v49, %v1493_v41  ;;  %v1546_v3 = vsel %vm917_vm11, %v1544_v40, %v1545_v55  ;;  %v1549_v32 = vsel %vm917_vm11, %v1545_v55, %v1542_v47 }
 0x628   : > { %v1553_v21 = vsel %vm925_vm12, %v1549_v32, 0.0  ;;  %v1560_v53 = vmul.f32 %v3696_v9, %v1546_v3 }
 0x629   : > { %v1540_v38 = vadd.f32 %v1536_v33, %v1516_v62  ;;  %v1541_v44 = vadd.f32 %v1537_v2, %v1517_v24  ;;  %v1561_v42 = vmul.f32 %v3696_v9, %v1553_v21  ;;  %v2862_v33 = vld [vmem:[%s4278_s7 + $0x38] sm:$0xff]   ;;  %v2863_v2 = vld [vmem:[%s4278_s7 + $0x30] sm:$0xff]  }
 0x62a   : > { %2795 = vmatprep.subr.bf16.mxu1 %v2862_v33 }
 0x62b   : > { %v1564_v0 = vadd.f32 %v1560_v53, %v1540_v38  ;;  %v1565_v17 = vadd.f32 %v1561_v42, %v1541_v44  ;;  %2796 = vmatpush3.bf16.msra.mxu1 %v2862_v33 }
 0x62c   : > { %2797 = vmatprep.subr.bf16.mxu1 %v2863_v2 }
 0x62d   : > { %v1572_v30 = vadd.f32 %v3700_v51, %v1564_v0  ;;  %v1573_v40 = vadd.f32 %v3700_v51, %v1565_v17 }
 0x62f   : > { %v1575_v48 = vpack.c.bf16 %v1573_v40, %v1572_v30  ;;  %2798 = vmatpush3.bf16.msra.mxu1 %v2863_v2 }
 0x631   : > { %2792 = vmatmul.mubr.msk.bf16.vlgmr.msra.gmra.mxu0 %vm660_vm0, %v1575_v48 }
 0x6f1   : > { %v2793_v47 = vpop.f32.mrf.mxu0 }
 0x6f2   : > { %v1641_v16 = vadd.f32 %v2793_v47, %v1579_v29 }
 0x6f3   : > { %v1632_v31 = vpop.f32.mrf.mxu0 }
 0x6f4   : > { %v1633_v35 = vadd.f32 %v1632_v31, %v1579_v29  ;;  %v1649_v63 = vmax.f32 %v1641_v16, 0.0  ;;  %v641_v16 = vld [vmem:[%s4276_s5 + $0x18] sm:$0x7f] }
 0x6f5   : > { %v2794_v15 = vpop.f32.mrf.mxu0 }
 0x6f6   : > { %v1647_v39 = vmax.f32 %v1633_v35, 0.0  ;;  %v1644_v45 = vadd.f32 %v2794_v15, %v1579_v29  ;;  %v3888_v1 = vadd.f32 %v1649_v63, %v3643_v14  ;;  %v2933_v35 = vld [vmem:[%s4275_s4] sm:$0xf] }
 0x6f7   : > { %v1635_v9 = vpop.f32.mrf.mxu0  ;;  %v1718_v15 = vrot.slane %v2933_v35, %v3114_v61 }
 0x6f8   : > { %v3880_v50 = vadd.f32 %v1647_v39, %v3635_v20  ;;  %v1650_v43 = vmax.f32 %v1644_v45, 0.0  ;;  %v1636_v51 = vadd.f32 %v1635_v9, %v1579_v29  ;;  %v2932_v29 = vld [vmem:[%s4274_s3] sm:$0xf] }
 0x6f9   : > { %v1710_v47 = vrot.slane %v2932_v29, %v3114_v61 }
 0x6fa   : > { %v3883_v23 = vadd.f32 %v1650_v43, %v3638_v46  ;;  %v1648_v34 = vmax.f32 %v1636_v51, 0.0  ;;  %v1655_v26 = vsel %vm660_vm0, %v3880_v50, 0.0  ;;  %v1661_v46 = vsel %vm660_vm0, %v3888_v1, 0.0 }
 0x6fb   : > { %1656 = vadd.xlane.f32.xlu0 %v1655_v26  ;;  %v3925_v43 = vrot.slane %v641_v16, %v3114_v61  ;;  %v3931_v26 = vrot.slane %v641_v16, %v3131_v4  ;;  %v2934_v4 = vld [vmem:[%s4277_s6] sm:$0xf] }
 0x6fc   : > { %v3891_v28 = vadd.f32 %v1648_v34, %v3646_v36  ;;  %v1664_v20 = vsel %vm660_vm0, %v3883_v23, 0.0  ;;  %v3928_v34 = vrot.slane %v641_v16, %v3101_v56 }
 0x6fd   : > { %1665 = vadd.xlane.f32.xlu1 %v1664_v20 }
 0x6fe   : > { %v1658_v19 = vsel %vm660_vm0, %v3891_v28, 0.0 }
 0x6ff   : > { %1659 = vadd.xlane.f32.xlu0 %v1658_v19 }
 0x701   : > { %1662 = vadd.xlane.f32.xlu1 %v1661_v46 }
 0x784   : > { %v1657_v5 = vpop.xlane.xlu0 %1656 }
 0x785   : > { %v1667_v59 = vmul.f32 0.03125, %v1657_v5  ;;  %v3936_v5 = vrot.slane %v641_v16, %v3138_v7 }
 0x786   : > { %v1666_v57 = vpop.xlane.xlu1 %1665 }
 0x787   : > { %v1671_v14 = vsub.f32 %v3880_v50, %v1667_v59  ;;  %v1670_v25 = vmul.f32 0.03125, %v1666_v57  ;;  %v3939_v57 = vrot.slane %v641_v16, %v3141_v8 }
 0x788   : > { %v1660_v36 = vpop.xlane.xlu0 %1659 }
 0x789   : > { %v1674_v54 = vsub.f32 %v3883_v23, %v1670_v25  ;;  %v1668_v27 = vmul.f32 0.03125, %v1660_v36  ;;  %v1675_v58 = vmul.f32 %v1671_v14, %v1671_v14  ;;  %v3945_v25 = vrot.slane %v641_v16, %v3149_v12 }
 0x78a   : > { %v1663_v41 = vpop.xlane.xlu1 %1662  ;;  %v3951_v36 = vrot.slane %v2934_v4, %v3114_v61 }
 0x78b   : > { %v1672_v37 = vsub.f32 %v3891_v28, %v1668_v27  ;;  %v1669_v11 = vmul.f32 0.03125, %v1663_v41  ;;  %v1679_v13 = vsel %vm660_vm0, %v1675_v58, 0.0  ;;  %v1678_v60 = vmul.f32 %v1674_v54, %v1674_v54 }
 0x78c   : > { %1680 = vadd.xlane.f32.xlu0 %v1679_v13 }
 0x78d   : > { %v1673_v18 = vsub.f32 %v3888_v1, %v1669_v11  ;;  %v1688_v49 = vsel %vm660_vm0, %v1678_v60, 0.0  ;;  %v1676_v22 = vmul.f32 %v1672_v37, %v1672_v37 }
 0x78e   : > { %1689 = vadd.xlane.f32.xlu1 %v1688_v49 }
 0x78f   : > { %v1682_v55 = vsel %vm660_vm0, %v1676_v22, 0.0  ;;  %v1677_v62 = vmul.f32 %v1673_v18, %v1673_v18 }
 0x790   : > { %1683 = vadd.xlane.f32.xlu0 %v1682_v55 }
 0x791   : > { %v1685_v24 = vsel %vm660_vm0, %v1677_v62, 0.0 }
 0x792   : > { %1686 = vadd.xlane.f32.xlu1 %v1685_v24 }
 0x815   : > { %v1681_v3 = vpop.xlane.xlu0 %1680 }
 0x816   : > { %v1691_v32 = vmul.f32 0.03125, %v1681_v3 }
 0x817   : > { %v1690_v38 = vpop.xlane.xlu1 %1689 }
 0x818   : > { %v1695_v44 = vadd.f32 1e-05, %v1691_v32  ;;  %v1694_v21 = vmul.f32 0.03125, %v1690_v38 }
 0x819   : > { %v1684_v53 = vpop.xlane.xlu0 %1683 }
 0x81a   : > { %2892 = vrsqrt.f32 %v1695_v44  ;;  %v1698_v42 = vadd.f32 1e-05, %v1694_v21  ;;  %v1692_v0 = vmul.f32 0.03125, %v1684_v53 }
 0x81b   : > { %v1687_v17 = vpop.xlane.xlu1 %1686 }
 0x81c   : > { %2894 = vrsqrt.f32 %v1698_v42  ;;  %v1696_v30 = vadd.f32 1e-05, %v1692_v0  ;;  %v1693_v40 = vmul.f32 0.03125, %v1687_v17 }
 0x81e   : > { %2896 = vrsqrt.f32 %v1696_v30  ;;  %v1697_v48 = vadd.f32 1e-05, %v1693_v40 }
 0x820   : > { %2898 = vrsqrt.f32 %v1697_v48 }
 0x827   : > { %v2893_v31 = vpop.eup %2892 }
 0x828   : > { %v1703_v39 = vmul.f32 %v2893_v31, %v1671_v14  ;;  %v3942_v14 = vrot.slane %v641_v16, %v3146_v10 }
 0x829   : > { %v2895_v45 = vpop.eup %2894 }
 0x82a   : > { %v1711_v9 = vmul.f32 %v1710_v47, %v1703_v39  ;;  %v1706_v63 = vmul.f32 %v2895_v45, %v1674_v54 }
 0x82b   : > { %v2897_v51 = vpop.eup %2896 }
 0x82c   : > { %v3933_v20 = vadd.f32 %v1718_v15, %v1711_v9  ;;  %v1714_v19 = vmul.f32 %v1710_v47, %v1706_v63  ;;  %v1704_v46 = vmul.f32 %v2897_v51, %v1672_v37 }
 0x82d   : > { %v2899_v59 = vpop.eup %2898 }
 0x82e   : > { %v3953_v54 = vadd.f32 %v1718_v15, %v1714_v19  ;;  %v1712_v7 = vmul.f32 %v1710_v47, %v1704_v46  ;;  %v1705_v27 = vmul.f32 %v2899_v59, %v1673_v18  ;;  %v1727_v8 = vmul.f32 %v3925_v43, %v3933_v20 }
 0x82f   : > { %v1731_v10 = vrot.slane %v3933_v20, 5  ;;  %v1755_v58 = vrot.slane %v3933_v20, 6  ;;  %v1779_v12 = vrot.slane %v3933_v20, 7  ;;  %v1803_v41 = vrot.slane %v3933_v20, 1 }
 0x830   : > { %v3961_v37 = vadd.f32 %v1718_v15, %v1712_v7  ;;  %v1713_v11 = vmul.f32 %v1710_v47, %v1705_v27  ;;  %v1734_v13 = vrot.slane %v3953_v54, 5  ;;  %v1758_v60 = vrot.slane %v3953_v54, 6 }
 0x831   : > { %v1782_v18 = vrot.slane %v3953_v54, 7  ;;  %v1827_v49 = vrot.slane %v3933_v20, 2  ;;  %v1851_v22 = vrot.slane %v3933_v20, 3  ;;  %v3970_v55 = vmul.f32 %v3925_v43, %v3953_v54 }
 0x832   : > { %v3972_v62 = vadd.f32 %v1718_v15, %v1713_v11  ;;  %v1728_v24 = vmul.f32 %v3925_v43, %v3961_v37  ;;  %v1732_v33 = vrot.slane %v3961_v37, 5  ;;  %v1738_v2 = vsel %vm742_vm1, %v1734_v13, %v1731_v10 }
 0x833   : > { %v1739_v3 = vsel %vm747_vm2, %v1738_v2, 0.0  ;;  %v1756_v32 = vrot.slane %v3961_v37, 6  ;;  %v1762_v38 = vsel %vm777_vm3, %v1758_v60, %v1755_v58  ;;  %v1780_v44 = vrot.slane %v3961_v37, 7 }
 0x834   : > { %v1737_v21 = vsel %vm742_vm1, %v1731_v10, %v1732_v33  ;;  %v1747_v53 = vmul.f32 %v3928_v34, %v1739_v3  ;;  %v1763_v42 = vsel %vm782_vm4, %v1762_v38, 0.0  ;;  %v1786_v0 = vsel %vm812_vm5, %v1782_v18, %v1779_v12 }
 0x835   : > { %v1748_v17 = vmul.f32 %v3928_v34, %v1737_v21  ;;  %v1761_v30 = vsel %vm777_vm3, %v1755_v58, %v1756_v32  ;;  %v1771_v40 = vmul.f32 %v3931_v26, %v1763_v42  ;;  %v1785_v48 = vsel %vm812_vm5, %v1779_v12, %v1780_v44 }
 0x836   : > { %v1751_v29 = vadd.f32 %v1747_v53, %v1727_v8  ;;  %v1772_v47 = vmul.f32 %v3931_v26, %v1761_v30  ;;  %v1787_v31 = vsel %vm817_vm6, %v1786_v0, 0.0  ;;  %v1796_v16 = vmul.f32 %v3936_v5, %v1785_v48 }
 0x837   : > { %v1752_v35 = vadd.f32 %v1748_v17, %v1728_v24  ;;  %v1795_v15 = vmul.f32 %v3936_v5, %v1787_v31  ;;  %v1804_v39 = vrot.slane %v3961_v37, 1  ;;  %v1805_v45 = vrot.slane %v3972_v62, 1 }
 0x838   : > { %v1775_v9 = vadd.f32 %v1771_v40, %v1751_v29  ;;  %v1828_v63 = vrot.slane %v3961_v37, 2  ;;  %v1829_v51 = vrot.slane %v3972_v62, 2  ;;  %v1852_v19 = vrot.slane %v3961_v37, 3 }
 0x839   : > { %v1776_v46 = vadd.f32 %v1772_v47, %v1752_v35  ;;  %v1808_v59 = vsel %vm847_vm7, %v1804_v39, %v1805_v45  ;;  %v1809_v4 = vsel %vm847_vm7, %v1803_v41, %v1804_v39  ;;  %v1853_v7 = vrot.slane %v3972_v62, 3 }
 0x83a   : > { %v1799_v27 = vadd.f32 %v1795_v15, %v1775_v9  ;;  %v1812_v8 = vsel %vm855_vm8, %v1808_v59, 0.0  ;;  %v1819_v10 = vmul.f32 %v3939_v57, %v1809_v4  ;;  %v1832_v58 = vsel %vm882_vm9, %v1828_v63, %v1829_v51 }
 0x83b   : > { %v1800_v12 = vadd.f32 %v1796_v16, %v1776_v46  ;;  %v1820_v11 = vmul.f32 %v3939_v57, %v1812_v8  ;;  %v1833_v24 = vsel %vm882_vm9, %v1827_v49, %v1828_v63  ;;  %v1836_v2 = vsel %vm890_vm10, %v1832_v58, 0.0 }
 0x83c   : > { %v1823_v3 = vadd.f32 %v1819_v10, %v1799_v27  ;;  %v1843_v38 = vmul.f32 %v3942_v14, %v1833_v24  ;;  %v1844_v21 = vmul.f32 %v3942_v14, %v1836_v2  ;;  %v1856_v53 = vsel %vm917_vm11, %v1852_v19, %v1853_v7 }
 0x83d   : > { %v1824_v42 = vadd.f32 %v1820_v11, %v1800_v12  ;;  %v1857_v0 = vsel %vm917_vm11, %v1851_v22, %v1852_v19  ;;  %v1860_v17 = vsel %vm925_vm12, %v1856_v53, 0.0  ;;  %v1729_v30 = vmul.f32 %v3925_v43, %v3972_v62 }
 0x83e   : > { %v1847_v40 = vadd.f32 %v1843_v38, %v1823_v3  ;;  %v1867_v48 = vmul.f32 %v3945_v25, %v1857_v0  ;;  %v1868_v29 = vmul.f32 %v3945_v25, %v1860_v17  ;;  %v1733_v47 = vrot.slane %v3972_v62, 5 }
 0x83f   : > { %v1848_v31 = vadd.f32 %v1844_v21, %v1824_v42  ;;  %v1757_v16 = vrot.slane %v3972_v62, 6  ;;  %v1781_v35 = vrot.slane %v3972_v62, 7  ;;  %v1806_v15 = vrot.slane %v3953_v54, 1 }
 0x840   : > { %v1871_v39 = vadd.f32 %v1867_v48, %v1847_v40  ;;  %v1735_v43 = vsel %vm742_vm1, %v1733_v47, %v1734_v13  ;;  %v1736_v9 = vsel %vm742_vm1, %v1732_v33, %v1733_v47  ;;  %v1830_v63 = vrot.slane %v3953_v54, 2 }
 0x841   : > { %v1872_v19 = vadd.f32 %v1868_v29, %v1848_v31  ;;  %v1741_v46 = vsel %vm747_vm2, %v1736_v9, 0.0  ;;  %v1750_v59 = vmul.f32 %v3928_v34, %v1735_v43  ;;  %v1759_v4 = vsel %vm777_vm3, %v1757_v16, %v1758_v60 }
 0x842   : > { %v1879_v27 = vadd.f32 %v3951_v36, %v1871_v39  ;;  %v1749_v13 = vmul.f32 %v3928_v34, %v1741_v46  ;;  %v1760_v33 = vsel %vm777_vm3, %v1756_v32, %v1757_v16  ;;  %v1774_v8 = vmul.f32 %v3931_v26, %v1759_v4 }
 0x843   : > { %v1880_v10 = vadd.f32 %v3951_v36, %v1872_v19  ;;  %v1754_v58 = vadd.f32 %v1750_v59, %v3970_v55  ;;  %v1765_v12 = vsel %vm782_vm4, %v1760_v33, 0.0  ;;  %v1783_v60 = vsel %vm812_vm5, %v1781_v35, %v1782_v18 }
 0x844   : > { %v1753_v11 = vadd.f32 %v1749_v13, %v1729_v30  ;;  %v1773_v34 = vmul.f32 %v3931_v26, %v1765_v12  ;;  %v1784_v32 = vsel %vm812_vm5, %v1780_v44, %v1781_v35  ;;  %v1798_v24 = vmul.f32 %v3936_v5, %v1783_v60 }
 0x845   : > { %v1883_v2 = vpack.c.bf16 %v1880_v10, %v1879_v27  ;;  %v1778_v55 = vadd.f32 %v1774_v8, %v1754_v58  ;;  %v1789_v3 = vsel %vm817_vm6, %v1784_v32, 0.0  ;;  %v1807_v38 = vsel %vm847_vm7, %v1805_v45, %v1806_v15 }
 0x846   : > { %v1777_v21 = vadd.f32 %v1773_v34, %v1753_v11  ;;  %v1797_v18 = vmul.f32 %v3936_v5, %v1789_v3  ;;  %v1810_v26 = vsel %vm847_vm7, %v1806_v15, %v1803_v41  ;;  %v1831_v53 = vsel %vm882_vm9, %v1829_v51, %v1830_v63 }
 0x847   : > { %2799 = vmatprep.mubr.msk.bf16.mxu1 %vm660_vm0, %v1883_v2  ;;  %v1802_v37 = vadd.f32 %v1798_v24, %v1778_v55  ;;  %v1814_v44 = vsel %vm855_vm8, %v1810_v26, 0.0  ;;  %v1834_v45 = vsel %vm882_vm9, %v1830_v63, %v1827_v49  ;;  %v1821_v42 = vmul.f32 %v3939_v57, %v1807_v38 }
 0x848   : > { %v1801_v5 = vadd.f32 %v1797_v18, %v1777_v21  ;;  %v1822_v0 = vmul.f32 %v3939_v57, %v1814_v44  ;;  %v1838_v41 = vsel %vm890_vm10, %v1834_v45, 0.0  ;;  %v1854_v17 = vrot.slane %v3953_v54, 3 }
 0x849   : > { %v1845_v48 = vmul.f32 %v3942_v14, %v1831_v53  ;;  %v1846_v51 = vmul.f32 %v3942_v14, %v1838_v41  ;;  %vm2235_vm2 = vcmask 130048  }
 0x84a   : > { %v1825_v30 = vadd.f32 %v1821_v42, %v1801_v5  ;;  %v1826_v40 = vadd.f32 %v1822_v0, %v1802_v37  ;;  %v1855_v49 = vsel %vm917_vm11, %v1853_v7, %v1854_v17  ;;  %v1858_v57 = vsel %vm917_vm11, %v1854_v17, %v1851_v22  ;;  %v2864_v5 = vld [vmem:[%s4282_s11 + $0x8] sm:$0xff]   ;;  %v2865_v42 = vld [vmem:[%s4282_s11] sm:$0xff]  }
 0x84b   : > { %v1862_v54 = vsel %vm925_vm12, %v1858_v57, 0.0  ;;  %v1869_v31 = vmul.f32 %v3945_v25, %v1855_v49  ;;  %2803 = vmatprep.subr.bf16.mxu0 %v2864_v5 }
 0x84c   : > { %v1849_v29 = vadd.f32 %v1845_v48, %v1825_v30  ;;  %v1850_v47 = vadd.f32 %v1846_v51, %v1826_v40  ;;  %v1870_v16 = vmul.f32 %v3945_v25, %v1862_v54  ;;  %2804 = vmatpush3.bf16.msra.mxu0 %v2864_v5 }
 0x84d   : > { %2805 = vmatprep.subr.bf16.mxu0 %v2865_v42 }
 0x84e   : > { %v1873_v14 = vadd.f32 %v1869_v31, %v1849_v29  ;;  %v1874_v35 = vadd.f32 %v1870_v16, %v1850_v47 }
 0x850   : > { %v1881_v62 = vadd.f32 %v3951_v36, %v1873_v14  ;;  %v1882_v7 = vadd.f32 %v3951_v36, %v1874_v35  ;;  %2806 = vmatpush3.bf16.msra.mxu0 %v2865_v42  ;;  %v2714_v14 = vld [vmem:[%s4280_s9] ss:$0 sm:$0xff] }
 0x852   : > { %v1884_v15 = vpack.c.bf16 %v1882_v7, %v1881_v62 }
 0x854   : > { %2800 = vmatmul.mubr.msk.bf16.vlgmr.msra.gmra.mxu1 %vm660_vm0, %v1884_v15 }
 0x914   : > { %v2801_v20 = vpop.f32.mrf.mxu1 }
 0x915   : > { %v1950_v22 = vadd.f32 %v2801_v20, %v1888_v6 }
 0x916   : > { %v1941_v39 = vpop.f32.mrf.mxu1 }
 0x917   : > { %v1942_v43 = vadd.f32 %v1941_v39, %v1888_v6  ;;  %v1958_v9 = vmax.f32 %v1950_v22, 0.0 }
 0x918   : > { %v2802_v25 = vpop.f32.mrf.mxu1 }
 0x919   : > { %v1956_v63 = vmax.f32 %v1942_v43, 0.0  ;;  %v1953_v19 = vadd.f32 %v2802_v25, %v1888_v6  ;;  %v4136_v4 = vadd.f32 %v1958_v9, %v3888_v1 }
 0x91a   : > { %v1944_v46 = vpop.f32.mrf.mxu1 }
 0x91b   : > { %v4133_v36 = vadd.f32 %v1956_v63, %v3880_v50  ;;  %v1945_v59 = vadd.f32 %v1944_v46, %v1888_v6  ;;  %v1959_v27 = vmax.f32 %v1953_v19, 0.0  ;;  %v1972_v10 = vsel %vm660_vm0, %v4136_v4, 0.0  ;;  %v2715_v6 = vld [vmem:[%s4281_s10] ss:$0 sm:$0xff] }
 0x91d   : > { %v1957_v13 = vmax.f32 %v1945_v59, 0.0  ;;  %v1966_v61 = vsel %vm660_vm0, %v4133_v36, 0.0  ;;  %v4144_v8 = vadd.f32 %v1959_v27, %v3883_v23 }
 0x91e   : > { %1967 = vadd.xlane.f32.xlu0 %v1966_v61 }
 0x91f   : > { %v4141_v33 = vadd.f32 %v1957_v13, %v3891_v28  ;;  %v1975_v1 = vsel %vm660_vm0, %v4144_v8, 0.0  ;;  %v2944_v13 = vmov 0.0  }
 0x920   : > { %2817 = vmatprep.subr.bf16.mxu0 %v2944_v13  ;;  %2811 = vmatprep.subr.bf16.mxu1 %v2944_v13 }
 0x921   : > { %v1969_v50 = vsel %vm660_vm0, %v4141_v33, 0.0  ;;  %2813 = vmatprep.mubr.msk.bf16.mxu1 %vm2945_vm13, %v2944_v13 }
 0x922   : > { %1970 = vadd.xlane.f32.xlu1 %v1969_v50  ;;  %1973 = vadd.xlane.f32.xlu0 %v1972_v10 }
 0x926   : > { %1976 = vadd.xlane.f32.xlu1 %v1975_v1 }
 0x9a7   : > { %v1968_v58 = vpop.xlane.xlu0 %1967 }
 0x9a8   : > { %v1978_v12 = vmul.f32 0.03125, %v1968_v58 }
 0x9aa   : > { %v1982_v28 = vsub.f32 %v4133_v36, %v1978_v12 }
 0x9ab   : > { %v1971_v60 = vpop.xlane.xlu1 %1970  ;;  %v1974_v11 = vpop.xlane.xlu0 %1973 }
 0x9ac   : > { %v1979_v23 = vmul.f32 0.03125, %v1971_v60  ;;  %v1980_v34 = vmul.f32 0.03125, %v1974_v11  ;;  %v1986_v32 = vmul.f32 %v1982_v28, %v1982_v28 }
 0x9ae   : > { %v1983_v24 = vsub.f32 %v4141_v33, %v1979_v23  ;;  %v1984_v2 = vsub.f32 %v4136_v4, %v1980_v34  ;;  %v1990_v55 = vsel %vm660_vm0, %v1986_v32, 0.0 }
 0x9af   : > { %v1977_v3 = vpop.xlane.xlu1 %1976  ;;  %1991 = vadd.xlane.f32.xlu0 %v1990_v55 }
 0x9b0   : > { %v1981_v38 = vmul.f32 0.03125, %v1977_v3  ;;  %v1987_v21 = vmul.f32 %v1983_v24, %v1983_v24  ;;  %v1988_v18 = vmul.f32 %v1984_v2, %v1984_v2 }
 0x9b2   : > { %v1985_v26 = vsub.f32 %v4144_v8, %v1981_v38  ;;  %v1993_v37 = vsel %vm660_vm0, %v1987_v21, 0.0  ;;  %v1996_v44 = vsel %vm660_vm0, %v1988_v18, 0.0  ;;  %v629_v38 = vld [vmem:[%s540_s22] sm:$0x1]  ;;  %v630_v21 = vld [vmem:[%s540_s22 + $0x1] sm:$0x1] }
 0x9b3   : > { %1994 = vadd.xlane.f32.xlu1 %v1993_v37  ;;  %1997 = vadd.xlane.f32.xlu0 %v1996_v44  ;;  %vm631_vm14 = vcmp.gt.f32.partialorder %v629_v38, 0.0  ;;  %v2947_v18 = vmov 0   ;;  %vm632_vm15 = vcmp.gt.f32.partialorder %v630_v21, 0.0 }
 0x9b4   : > { %v1989_v53 = vmul.f32 %v1985_v26, %v1985_v26  ;;  %v2220_v44 = vsel %vm632_vm15, 1, %v2947_v18 }
 0x9b6   : > { %v1999_v45 = vsel %vm660_vm0, %v1989_v53, 0.0 }
 0x9b7   : > { %2000 = vadd.xlane.f32.xlu1 %v1999_v45  ;;  %v2228_v45 = vrot.slane %v2220_v44, %v3101_v56 }
 0x9b9   : > { %vm2230_vm3 = vcmp.eq.s32.totalorder %v2228_v45, 1 }
 0xa38   : > { %v1992_v0 = vpop.xlane.xlu0 %1991 }
 0xa39   : > { %v2002_v41 = vmul.f32 0.03125, %v1992_v0 }
 0xa3b   : > { %v2006_v17 = vadd.f32 1e-05, %v2002_v41 }
 0xa3c   : > { %v1995_v30 = vpop.xlane.xlu1 %1994  ;;  %v1998_v40 = vpop.xlane.xlu0 %1997 }
 0xa3d   : > { %2900 = vrsqrt.f32 %v2006_v17  ;;  %v2003_v48 = vmul.f32 0.03125, %v1995_v30  ;;  %v2004_v51 = vmul.f32 0.03125, %v1998_v40 }
 0xa3f   : > { %v2007_v49 = vadd.f32 1e-05, %v2003_v48  ;;  %v2008_v57 = vadd.f32 1e-05, %v2004_v51 }
 0xa40   : > { %v2001_v29 = vpop.xlane.xlu1 %2000 }
 0xa41   : > { %2902 = vrsqrt.f32 %v2007_v49  ;;  %v2005_v47 = vmul.f32 0.03125, %v2001_v29 }
 0xa42   : > { %2904 = vrsqrt.f32 %v2008_v57 }
 0xa43   : > { %v2009_v54 = vadd.f32 1e-05, %v2005_v47 }
 0xa45   : > { %2906 = vrsqrt.f32 %v2009_v54 }
 0xa4a   : > { %v2901_v31 = vpop.eup %2900 }
 0xa4b   : > { %v2014_v16 = vmul.f32 %v2901_v31, %v1982_v28 }
 0xa4d   : > { %v2024_v15 = vmul.f32 %v2714_v14, %v2014_v16 }
 0xa4e   : > { %v2903_v35 = vpop.eup %2902 }
 0xa4f   : > { %v2905_v62 = vpop.eup %2904  ;;  %v2015_v7 = vmul.f32 %v2903_v35, %v1983_v24  ;;  %v2034_v43 = vadd.f32 %v2715_v6, %v2024_v15 }
 0xa50   : > { %v2016_v52 = vmul.f32 %v2905_v62, %v1984_v2 }
 0xa51   : > { %v2025_v20 = vmul.f32 %v2714_v14, %v2015_v7 }
 0xa52   : > { %v2907_v22 = vpop.eup %2906  ;;  %v2026_v9 = vmul.f32 %v2714_v14, %v2016_v52 }
 0xa53   : > { %v2017_v39 = vmul.f32 %v2907_v22, %v1985_v26  ;;  %v2035_v25 = vadd.f32 %v2715_v6, %v2025_v20  ;;  %v2219_v26 = vsel %vm631_vm14, 1, %v2947_v18 }
 0xa54   : > { %v2036_v46 = vadd.f32 %v2715_v6, %v2026_v9  ;;  %v2224_v37 = vrot.slane %v2219_v26, %v3101_v56 }
 0xa55   : > { %v2038_v63 = vpack.c.bf16 %v2035_v25, %v2034_v43  ;;  %v2027_v19 = vmul.f32 %v2714_v14, %v2017_v39 }
 0xa56   : > { %vm2229_vm1 = vcmp.eq.s32.totalorder %v2224_v37, 1 }
 0xa57   : > { %2807 = vmatprep.mubr.msk.bf16.mxu0 %vm660_vm0, %v2038_v63  ;;  %v2037_v59 = vadd.f32 %v2715_v6, %v2027_v19 }
 0xa59   : > { %v2039_v27 = vpack.c.bf16 %v2037_v59, %v2036_v46 }
 0xa5b   : > { %2808 = vmatmul.mubr.msk.bf16.vlgmr.msra.gmra.mxu0 %vm660_vm0, %v2039_v27 }
 0xa5c   : > { %2819 = vmatprep.mubr.msk.bf16.mxu0 %vm2945_vm13, %v2944_v13 }
 0xb1b   : > { %v2809_v61 = vpop.f32.mrf.mxu0 }
 0xb1c   : > { %v2113_v1 = vmul.f32 0.17677669, %v2809_v61 }
 0xb1d   : > { %v2096_v50 = vpop.f32.mrf.mxu0 }
 0xb1e   : > { %v2111_v55 = vmul.f32 0.17677669, %v2096_v50 }
 0xb1f   : > { %v2810_v10 = vpop.f32.mrf.mxu0 }
 0xb20   : > { %v2114_v58 = vmul.f32 0.17677669, %v2810_v10  ;;  %v4176_v12 = vpack.c.bf16 %v2810_v10, %v2809_v61 }
 0xb21   : > { %v2099_v28 = vpop.f32.mrf.mxu0 }
 0xb22   : > { %v2116_v60 = vpack.c.bf16 %v2114_v58, %v2113_v1  ;;  %v4178_v11 = vpack.c.bf16 %v2099_v28, %v2096_v50  ;;  %2170 = vrot.lane.b32.xlu1 %v4176_v12, %s2946_s18  ;;  %v2112_v2 = vmul.f32 0.17677669, %v2099_v28 }
 0xb24   : > { %2120 = vrot.lane.b32.xlu0 %v4178_v11, %s2946_s18  ;;  %v2115_v3 = vpack.c.bf16 %v2112_v2, %v2111_v55 }
 0xb94   : > { %v2171_v23 = vpop.permute.xlu1 %2170 }
 0xb95   : > { %v2176_v34 = vsel %vm660_vm0, %v2171_v23, 0 }
 0xb96   : > { %2818 = vmatpush3.bf16.xpose.msra.mxu0 %v2176_v34  ;;  %v2121_v32 = vpop.permute.xlu0 %2120 }
 0xb97   : > { %v2126_v24 = vsel %vm660_vm0, %v2121_v32, 0  ;;  %2829 = vmatprep.subr.bf16.mxu0 %v2944_v13 }
 0xb98   : > { %2812 = vmatpush3.bf16.xpose.msra.mxu1 %v2126_v24 }
 0xb99   : > { %2823 = vmatprep.subr.bf16.mxu1 %v2944_v13 }
 0xb9d   : > { %2820 = vmatmul.mubr.msk.bf16.vlgmr.msra.gmra.mxu0 %vm660_vm0, %v2116_v60 }
 0xb9e   : > { %2831 = vmatprep.mubr.msk.bf16.mxu0 %vm2945_vm13, %v2944_v13 }
 0xb9f   : > { %2814 = vmatmul.mubr.msk.bf16.vlgmr.msra.gmra.mxu1 %vm660_vm0, %v2115_v3 }
 0xba0   : > { %2825 = vmatprep.mubr.msk.bf16.mxu1 %vm2945_vm13, %v2944_v13 }
 0xc5d   : > { %v2212_v53 = vpop.f32.mrf.mxu0 }
 0xc5e   : > { %v2233_v47 = vsel %vm2230_vm3, %v2212_v53, -1e+15 }
 0xc5f   : > { %v2162_v5 = vpop.f32.mrf.mxu1  ;;  %v2821_v42 = vpop.f32.mrf.mxu0  ;;  %v2242_v54 = vsel %vm2235_vm2, %v2233_v47, -inf }
 0xc60   : > { %v2231_v0 = vsel %vm2229_vm1, %v2162_v5, -1e+15 }
 0xc61   : > { %v2815_v41 = vpop.f32.mrf.mxu1  ;;  %v2215_v17 = vpop.f32.mrf.mxu0  ;;  %v2236_v30 = vsel %vm2235_vm2, %v2231_v0, -inf }
 0xc62   : > { %v2234_v40 = vsel %vm2230_vm3, %v2215_v17, -1e+15  ;;  %2237 = vmax.xlane.f32.xlu1 %v2236_v30 }
 0xc63   : > { %v2165_v48 = vpop.f32.mrf.mxu1  ;;  %v2822_v51 = vpop.f32.mrf.mxu0  ;;  %v2245_v29 = vsel %vm2235_vm2, %v2234_v40, -inf }
 0xc64   : > { %v2232_v49 = vsel %vm2229_vm1, %v2165_v48, -1e+15 }
 0xc65   : > { %v2816_v57 = vpop.f32.mrf.mxu1  ;;  %v2239_v56 = vsel %vm2235_vm2, %v2232_v49, -inf }
 0xc66   : > { %2246 = vmax.xlane.f32.xlu1 %v2245_v29  ;;  %2240 = vmax.xlane.f32.xlu0 %v2239_v56 }
 0xc6a   : > { %2243 = vmax.xlane.f32.xlu0 %v2242_v54 }
 0xceb   : > { %v2238_v31 = vpop.xlane.xlu1 %2237 }
 0xcec   : > { %v2248_v7 = vsub.f32 %v2231_v0, %v2238_v31 }
 0xcee   : > { %v2252_v22 = vmul.f32 1.442695, %v2248_v7 }
 0xcef   : > { %v2247_v16 = vpop.xlane.xlu1 %2246  ;;  %v2241_v14 = vpop.xlane.xlu0 %2240 }
 0xcf0   : > { %v2251_v35 = vsub.f32 %v2234_v40, %v2247_v16  ;;  %v2249_v62 = vsub.f32 %v2232_v49, %v2241_v14 }
 0xcf2   : > { %v2258_v15 = vmul.f32 1.442695, %v2251_v35  ;;  %v2254_v52 = vmul.f32 1.442695, %v2249_v62 }
 0xcf3   : > { %v2244_v6 = vpop.xlane.xlu0 %2243 }
 0xcf4   : > { %2908 = vpow2.f32 %v2258_v15  ;;  %v2250_v20 = vsub.f32 %v2233_v47, %v2244_v6  ;;  %v2866_v6 = vld [vmem:[%s4285_s14 + $0x8] sm:$0xff]  }
 0xcf5   : > { %2910 = vpow2.f32 %v2254_v52 }
 0xcf6   : > { %v2256_v39 = vmul.f32 1.442695, %v2250_v20  ;;  %v2867_v20 = vld [vmem:[%s4285_s14] sm:$0xff]  }
 0xcf8   : > { %2912 = vpow2.f32 %v2256_v39 }
 0xcf9   : > { %2914 = vpow2.f32 %v2252_v22 }
 0xd01   : > { %v2909_v43 = vpop.eup %2908 }
 0xd02   : > { %v2269_v25 = vsel %vm2235_vm2, %v2909_v43, 0.0  ;;  %v2911_v9 = vpop.eup %2910 }
 0xd03   : > { %2270 = vadd.xlane.f32.xlu1 %v2269_v25  ;;  %v2263_v19 = vsel %vm2235_vm2, %v2911_v9, 0.0 }
 0xd05   : > { %v2913_v63 = vpop.eup %2912 }
 0xd06   : > { %v2266_v46 = vsel %vm2235_vm2, %v2913_v63, 0.0  ;;  %v2915_v59 = vpop.eup %2914 }
 0xd07   : > { %2264 = vadd.xlane.f32.xlu1 %v2263_v19  ;;  %2267 = vadd.xlane.f32.xlu0 %v2266_v46  ;;  %v2260_v27 = vsel %vm2235_vm2, %v2915_v59, 0.0 }
 0xd0b   : > { %2261 = vadd.xlane.f32.xlu0 %v2260_v27 }
 0xd18   : > { %2329 = vrot.lane.b32.xlu1 %v4176_v12, %s2948_s25 }
 0xd21   : > { %2282 = vrot.lane.b32.xlu0 %v4178_v11, %s2948_s25 }
 0xd8c   : > { %v2271_v13 = vpop.xlane.xlu1 %2270 }
 0xd8d   : > { %2916 = vrcp.f32 %v2271_v13 }
 0xd90   : > { %v2265_v61 = vpop.xlane.xlu1 %2264  ;;  %v2268_v50 = vpop.xlane.xlu0 %2267 }
 0xd91   : > { %2918 = vrcp.f32 %v2268_v50 }
 0xd92   : > { %2920 = vrcp.f32 %v2265_v61 }
 0xd94   : > { %v2330_v10 = vpop.permute.xlu1 %2329  ;;  %v2262_v1 = vpop.xlane.xlu0 %2261 }
 0xd95   : > { %2922 = vrcp.f32 %v2262_v1  ;;  %2830 = vmatpush3.bf16.msra.mxu0 %v2330_v10  ;;  %v2724_v1 = vld [vmem:[%s4283_s12] ss:$0 sm:$0xff] }
 0xd98   : > { %v2283_v58 = vpop.permute.xlu0 %2282 }
 0xd99   : > { %2824 = vmatpush3.bf16.msra.mxu1 %v2283_v58 }
 0xd9a   : > { %v2917_v28 = vpop.eup %2916  ;;  %2835 = vmatprep.subr.bf16.mxu1 %v2866_v6 }
 0xd9b   : > { %v2279_v32 = vmul.f32 %v2917_v28, %v2909_v43 }
 0xd9e   : > { %v2919_v60 = vpop.eup %2918 }
 0xd9f   : > { %v2921_v23 = vpop.eup %2920  ;;  %v2278_v34 = vmul.f32 %v2919_v60, %v2913_v63 }
 0xda0   : > { %v2277_v2 = vmul.f32 %v2921_v23, %v2911_v9  ;;  %v2725_v23 = vld [vmem:[%s4284_s13] ss:$0 sm:$0xff] }
 0xda1   : > { %v2281_v24 = vpack.c.bf16 %v2279_v32, %v2278_v34 }
 0xda2   : > { %v2923_v12 = vpop.eup %2922 }
 0xda3   : > { %v2276_v11 = vmul.f32 %v2923_v12, %v2915_v59  ;;  %2832 = vmatmul.mubr.msk.bf16.vlgmr.msra.gmra.mxu0 %vm2235_vm2, %v2281_v24 }
 0xda5   : > { %v2280_v55 = vpack.c.bf16 %v2277_v2, %v2276_v11 }
 0xda7   : > { %2826 = vmatmul.mubr.msk.bf16.vlgmr.msra.gmra.mxu1 %vm2235_vm2, %v2280_v55 }
 0xda8   : > { %2836 = vmatpush3.bf16.msra.mxu1 %v2866_v6 }
 0xda9   : > { %2837 = vmatprep.subr.bf16.mxu1 %v2867_v20 }
 0xdac   : > { %2838 = vmatpush3.bf16.msra.mxu1 %v2867_v20 }
 0xe63   : > { %v2369_v3 = vpop.f32.mrf.mxu0 }
 0xe64   : > { %v4218_v41 = vadd.f32 %v2369_v3, %v4136_v4 }
 0xe65   : > { %v2833_v38 = vpop.f32.mrf.mxu0 }
 0xe66   : > { %v2388_v17 = vsel %vm660_vm0, %v4218_v41, 0.0 }
 0xe67   : > { %v2322_v21 = vpop.f32.mrf.mxu1  ;;  %v2372_v26 = vpop.f32.mrf.mxu0 }
 0xe68   : > { %v4207_v18 = vadd.f32 %v2322_v21, %v4133_v36  ;;  %v4210_v44 = vadd.f32 %v2372_v26, %v4144_v8 }
 0xe69   : > { %v2827_v37 = vpop.f32.mrf.mxu1  ;;  %v2834_v53 = vpop.f32.mrf.mxu0 }
 0xe6a   : > { %v2382_v45 = vsel %vm660_vm0, %v4207_v18, 0.0  ;;  %v2391_v36 = vsel %vm660_vm0, %v4210_v44, 0.0 }
 0xe6b   : > { %2383 = vadd.xlane.f32.xlu1 %v2382_v45  ;;  %v2325_v5 = vpop.f32.mrf.mxu1  ;;  %v2726_v45 = vld [vmem:[%s4286_s15] ss:$0 sm:$0xff] }
 0xe6c   : > { %v4215_v42 = vadd.f32 %v2325_v5, %v4141_v33 }
 0xe6d   : > { %v2828_v0 = vpop.f32.mrf.mxu1 }
 0xe6e   : > { %v2385_v8 = vsel %vm660_vm0, %v4215_v42, 0.0 }
 0xe6f   : > { %2392 = vadd.xlane.f32.xlu1 %v2391_v36  ;;  %2386 = vadd.xlane.f32.xlu0 %v2385_v8 }
 0xe73   : > { %2389 = vadd.xlane.f32.xlu0 %v2388_v17 }
 0xef4   : > { %v2384_v30 = vpop.xlane.xlu1 %2383 }
 0xef5   : > { %v2394_v40 = vmul.f32 0.03125, %v2384_v30 }
 0xef7   : > { %v2398_v33 = vsub.f32 %v4207_v18, %v2394_v40 }
 0xef8   : > { %v2393_v48 = vpop.xlane.xlu1 %2392  ;;  %v2387_v51 = vpop.xlane.xlu0 %2386 }
 0xef9   : > { %v2397_v4 = vmul.f32 0.03125, %v2393_v48  ;;  %v2395_v49 = vmul.f32 0.03125, %v2387_v51  ;;  %v2402_v57 = vmul.f32 %v2398_v33, %v2398_v33 }
 0xefb   : > { %v2401_v29 = vsub.f32 %v4210_v44, %v2397_v4  ;;  %v2399_v56 = vsub.f32 %v4215_v42, %v2395_v49  ;;  %v2406_v47 = vsel %vm660_vm0, %v2402_v57, 0.0 }
 0xefc   : > { %2407 = vadd.xlane.f32.xlu0 %v2406_v47  ;;  %v2390_v54 = vpop.xlane.xlu0 %2389 }
 0xefd   : > { %v2396_v31 = vmul.f32 0.03125, %v2390_v54  ;;  %v2403_v16 = vmul.f32 %v2399_v56, %v2399_v56  ;;  %v2405_v62 = vmul.f32 %v2401_v29, %v2401_v29 }
 0xeff   : > { %v2400_v14 = vsub.f32 %v4218_v41, %v2396_v31  ;;  %v2409_v35 = vsel %vm660_vm0, %v2403_v16, 0.0  ;;  %v2415_v15 = vsel %vm660_vm0, %v2405_v62, 0.0 }
 0xf00   : > { %2410 = vadd.xlane.f32.xlu1 %v2409_v35 }
 0xf01   : > { %v2404_v7 = vmul.f32 %v2400_v14, %v2400_v14 }
 0xf03   : > { %v2412_v52 = vsel %vm660_vm0, %v2404_v7, 0.0 }
 0xf04   : > { %2416 = vadd.xlane.f32.xlu1 %v2415_v15  ;;  %2413 = vadd.xlane.f32.xlu0 %v2412_v52 }
 0xf85   : > { %v2408_v22 = vpop.xlane.xlu0 %2407 }
 0xf86   : > { %v2418_v39 = vmul.f32 0.03125, %v2408_v22 }
 0xf88   : > { %v2422_v43 = vadd.f32 1e-05, %v2418_v39 }
 0xf89   : > { %v2411_v25 = vpop.xlane.xlu1 %2410 }
 0xf8a   : > { %2924 = vrsqrt.f32 %v2422_v43  ;;  %v2419_v9 = vmul.f32 0.03125, %v2411_v25 }
 0xf8c   : > { %v2423_v63 = vadd.f32 1e-05, %v2419_v9 }
 0xf8d   : > { %v2417_v19 = vpop.xlane.xlu1 %2416  ;;  %v2414_v46 = vpop.xlane.xlu0 %2413 }
 0xf8e   : > { %2926 = vrsqrt.f32 %v2423_v63  ;;  %v2421_v59 = vmul.f32 0.03125, %v2417_v19  ;;  %v2420_v27 = vmul.f32 0.03125, %v2414_v46 }
 0xf90   : > { %v2425_v13 = vadd.f32 1e-05, %v2421_v59  ;;  %v2424_v61 = vadd.f32 1e-05, %v2420_v27 }
 0xf92   : > { %2928 = vrsqrt.f32 %v2425_v13 }
 0xf93   : > { %2930 = vrsqrt.f32 %v2424_v61 }
 0xf97   : > { %v2925_v50 = vpop.eup %2924 }
 0xf98   : > { %v2430_v10 = vmul.f32 %v2925_v50, %v2398_v33 }
 0xf9a   : > { %v2440_v60 = vmul.f32 %v2724_v1, %v2430_v10 }
 0xf9b   : > { %v2927_v58 = vpop.eup %2926 }
 0xf9c   : > { %v2431_v28 = vmul.f32 %v2927_v58, %v2399_v56  ;;  %v2450_v11 = vadd.f32 %v2725_v23, %v2440_v60 }
 0xf9e   : > { %v2441_v34 = vmul.f32 %v2724_v1, %v2431_v28 }
 0xf9f   : > { %v2929_v32 = vpop.eup %2928 }
 0xfa0   : > { %v2931_v12 = vpop.eup %2930  ;;  %v2433_v24 = vmul.f32 %v2929_v32, %v2401_v29  ;;  %v2451_v2 = vadd.f32 %v2725_v23, %v2441_v34 }
 0xfa1   : > { %v2432_v55 = vmul.f32 %v2931_v12, %v2400_v14 }
 0xfa2   : > { %v2454_v3 = vpack.c.bf16 %v2451_v2, %v2450_v11  ;;  %v2443_v38 = vmul.f32 %v2724_v1, %v2433_v24 }
 0xfa3   : > { %v2442_v21 = vmul.f32 %v2724_v1, %v2432_v55 }
 0xfa4   : > { %2839 = vmatprep.mubr.msk.bf16.mxu1 %vm660_vm0, %v2454_v3  ;;  %v2453_v26 = vadd.f32 %v2725_v23, %v2443_v38 }
 0xfa5   : > { %v2452_v37 = vadd.f32 %v2725_v23, %v2442_v21 }
 0xfa7   : > { %v2455_v53 = vpack.c.bf16 %v2453_v26, %v2452_v37 }
 0xfa9   : > { %2840 = vmatmul.mubr.msk.bf16.vlgmr.msra.gmra.mxu1 %vm660_vm0, %v2455_v53 }
0x1069   : > { %v2841_v5 = vpop.f32.mrf.mxu1 }
0x106a   : > { %v2528_v0 = vadd.f32 %v2841_v5, %v2726_v45 }
0x106b   : > { %v2519_v36 = vpop.f32.mrf.mxu1 }
0x106c   : > { %v2536_v8 = vmax.f32 %v2528_v0, 0.0  ;;  %v2520_v17 = vadd.f32 %v2726_v45, %v2519_v36 }
0x106d   : > { %v2842_v30 = vpop.f32.mrf.mxu1 }
0x106e   : > { %v2540_v40 = vadd.f32 %v2536_v8, %v4218_v41  ;;  %v2534_v33 = vmax.f32 %v2520_v17, 0.0  ;;  %v2531_v48 = vadd.f32 %v2842_v30, %v2726_v45 }
0x106f   : > { %v2522_v51 = vpop.f32.mrf.mxu1 }
0x1070   : > { %v2538_v4 = vadd.f32 %v2534_v33, %v4207_v18  ;;  %v2537_v49 = vmax.f32 %v2531_v48, 0.0  ;;  %v2523_v57 = vadd.f32 %v2726_v45, %v2522_v51  ;;  %2578 = vxpose.xlu1.b32.start [1/2] (short) (narrow) %v2540_v40, 32 }
0x1072   : > { %v2541_v29 = vadd.f32 %v2537_v49, %v4210_v44  ;;  %v2535_v56 = vmax.f32 %v2523_v57, 0.0  ;;  %2542 = vxpose.xlu0.b32.start [1/2] (short) (narrow) %v2538_v4, 32 }
0x1074   : > { %v2539_v47 = vadd.f32 %v2535_v56, %v4215_v42  ;;  %2579 = vxpose.xlu1.b32.end [2/2] (short) (narrow) %v2541_v29, 32 }
0x1076   : > { %2543 = vxpose.xlu0.b32.end [2/2] (short) (narrow) %v2539_v47, 32 }
0x10ec   : > { %v2594_v41 = vpop.trf.xlu1 }
0x10ed   : > { %2731 = vst.msk [vmem:[%s547_s26 + $0x20] sm:$0xff] %vm2235_vm2, %v2594_v41 }
0x10ee   : > { %v2558_v54 = vpop.trf.xlu0 }
0x10ef   : > { %2574 = vst.msk [vmem:[%s547_s26] sm:$0xff] %vm2235_vm2, %v2558_v54 }
0x10f0   : > { %v2595_v18 = vpop.trf.xlu1 }
0x10f1   : > { %2732 = vst.msk [vmem:[%s547_s26 + $0x28] sm:$0xff] %vm2235_vm2, %v2595_v18 }
0x10f2   : > { %v2559_v31 = vpop.trf.xlu0 }
0x10f3   : > { %2575 = vst.msk [vmem:[%s547_s26 + $0x8] sm:$0xff] %vm2235_vm2, %v2559_v31 }
0x10f4   : > { %v2596_v44 = vpop.trf.xlu1 }
0x10f5   : > { %2733 = vst.msk [vmem:[%s547_s26 + $0x30] sm:$0xff] %vm2235_vm2, %v2596_v44 }
0x10f6   : > { %v2560_v42 = vpop.trf.xlu0 }
0x10f7   : > { %2576 = vst.msk [vmem:[%s547_s26 + $0x10] sm:$0xff] %vm2235_vm2, %v2560_v42 }
0x10f8   : > { %v2597_v16 = vpop.trf.xlu1 }
0x10f9   : > { %2734 = vst.msk [vmem:[%s547_s26 + $0x38] sm:$0xff] %vm2235_vm2, %v2597_v16 }
0x10fa   : > { %v2561_v14 = vpop.trf.xlu0 }
0x10fb   : > { %2577 = vst.msk [vmem:[%s547_s26 + $0x18] sm:$0xff] %vm2235_vm2, %v2561_v14 }
0x10fc PF: > { %s26_s21 = sadd.s32 1, %s2942_s21  }
0x10fd   : > { %p23_p4 = scmp.ge.s32.totalorder %s26_s21, 4  }
0x10ff   :  { %25 = sbr.rel (!%p23_p4) target bundleno = 2 (0x2), region = 119 }

</bundles_post_ra>
